<compile_context>
chip_gen: v5e
topology: v5e:2x2
jax: 0.10.0
libtpu: 0.0.40
codegen_flags: <defaults>
</compile_context>

<pallas_src>
import functools

import jax
import jax.numpy as jnp
from jax.experimental import pallas as pl
from jax.experimental.pallas import tpu as pltpu


def _spatial_attention_kernel(x_ref, t_ref, o_ref, *, inv_c, hw, hwp):
    """x_ref: (Bblk, C, HW); t_ref: (2[hi/lo], 2[avg/max], HW, HWp) bf16;
    o_ref: (Bblk, 2, HWp)."""
    x = x_ref[...]                                            # native dtype
    mx = jnp.max(x, axis=1).astype(jnp.float32)               # (Bblk, HW)
    avg = jnp.sum(x.astype(jnp.float32), axis=1) * inv_c      # (Bblk, HW)

    # hi/lo bf16 split of the (avg, max) operands; MXU products of bf16 pairs
    # are exact in the f32 accumulator, so hi@hi + hi@lo + lo@hi reproduces the
    # f32 conv up to the dropped lo@lo term (~2^-16 relative).
    avg_h = avg.astype(jnp.bfloat16)
    avg_l = (avg - avg_h.astype(jnp.float32)).astype(jnp.bfloat16)
    mx_h = mx.astype(jnp.bfloat16)
    mx_l = (mx - mx_h.astype(jnp.float32)).astype(jnp.bfloat16)

    dot = functools.partial(jnp.dot, preferred_element_type=jnp.float32)
    conv = (dot(avg_h, t_ref[0, 0]) + dot(mx_h, t_ref[0, 1])     # hi @ hi
            + dot(avg_h, t_ref[1, 0]) + dot(mx_h, t_ref[1, 1])   # hi @ lo
            + dot(avg_l, t_ref[0, 0]) + dot(mx_l, t_ref[0, 1]))  # lo @ hi
    sig = jax.nn.sigmoid(conv)                                   # (Bblk, HWp)

    if hwp != hw:  # pad avg/max to the lane-dense output width (static branch)
        pad = ((0, 0), (0, hwp - hw))
        avg = jnp.pad(avg, pad)
        mx = jnp.pad(mx, pad)
    o_ref[:, 0, :] = (avg * sig).astype(o_ref.dtype)
    o_ref[:, 1, :] = (mx * sig).astype(o_ref.dtype)


def _toeplitz_weights(w, H, W, HWp):
    """(1, 2, K, K) conv weight -> (2, 2, H*W, HWp) bf16 hi/lo block-Toeplitz.

    T[part, c, y*W + x, yo*W + xo] = w[0, c, y-yo+P, x-xo+P] when that tap
    exists (0 otherwise, incl. the padded output columns), so
    `avg @ T[:,0] + max @ T[:,1]` equals the zero-padded 'same' conv of the
    2-channel (avg, max) map.  Built from K*K masked tap writes (no gathers).
    """
    K = w.shape[-1]
    P = K // 2
    HW = H * W
    yy = jnp.repeat(jnp.arange(H, dtype=jnp.int32), W)       # flat -> row
    xx = jnp.tile(jnp.arange(W, dtype=jnp.int32), H)         # flat -> col
    dy = yy[:, None] - yy[None, :]                           # (HW, HW)
    dx = xx[:, None] - xx[None, :]
    w0 = w[0].astype(jnp.float32)                            # (2, K, K)
    t = jnp.zeros((2, HW, HW), jnp.float32)
    for ty in range(K):
        for tx in range(K):
            mask = (dy == (ty - P)) & (dx == (tx - P))       # (HW, HW)
            t = t + jnp.where(mask[None], w0[:, ty, tx][:, None, None], 0.0)
    if HWp > HW:                                             # lane-dense pad
        t = jnp.pad(t, ((0, 0), (0, 0), (0, HWp - HW)))
    t_hi = t.astype(jnp.bfloat16)
    t_lo = (t - t_hi.astype(jnp.float32)).astype(jnp.bfloat16)
    return jnp.stack([t_hi, t_lo], axis=0)                   # (2, 2, HW, HWp)


def _device_profile():
    """Per-generation heuristics: TensorCores per chip, per-step input-block
    byte budget, scoped-VMEM request cap."""
    kind = ""
    try:
        kind = jax.devices()[0].device_kind.lower()
    except Exception:
        pass
    if "v7" in kind:
        # 2 TCs, 64 MiB VMEM/TC, ~3.2 TB/s HBM: large blocks, modest VMEM ask.
        return {"num_tc": 2, "block_cap": 10 << 20, "vmem_cap": 48 << 20}
    if "v6" in kind or "trillium" in kind:
        # 1 TC, 128 MiB VMEM, ~1.4 TB/s HBM.
        return {"num_tc": 1, "block_cap": 14 << 20, "vmem_cap": 96 << 20}
    if "v5e" in kind or "v5 lite" in kind or "v5lite" in kind:
        # 1 TC, ~0.82 TB/s HBM: 4 MiB blocks already amortize step overhead.
        return {"num_tc": 1, "block_cap": 4 << 20, "vmem_cap": 64 << 20}
    return {"num_tc": 1, "block_cap": 8 << 20, "vmem_cap": 64 << 20}


def _pick_batch_block(N, C, HW, itemsize, block_cap_bytes, num_tc):
    """Batch rows per grid step (= matmul M): largest divisor of N within the
    per-generation byte budget, preferring a sublane-aligned (multiple of 8)
    M; the '>=2 grid steps' constraint only applies on 2-TensorCore chips."""
    per_batch = max(C * HW * itemsize, 1)
    cap = max(1, block_cap_bytes // per_batch)
    if num_tc >= 2 and N >= 2:            # keep both v7x TCs busy
        cap = min(cap, max(1, N // 2))
    cap = min(cap, N)
    divisors = [d for d in range(1, cap + 1) if N % d == 0]
    best = max(divisors)
    aligned = [d for d in divisors if d % 8 == 0]
    if aligned and 2 * max(aligned) >= best:   # alignment vs. size trade-off
        best = max(aligned)
    return best


def spatial_attention(x, w, *, batch_block=None):
    """Pallas TPU forward of CBAM SpatialAttention.

    x: (N, C, H, W); w: (1, 2, K, K) Conv2d(2, 1, K, bias=False) weight.
    Returns (N, 2, H, W) = cat([mean_c(x), max_c(x)]) * sigmoid(conv(cat)).
    """
    N, C, H, W = x.shape
    HW = H * W
    if HW > 1024:
        # TODO(synk): H*W > 1024 needs the banded / spatially-tiled variant;
        # this dense block-Toeplitz path targets the usual CBAM map sizes.
        raise NotImplementedError("spatial_attention kernel requires H*W <= 1024")
    HWp = ((HW + 127) // 128) * 128            # lane-dense output width

    prof = _device_profile()
    t = _toeplitz_weights(w, H, W, HWp)        # (2, 2, HW, HWp) bf16
    x_flat = x.reshape(N, C, HW)               # contiguous -> free reshape

    if batch_block is None:
        batch_block = _pick_batch_block(N, C, HW, x.dtype.itemsize,
                                        prof["block_cap"], prof["num_tc"])
    assert N % batch_block == 0
    grid = (N // batch_block,)

    itemsize = x.dtype.itemsize
    est = (2 * batch_block * C * HW * itemsize      # double-buffered input
           + 2 * batch_block * 2 * HWp * itemsize   # double-buffered output
           + 2 * t.size * t.dtype.itemsize          # weights (worst-case 2 bufs)
           + (4 << 20))                             # compiler scratch headroom
    vmem_limit = int(min(max(est, 16 << 20), prof["vmem_cap"]))

    kernel = functools.partial(_spatial_attention_kernel,
                               inv_c=1.0 / C, hw=HW, hwp=HWp)
    t_shape = (2, 2, HW, HWp)
    t_imap = lambda n: (0, 0, 0, 0)

    def call(single_buffer_weights):
        if single_buffer_weights:
            t_spec = pl.BlockSpec(t_shape, t_imap, pipeline_mode=pl.Buffered(1))
        else:
            t_spec = pl.BlockSpec(t_shape, t_imap)
        return pl.pallas_call(
            kernel,
            out_shape=jax.ShapeDtypeStruct((N, 2, HWp), x.dtype),
            grid=grid,
            in_specs=[
                pl.BlockSpec((batch_block, C, HW), lambda n: (n, 0, 0)),
                t_spec,                                   # resident weights
            ],
            out_specs=pl.BlockSpec((batch_block, 2, HWp), lambda n: (n, 0, 0)),
            compiler_params=pltpu.CompilerParams(
                dimension_semantics=("parallel",),
                vmem_limit_bytes=vmem_limit),
        )(x_flat, t)

    try:
        out = call(True)   # grid-invariant weights: single-buffered
    except Exception:      # jax build without pipeline_mode / Buffered(1)
        out = call(False)

    if HWp != HW:
        out = out[..., :HW]
    return out.reshape(N, 2, H, W)


def reference(x, w):
    """Pure-JAX reference matching the PyTorch forward."""
    avg = jnp.mean(x, axis=1, keepdims=True)
    mx = jnp.max(x, axis=1, keepdims=True)
    cat = jnp.concatenate([avg, mx], axis=1)
    P = w.shape[-1] // 2
    conv = jax.lax.conv_general_dilated(
        cat, w, window_strides=(1, 1), padding=[(P, P), (P, P)],
        dimension_numbers=("NCHW", "OIHW", "NCHW"),
        precision=jax.lax.Precision.HIGHEST)
    return cat * jax.nn.sigmoid(conv)


if __name__ == "__main__":
    key = jax.random.PRNGKey(0)
    kx, kw = jax.random.split(key)

    N, C, H, W = 2, 4, 16, 16
    K = 7
    x = jax.random.normal(kx, (N, C, H, W), dtype=jnp.float32)

    # deterministic Conv2d(2, 1, 7, bias=False)-style weight init
    fan_in = 2 * K * K
    bound = 1.0 / (fan_in ** 0.5)
    w = jax.random.uniform(kw, (1, 2, K, K), dtype=jnp.float32,
                           minval=-bound, maxval=bound)

    out = jax.block_until_ready(spatial_attention(x, w))
    ref = jax.block_until_ready(reference(x, w))

    assert out.shape == (N, 2, H, W)
    err = float(jnp.max(jnp.abs(out - ref)))
    assert jnp.allclose(out, ref, atol=1e-4, rtol=1e-4), (
        f"mismatch vs reference (max abs err {err:.3e})")

    print("KERNEL_OK")
</pallas_src>

<mosaic_0001>
module attributes {stable_mosaic.version = 11 : i64} {
  func.func @_spatial_attention_kernel(%arg0: i32, %arg1: memref<2x4x256xf32, #tpu.memory_space<vmem>>, %arg2: memref<2x2x256x256xbf16, #tpu.memory_space<vmem>>, %arg3: memref<2x2x256xf32, #tpu.memory_space<vmem>>) attributes {dimension_semantics = [#tpu.dimension_semantics<parallel>], iteration_bounds = array<i64: 1>, scalar_prefetch = 0 : i64, scratch_operands = 0 : i64, tpu.core_type = #tpu.core_type<tc>, window_params = [{transform_indices = @transform_0, window_bounds = array<i64: 2, 4, 256>}, {pipeline_mode = #tpu.pipeline_mode<synchronous>, transform_indices = @transform_1, window_bounds = array<i64: 2, 2, 256, 256>}, {transform_indices = @transform_2, window_bounds = array<i64: 2, 2, 256>}]} {
    %c0 = arith.constant 0 : index
    %c0_0 = arith.constant 0 : index
    %c0_1 = arith.constant 0 : index
    %0 = vector.load %arg1[%c0, %c0_0, %c0_1] : memref<2x4x256xf32, #tpu.memory_space<vmem>>, vector<2x4x256xf32>
    %cst = arith.constant dense<0xFF800000> : vector<2x256xf32>
    %1 = vector.multi_reduction <maximumf>, %0, %cst [1] : vector<2x4x256xf32> to vector<2x256xf32>
    %cst_2 = arith.constant dense<0.000000e+00> : vector<2x256xf32>
    %2 = vector.multi_reduction <add>, %0, %cst_2 [1] : vector<2x4x256xf32> to vector<2x256xf32>
    %cst_3 = arith.constant 2.500000e-01 : f32
    %3 = vector.broadcast %cst_3 : f32 to vector<2x256xf32>
    %4 = arith.mulf %2, %3 : vector<2x256xf32>
    %5 = arith.truncf %4 : vector<2x256xf32> to vector<2x256xbf16>
    %6 = arith.extf %5 : vector<2x256xbf16> to vector<2x256xf32>
    %7 = arith.subf %4, %6 : vector<2x256xf32>
    %8 = arith.truncf %7 : vector<2x256xf32> to vector<2x256xbf16>
    %9 = arith.truncf %1 : vector<2x256xf32> to vector<2x256xbf16>
    %10 = arith.extf %9 : vector<2x256xbf16> to vector<2x256xf32>
    %11 = arith.subf %1, %10 : vector<2x256xf32>
    %12 = arith.truncf %11 : vector<2x256xf32> to vector<2x256xbf16>
    %c0_4 = arith.constant 0 : index
    %c0_5 = arith.constant 0 : index
    %c0_6 = arith.constant 0 : index
    %c0_7 = arith.constant 0 : index
    %13 = vector.load %arg2[%c0_4, %c0_5, %c0_6, %c0_7] : memref<2x2x256x256xbf16, #tpu.memory_space<vmem>>, vector<1x1x256x256xbf16>
    %14 = vector.shape_cast %13 : vector<1x1x256x256xbf16> to vector<256x256xbf16>
    %cst_8 = arith.constant dense<0.000000e+00> : vector<2x256xf32>
    %15 = tpu.matmul %5, %14, %cst_8 {dimension_numbers = #tpu.dot_dimension_numbers<[1], [0], [0], [1], [0, 0, 1, 1], [], []>} : vector<2x256xbf16>, vector<256x256xbf16>, vector<2x256xf32> -> vector<2x256xf32>
    %c0_9 = arith.constant 0 : index
    %c1 = arith.constant 1 : index
    %c0_10 = arith.constant 0 : index
    %c0_11 = arith.constant 0 : index
    %16 = vector.load %arg2[%c0_9, %c1, %c0_10, %c0_11] : memref<2x2x256x256xbf16, #tpu.memory_space<vmem>>, vector<1x1x256x256xbf16>
    %17 = vector.shape_cast %16 : vector<1x1x256x256xbf16> to vector<256x256xbf16>
    %cst_12 = arith.constant dense<0.000000e+00> : vector<2x256xf32>
    %18 = tpu.matmul %9, %17, %cst_12 {dimension_numbers = #tpu.dot_dimension_numbers<[1], [0], [0], [1], [0, 0, 1, 1], [], []>} : vector<2x256xbf16>, vector<256x256xbf16>, vector<2x256xf32> -> vector<2x256xf32>
    %19 = arith.addf %15, %18 : vector<2x256xf32>
    %c1_13 = arith.constant 1 : index
    %c0_14 = arith.constant 0 : index
    %c0_15 = arith.constant 0 : index
    %c0_16 = arith.constant 0 : index
    %20 = vector.load %arg2[%c1_13, %c0_14, %c0_15, %c0_16] : memref<2x2x256x256xbf16, #tpu.memory_space<vmem>>, vector<1x1x256x256xbf16>
    %21 = vector.shape_cast %20 : vector<1x1x256x256xbf16> to vector<256x256xbf16>
    %cst_17 = arith.constant dense<0.000000e+00> : vector<2x256xf32>
    %22 = tpu.matmul %5, %21, %cst_17 {dimension_numbers = #tpu.dot_dimension_numbers<[1], [0], [0], [1], [0, 0, 1, 1], [], []>} : vector<2x256xbf16>, vector<256x256xbf16>, vector<2x256xf32> -> vector<2x256xf32>
    %23 = arith.addf %19, %22 : vector<2x256xf32>
    %c1_18 = arith.constant 1 : index
    %c1_19 = arith.constant 1 : index
    %c0_20 = arith.constant 0 : index
    %c0_21 = arith.constant 0 : index
    %24 = vector.load %arg2[%c1_18, %c1_19, %c0_20, %c0_21] : memref<2x2x256x256xbf16, #tpu.memory_space<vmem>>, vector<1x1x256x256xbf16>
    %25 = vector.shape_cast %24 : vector<1x1x256x256xbf16> to vector<256x256xbf16>
    %cst_22 = arith.constant dense<0.000000e+00> : vector<2x256xf32>
    %26 = tpu.matmul %9, %25, %cst_22 {dimension_numbers = #tpu.dot_dimension_numbers<[1], [0], [0], [1], [0, 0, 1, 1], [], []>} : vector<2x256xbf16>, vector<256x256xbf16>, vector<2x256xf32> -> vector<2x256xf32>
    %27 = arith.addf %23, %26 : vector<2x256xf32>
    %c0_23 = arith.constant 0 : index
    %c0_24 = arith.constant 0 : index
    %c0_25 = arith.constant 0 : index
    %c0_26 = arith.constant 0 : index
    %28 = vector.load %arg2[%c0_23, %c0_24, %c0_25, %c0_26] : memref<2x2x256x256xbf16, #tpu.memory_space<vmem>>, vector<1x1x256x256xbf16>
    %29 = vector.shape_cast %28 : vector<1x1x256x256xbf16> to vector<256x256xbf16>
    %cst_27 = arith.constant dense<0.000000e+00> : vector<2x256xf32>
    %30 = tpu.matmul %8, %29, %cst_27 {dimension_numbers = #tpu.dot_dimension_numbers<[1], [0], [0], [1], [0, 0, 1, 1], [], []>} : vector<2x256xbf16>, vector<256x256xbf16>, vector<2x256xf32> -> vector<2x256xf32>
    %31 = arith.addf %27, %30 : vector<2x256xf32>
    %c0_28 = arith.constant 0 : index
    %c1_29 = arith.constant 1 : index
    %c0_30 = arith.constant 0 : index
    %c0_31 = arith.constant 0 : index
    %32 = vector.load %arg2[%c0_28, %c1_29, %c0_30, %c0_31] : memref<2x2x256x256xbf16, #tpu.memory_space<vmem>>, vector<1x1x256x256xbf16>
    %33 = vector.shape_cast %32 : vector<1x1x256x256xbf16> to vector<256x256xbf16>
    %cst_32 = arith.constant dense<0.000000e+00> : vector<2x256xf32>
    %34 = tpu.matmul %12, %33, %cst_32 {dimension_numbers = #tpu.dot_dimension_numbers<[1], [0], [0], [1], [0, 0, 1, 1], [], []>} : vector<2x256xbf16>, vector<256x256xbf16>, vector<2x256xf32> -> vector<2x256xf32>
    %35 = arith.addf %31, %34 : vector<2x256xf32>
    %36 = arith.negf %35 : vector<2x256xf32>
    %37 = math.exp %36 : vector<2x256xf32>
    %cst_33 = arith.constant 1.000000e+00 : f32
    %38 = vector.broadcast %cst_33 : f32 to vector<2x256xf32>
    %39 = arith.addf %38, %37 : vector<2x256xf32>
    %40 = arith.divf %38, %39 : vector<2x256xf32>
    %41 = arith.mulf %4, %40 : vector<2x256xf32>
    %c0_34 = arith.constant 0 : index
    %c0_35 = arith.constant 0 : index
    %c0_36 = arith.constant 0 : index
    %42 = vector.load %arg3[%c0_34, %c0_35, %c0_36] : memref<2x2x256xf32, #tpu.memory_space<vmem>>, vector<2x1x256xf32>
    %43 = vector.shape_cast %42 : vector<2x1x256xf32> to vector<2x256xf32>
    %44 = vector.shape_cast %41 : vector<2x256xf32> to vector<2x1x256xf32>
    tpu.vector_store %arg3[%c0_34, %c0_35, %c0_36], %44 {strides = array<i32>} : memref<2x2x256xf32, #tpu.memory_space<vmem>>, vector<2x1x256xf32>,
    %45 = arith.mulf %1, %40 : vector<2x256xf32>
    %c0_37 = arith.constant 0 : index
    %c1_38 = arith.constant 1 : index
    %c0_39 = arith.constant 0 : index
    %46 = vector.load %arg3[%c0_37, %c1_38, %c0_39] : memref<2x2x256xf32, #tpu.memory_space<vmem>>, vector<2x1x256xf32>
    %47 = vector.shape_cast %46 : vector<2x1x256xf32> to vector<2x256xf32>
    %48 = vector.shape_cast %45 : vector<2x256xf32> to vector<2x1x256xf32>
    tpu.vector_store %arg3[%c0_37, %c1_38, %c0_39], %48 {strides = array<i32>} : memref<2x2x256xf32, #tpu.memory_space<vmem>>, vector<2x1x256xf32>,
    return
  }
  func.func @transform_0(%arg0: i32) -> (i32, i32, i32) {
    %c0_i32 = arith.constant 0 : i32
    %c0_i32_0 = arith.constant 0 : i32
    %c0_i32_1 = arith.constant 0 : i32
    return %arg0, %c0_i32, %c0_i32_0 : i32, i32, i32
  }
  func.func @transform_1(%arg0: i32) -> (i32, i32, i32, i32) {
    %c0_i32 = arith.constant 0 : i32
    %c0_i32_0 = arith.constant 0 : i32
    %c0_i32_1 = arith.constant 0 : i32
    %c0_i32_2 = arith.constant 0 : i32
    %c0_i32_3 = arith.constant 0 : i32
    return %c0_i32, %c0_i32_0, %c0_i32_1, %c0_i32_2 : i32, i32, i32, i32
  }
  func.func @transform_2(%arg0: i32) -> (i32, i32, i32) {
    %c0_i32 = arith.constant 0 : i32
    %c0_i32_0 = arith.constant 0 : i32
    %c0_i32_1 = arith.constant 0 : i32
    return %arg0, %c0_i32, %c0_i32_0 : i32, i32, i32
  }
}

module attributes {stable_mosaic.version = 11 : i64} {
  func.func @_spatial_attention_kernel(%arg0: i32, %arg1: memref<2x4x256xf32, #tpu.memory_space<vmem>>, %arg2: memref<2x2x256x256xbf16, #tpu.memory_space<vmem>>, %arg3: memref<2x2x256xf32, #tpu.memory_space<vmem>>) attributes {dimension_semantics = [#tpu.dimension_semantics<parallel>], iteration_bounds = array<i64: 1>, scalar_prefetch = 0 : i64, scratch_operands = 0 : i64, tpu.core_type = #tpu.core_type<tc>, window_params = [{transform_indices = @transform_0, window_bounds = array<i64: 2, 4, 256>}, {pipeline_mode = #tpu.pipeline_mode<synchronous>, transform_indices = @transform_1, window_bounds = array<i64: 2, 2, 256, 256>}, {transform_indices = @transform_2, window_bounds = array<i64: 2, 2, 256>}]} {
    %c0 = arith.constant 0 : index
    %c0_0 = arith.constant 0 : index
    %c0_1 = arith.constant 0 : index
    %0 = vector.load %arg1[%c0, %c0_0, %c0_1] : memref<2x4x256xf32, #tpu.memory_space<vmem>>, vector<2x4x256xf32>
    %cst = arith.constant dense<0xFF800000> : vector<2x256xf32>
    %1 = vector.multi_reduction <maximumf>, %0, %cst [1] : vector<2x4x256xf32> to vector<2x256xf32>
    %cst_2 = arith.constant dense<0.000000e+00> : vector<2x256xf32>
    %2 = vector.multi_reduction <add>, %0, %cst_2 [1] : vector<2x4x256xf32> to vector<2x256xf32>
    %cst_3 = arith.constant 2.500000e-01 : f32
    %3 = vector.broadcast %cst_3 : f32 to vector<2x256xf32>
    %4 = arith.mulf %2, %3 : vector<2x256xf32>
    %5 = arith.truncf %4 : vector<2x256xf32> to vector<2x256xbf16>
    %6 = arith.extf %5 : vector<2x256xbf16> to vector<2x256xf32>
    %7 = arith.subf %4, %6 : vector<2x256xf32>
    %8 = arith.truncf %7 : vector<2x256xf32> to vector<2x256xbf16>
    %9 = arith.truncf %1 : vector<2x256xf32> to vector<2x256xbf16>
    %10 = arith.extf %9 : vector<2x256xbf16> to vector<2x256xf32>
    %11 = arith.subf %1, %10 : vector<2x256xf32>
    %12 = arith.truncf %11 : vector<2x256xf32> to vector<2x256xbf16>
    %c0_4 = arith.constant 0 : index
    %c0_5 = arith.constant 0 : index
    %c0_6 = arith.constant 0 : index
    %c0_7 = arith.constant 0 : index
    %13 = vector.load %arg2[%c0_4, %c0_5, %c0_6, %c0_7] : memref<2x2x256x256xbf16, #tpu.memory_space<vmem>>, vector<1x1x256x256xbf16>
    %14 = vector.shape_cast %13 : vector<1x1x256x256xbf16> to vector<256x256xbf16>
    %cst_8 = arith.constant dense<0.000000e+00> : vector<2x256xf32>
    %15 = tpu.matmul %5, %14, %cst_8 {dimension_numbers = #tpu.dot_dimension_numbers<[1], [0], [0], [1], [0, 0, 1, 1], [], []>} : vector<2x256xbf16>, vector<256x256xbf16>, vector<2x256xf32> -> vector<2x256xf32>
    %c0_9 = arith.constant 0 : index
    %c1 = arith.constant 1 : index
    %c0_10 = arith.constant 0 : index
    %c0_11 = arith.constant 0 : index
    %16 = vector.load %arg2[%c0_9, %c1, %c0_10, %c0_11] : memref<2x2x256x256xbf16, #tpu.memory_space<vmem>>, vector<1x1x256x256xbf16>
    %17 = vector.shape_cast %16 : vector<1x1x256x256xbf16> to vector<256x256xbf16>
    %cst_12 = arith.constant dense<0.000000e+00> : vector<2x256xf32>
    %18 = tpu.matmul %9, %17, %cst_12 {dimension_numbers = #tpu.dot_dimension_numbers<[1], [0], [0], [1], [0, 0, 1, 1], [], []>} : vector<2x256xbf16>, vector<256x256xbf16>, vector<2x256xf32> -> vector<2x256xf32>
    %19 = arith.addf %15, %18 : vector<2x256xf32>
    %c1_13 = arith.constant 1 : index
    %c0_14 = arith.constant 0 : index
    %c0_15 = arith.constant 0 : index
    %c0_16 = arith.constant 0 : index
    %20 = vector.load %arg2[%c1_13, %c0_14, %c0_15, %c0_16] : memref<2x2x256x256xbf16, #tpu.memory_space<vmem>>, vector<1x1x256x256xbf16>
    %21 = vector.shape_cast %20 : vector<1x1x256x256xbf16> to vector<256x256xbf16>
    %cst_17 = arith.constant dense<0.000000e+00> : vector<2x256xf32>
    %22 = tpu.matmul %5, %21, %cst_17 {dimension_numbers = #tpu.dot_dimension_numbers<[1], [0], [0], [1], [0, 0, 1, 1], [], []>} : vector<2x256xbf16>, vector<256x256xbf16>, vector<2x256xf32> -> vector<2x256xf32>
    %23 = arith.addf %19, %22 : vector<2x256xf32>
    %c1_18 = arith.constant 1 : index
    %c1_19 = arith.constant 1 : index
    %c0_20 = arith.constant 0 : index
    %c0_21 = arith.constant 0 : index
    %24 = vector.load %arg2[%c1_18, %c1_19, %c0_20, %c0_21] : memref<2x2x256x256xbf16, #tpu.memory_space<vmem>>, vector<1x1x256x256xbf16>
    %25 = vector.shape_cast %24 : vector<1x1x256x256xbf16> to vector<256x256xbf16>
    %cst_22 = arith.constant dense<0.000000e+00> : vector<2x256xf32>
    %26 = tpu.matmul %9, %25, %cst_22 {dimension_numbers = #tpu.dot_dimension_numbers<[1], [0], [0], [1], [0, 0, 1, 1], [], []>} : vector<2x256xbf16>, vector<256x256xbf16>, vector<2x256xf32> -> vector<2x256xf32>
    %27 = arith.addf %23, %26 : vector<2x256xf32>
    %c0_23 = arith.constant 0 : index
    %c0_24 = arith.constant 0 : index
    %c0_25 = arith.constant 0 : index
    %c0_26 = arith.constant 0 : index
    %28 = vector.load %arg2[%c0_23, %c0_24, %c0_25, %c0_26] : memref<2x2x256x256xbf16, #tpu.memory_space<vmem>>, vector<1x1x256x256xbf16>
    %29 = vector.shape_cast %28 : vector<1x1x256x256xbf16> to vector<256x256xbf16>
    %cst_27 = arith.constant dense<0.000000e+00> : vector<2x256xf32>
    %30 = tpu.matmul %8, %29, %cst_27 {dimension_numbers = #tpu.dot_dimension_numbers<[1], [0], [0], [1], [0, 0, 1, 1], [], []>} : vector<2x256xbf16>, vector<256x256xbf16>, vector<2x256xf32> -> vector<2x256xf32>
    %31 = arith.addf %27, %30 : vector<2x256xf32>
    %c0_28 = arith.constant 0 : index
    %c1_29 = arith.constant 1 : index
    %c0_30 = arith.constant 0 : index
    %c0_31 = arith.constant 0 : index
    %32 = vector.load %arg2[%c0_28, %c1_29, %c0_30, %c0_31] : memref<2x2x256x256xbf16, #tpu.memory_space<vmem>>, vector<1x1x256x256xbf16>
    %33 = vector.shape_cast %32 : vector<1x1x256x256xbf16> to vector<256x256xbf16>
    %cst_32 = arith.constant dense<0.000000e+00> : vector<2x256xf32>
    %34 = tpu.matmul %12, %33, %cst_32 {dimension_numbers = #tpu.dot_dimension_numbers<[1], [0], [0], [1], [0, 0, 1, 1], [], []>} : vector<2x256xbf16>, vector<256x256xbf16>, vector<2x256xf32> -> vector<2x256xf32>
    %35 = arith.addf %31, %34 : vector<2x256xf32>
    %36 = arith.negf %35 : vector<2x256xf32>
    %37 = math.exp %36 : vector<2x256xf32>
    %cst_33 = arith.constant 1.000000e+00 : f32
    %38 = vector.broadcast %cst_33 : f32 to vector<2x256xf32>
    %39 = arith.addf %38, %37 : vector<2x256xf32>
    %40 = arith.divf %38, %39 : vector<2x256xf32>
    %41 = arith.mulf %4, %40 : vector<2x256xf32>
    %c0_34 = arith.constant 0 : index
    %c0_35 = arith.constant 0 : index
    %c0_36 = arith.constant 0 : index
    %42 = vector.load %arg3[%c0_34, %c0_35, %c0_36] : memref<2x2x256xf32, #tpu.memory_space<vmem>>, vector<2x1x256xf32>
    %43 = vector.shape_cast %42 : vector<2x1x256xf32> to vector<2x256xf32>
    %44 = vector.shape_cast %41 : vector<2x256xf32> to vector<2x1x256xf32>
    tpu.vector_store %arg3[%c0_34, %c0_35, %c0_36], %44 {strides = array<i32>} : memref<2x2x256xf32, #tpu.memory_space<vmem>>, vector<2x1x256xf32>,
    %45 = arith.mulf %1, %40 : vector<2x256xf32>
    %c0_37 = arith.constant 0 : index
    %c1_38 = arith.constant 1 : index
    %c0_39 = arith.constant 0 : index
    %46 = vector.load %arg3[%c0_37, %c1_38, %c0_39] : memref<2x2x256xf32, #tpu.memory_space<vmem>>, vector<2x1x256xf32>
    %47 = vector.shape_cast %46 : vector<2x1x256xf32> to vector<2x256xf32>
    %48 = vector.shape_cast %45 : vector<2x256xf32> to vector<2x1x256xf32>
    tpu.vector_store %arg3[%c0_37, %c1_38, %c0_39], %48 {strides = array<i32>} : memref<2x2x256xf32, #tpu.memory_space<vmem>>, vector<2x1x256xf32>,
    return
  }
  func.func @transform_0(%arg0: i32) -> (i32, i32, i32) {
    %c0_i32 = arith.constant 0 : i32
    %c0_i32_0 = arith.constant 0 : i32
    %c0_i32_1 = arith.constant 0 : i32
    return %arg0, %c0_i32, %c0_i32_0 : i32, i32, i32
  }
  func.func @transform_1(%arg0: i32) -> (i32, i32, i32, i32) {
    %c0_i32 = arith.constant 0 : i32
    %c0_i32_0 = arith.constant 0 : i32
    %c0_i32_1 = arith.constant 0 : i32
    %c0_i32_2 = arith.constant 0 : i32
    %c0_i32_3 = arith.constant 0 : i32
    return %c0_i32, %c0_i32_0, %c0_i32_1, %c0_i32_2 : i32, i32, i32, i32
  }
  func.func @transform_2(%arg0: i32) -> (i32, i32, i32) {
    %c0_i32 = arith.constant 0 : i32
    %c0_i32_0 = arith.constant 0 : i32
    %c0_i32_1 = arith.constant 0 : i32
    return %arg0, %c0_i32, %c0_i32_0 : i32, i32, i32
  }
}

</mosaic_0001>

<bundles_post_ra>
// kernel: tpu_custom_call.1
= control target key start
LH: loop header
LB: loop body
LE: loop exit
PB: predicated region body
PF: predicated region fallthrough
CT: control target
= control target key end

     0   :  { %7 = vsyncpa [#allocation3], 0  ;;  %s2563_s0 = inlined_call_operand.hbm [shape: f32[2,4,256], index: 0, kind: input, shape index: {}]   ;;  %s2564_s1 = inlined_call_operand.hbm [shape: bf16[2,2,256,256], index: 1, kind: input, shape index: {}]   ;;  %s2565_s2 = inlined_call_operand.hbm [shape: f32[2,2,256], index: 2, kind: output, shape index: {}]  }
   0x1   :  { %8 = vsyncpa [#allocation6], 0 }
   0x2   :  { %9 = vsyncpa [#allocation4], 0  ;;  %s14_s11 = sshll.u32 %s2563_s0, 4  ;;  %s2152_s12 = smov [#allocation2]   ;;  %s15_s11 = int_to_ptr.hbm [resolvable:$true] %s14_s11 }
   0x3   :  { %s16_s13 = sshll.u32 %s2152_s12, 4  ;;  %s27_s16 = sshll.u32 %s2564_s1, 4  ;;  %s17_s13 = int_to_ptr.vmem [resolvable:$true] %s16_s13  ;;  %s28_s16 = int_to_ptr.hbm [resolvable:$true] %s27_s16 }
   0x4   :  { %s2153_s17 = smov 128   ;;  %s2154_s18 = smov 8  }
   0x5   :  { %22 = dma.hbm_to_vmem [thread:$0]  %s15_s11, 256, %s17_s13, [#allocation3], %s2153_s17, %s2153_s17, %s2154_s18  }
   0x6   :  { %s2155_s19 = smov [#allocation5]  }
   0x7   :  { %s29_s20 = sshll.u32 %s2155_s19, 4  ;;  %s30_s20 = int_to_ptr.vmem [resolvable:$true] %s29_s20 }
   0x8   :  { %35 = dma.hbm_to_vmem [thread:$0]  %s28_s16, 16384, %s30_s20, [#allocation6], %s2153_s17, %s2153_s17, %s2154_s18  }
   0x9   :  { %2146 = dma.done.wait [#allocation3], 256  }
   0xa   :  { %2147 = vsyncadd [#allocation3], 4294967040 }
   0xb   :  { %2148 = dma.done.wait [#allocation6], 16384  }
   0xc   :  { %2149 = vsyncadd [#allocation6], 4294950912  ;;  %v1475_v0 = vld [vmem:[#allocation5 + $0x170] sm:$0xf]  ;;  %v1978_v1 = vld [vmem:[#allocation5 + $0x174] sm:$0xf0] }
   0xd   :  { %v1539_v2 = vld [vmem:[#allocation5 + $0x1f0] sm:$0xf]  ;;  %v2180_v3 = vor.u32 %v1978_v1, %v1475_v0  ;;  %v1994_v4 = vld [vmem:[#allocation5 + $0x1f4] sm:$0xf0]  ;;  %v1977_v5 = vld [vmem:[#allocation5 + $0x174] sm:$0xf] }
   0xe   :  { %v1477_v6 = vld [vmem:[#allocation5 + $0x178] sm:$0xf0]  ;;  %v2182_v7 = vor.u32 %v1994_v4, %v1539_v2  ;;  %v1993_v9 = vld [vmem:[#allocation5 + $0x1f4] sm:$0xf]  ;;  %v1467_v11 = vld [vmem:[#allocation5 + $0x160] sm:$0xf] }
   0xf   :  { %2621 = vst [vmem:[#allocation11_spill] sm:$0xff] %v2180_v3  ;;  %v2184_v8 = vor.u32 %v1977_v5, %v1477_v6  ;;  %v1541_v10 = vld [vmem:[#allocation5 + $0x1f8] sm:$0xf0]  ;;  %401 = vmatpush.bf16.msra.mxu0 %v2180_v3  ;;  %v1976_v13 = vld [vmem:[#allocation5 + $0x164] sm:$0xf0]  ;;  %vm59_vm0 = vcmask 1043456  }
  0x10   :  { %2622 = vst [vmem:[#allocation12_spill] sm:$0xff] %v2182_v7  ;;  %v2187_v12 = vor.u32 %v1993_v9, %v1541_v10  ;;  %v1531_v14 = vld [vmem:[#allocation5 + $0x1e0] sm:$0xf]  ;;  %v1992_v15 = vld [vmem:[#allocation5 + $0x1e4] sm:$0xf0]  ;;  %414 = vmatpush.bf16.msra.mxu1 %v2182_v7  ;;  %v2191_v16 = vor.u32 %v1976_v13, %v1467_v11  ;;  %vm234_vm1 = vcmask 1041409  }
  0x11   :  { %2623 = vst [vmem:[#allocation13_spill] sm:$0xff] %v2184_v8  ;;  %427 = vmatpush.bf16.msra.mxu2 %v2184_v8  ;;  %v2193_v17 = vor.u32 %v1992_v15, %v1531_v14  ;;  %v1975_v18 = vld [vmem:[#allocation5 + $0x164] sm:$0xf]  ;;  %v1469_v19 = vld [vmem:[#allocation5 + $0x168] sm:$0xf0]  ;;  %vm1367_vm10 = vcmask 1040384  }
  0x12   :  { %2624 = vst [vmem:[#allocation14_spill] sm:$0xff] %v2187_v12  ;;  %v1991_v20 = vld [vmem:[#allocation5 + $0x1e4] sm:$0xf]  ;;  %440 = vmatpush.bf16.msra.mxu3 %v2187_v12  ;;  %v2196_v21 = vor.u32 %v1975_v18, %v1469_v19  ;;  %v1533_v22 = vld [vmem:[#allocation5 + $0x1e8] sm:$0xf0]  ;;  %s2156_s0 = smov [#allocation7]  }
  0x13   :  { %2625 = vst [vmem:[#allocation15_spill] sm:$0xff] %v2191_v16  ;;  %v1459_v23 = vld [vmem:[#allocation5 + $0x150] sm:$0xf]  ;;  %v1974_v24 = vld [vmem:[#allocation5 + $0x154] sm:$0xf0]  ;;  %v2198_v25 = vor.u32 %v1991_v20, %v1533_v22  ;;  %402 = vmatpush.bf16.msra.mxu0 %v2191_v16  ;;  %s1401_s1 = sshll.u32 %s2156_s0, 4  ;;  %s1402_s1 = int_to_ptr.vmem [resolvable:$true] %s1401_s1 }
  0x14   :  { %2626 = vst [vmem:[#allocation16_spill] sm:$0xff] %v2193_v17  ;;  %v1523_v26 = vld [vmem:[#allocation5 + $0x1d0] sm:$0xf]  ;;  %v1990_v27 = vld [vmem:[#allocation5 + $0x1d4] sm:$0xf0]  ;;  %v2201_v29 = vor.u32 %v1974_v24, %v1459_v23  ;;  %415 = vmatpush.bf16.msra.mxu1 %v2193_v17  ;;  %s1403_s23 = sshll.u32 %s2565_s2, 4  ;;  %s1404_s23 = int_to_ptr.hbm [resolvable:$true] %s1403_s23 }
  0x15   :  { %2627 = vst [vmem:[#allocation17_spill] sm:$0xff] %v2196_v21  ;;  %v1973_v28 = vld [vmem:[#allocation5 + $0x154] sm:$0xf]  ;;  %v1461_v30 = vld [vmem:[#allocation5 + $0x158] sm:$0xf0]  ;;  %428 = vmatpush.bf16.msra.mxu2 %v2196_v21  ;;  %v2205_v33 = vor.u32 %v1990_v27, %v1523_v26  ;;  %s2157_s2 = smov 64  }
  0x16   :  { %2628 = vst [vmem:[#allocation18_spill] sm:$0xff] %v2198_v25  ;;  %v1989_v31 = vld [vmem:[#allocation5 + $0x1d4] sm:$0xf]  ;;  %v1525_v32 = vld [vmem:[#allocation5 + $0x1d8] sm:$0xf0]  ;;  %v2207_v34 = vor.u32 %v1973_v28, %v1461_v30  ;;  %441 = vmatpush.bf16.msra.mxu3 %v2198_v25  ;;  %s2158_s24 = smov 4  }
  0x17   :  { %2629 = vst [vmem:[#allocation19_spill] sm:$0xff] %v2201_v29  ;;  %v1451_v35 = vld [vmem:[#allocation5 + $0x140] sm:$0xf]  ;;  %v1972_v36 = vld [vmem:[#allocation5 + $0x144] sm:$0xf0]  ;;  %v2210_v38 = vor.u32 %v1989_v31, %v1525_v32  ;;  %403 = vmatpush.bf16.msra.mxu0 %v2201_v29 }
  0x18   :  { %2630 = vst [vmem:[#allocation20_spill] sm:$0xff] %v2205_v33  ;;  %v1515_v37 = vld [vmem:[#allocation5 + $0x1c0] sm:$0xf]  ;;  %v1988_v39 = vld [vmem:[#allocation5 + $0x1c4] sm:$0xf0]  ;;  %v2213_v44 = vor.u32 %v1972_v36, %v1451_v35  ;;  %416 = vmatpush.bf16.msra.mxu1 %v2205_v33 }
  0x19   :  { %2631 = vst [vmem:[#allocation21_spill] sm:$0xff] %v2207_v34  ;;  %v1971_v40 = vld [vmem:[#allocation5 + $0x144] sm:$0xf]  ;;  %v1453_v41 = vld [vmem:[#allocation5 + $0x148] sm:$0xf0]  ;;  %429 = vmatpush.bf16.msra.mxu2 %v2207_v34  ;;  %v2217_v45 = vor.u32 %v1988_v39, %v1515_v37 }
  0x1a   :  { %2632 = vst [vmem:[#allocation22_spill] sm:$0xff] %v2210_v38  ;;  %v1987_v42 = vld [vmem:[#allocation5 + $0x1c4] sm:$0xf]  ;;  %v1517_v43 = vld [vmem:[#allocation5 + $0x1c8] sm:$0xf0]  ;;  %v2219_v46 = vor.u32 %v1971_v40, %v1453_v41  ;;  %442 = vmatpush.bf16.msra.mxu3 %v2210_v38 }
  0x1b   :  { %2633 = vst [vmem:[#allocation23_spill] sm:$0xff] %v2213_v44  ;;  %v1443_v47 = vld [vmem:[#allocation5 + $0x130] sm:$0xf]  ;;  %v1970_v48 = vld [vmem:[#allocation5 + $0x134] sm:$0xf0]  ;;  %v2222_v50 = vor.u32 %v1987_v42, %v1517_v43  ;;  %404 = vmatpush.bf16.msra.mxu0 %v2213_v44 }
  0x1c   :  { %2634 = vst [vmem:[#allocation24_spill] sm:$0xff] %v2217_v45  ;;  %v1507_v49 = vld [vmem:[#allocation5 + $0x1b0] sm:$0xf]  ;;  %v1986_v51 = vld [vmem:[#allocation5 + $0x1b4] sm:$0xf0]  ;;  %v2225_v56 = vor.u32 %v1970_v48, %v1443_v47  ;;  %417 = vmatpush.bf16.msra.mxu1 %v2217_v45 }
  0x1d   :  { %2635 = vst [vmem:[#allocation25_spill] sm:$0xff] %v2219_v46  ;;  %v1969_v52 = vld [vmem:[#allocation5 + $0x134] sm:$0xf]  ;;  %v1445_v53 = vld [vmem:[#allocation5 + $0x138] sm:$0xf0]  ;;  %430 = vmatpush.bf16.msra.mxu2 %v2219_v46  ;;  %v2229_v57 = vor.u32 %v1986_v51, %v1507_v49 }
  0x1e   :  { %2636 = vst [vmem:[#allocation26_spill] sm:$0xff] %v2222_v50  ;;  %v1985_v54 = vld [vmem:[#allocation5 + $0x1b4] sm:$0xf]  ;;  %v1509_v55 = vld [vmem:[#allocation5 + $0x1b8] sm:$0xf0]  ;;  %v2231_v58 = vor.u32 %v1969_v52, %v1445_v53  ;;  %443 = vmatpush.bf16.msra.mxu3 %v2222_v50 }
  0x1f   :  { %2637 = vst [vmem:[#allocation27_spill] sm:$0xff] %v2225_v56  ;;  %v1435_v59 = vld [vmem:[#allocation5 + $0x120] sm:$0xf]  ;;  %v1968_v60 = vld [vmem:[#allocation5 + $0x124] sm:$0xf0]  ;;  %v2234_v62 = vor.u32 %v1985_v54, %v1509_v55  ;;  %405 = vmatpush.bf16.msra.mxu0 %v2225_v56 }
  0x20   :  { %2638 = vst [vmem:[#allocation28_spill] sm:$0xff] %v2229_v57  ;;  %v1499_v61 = vld [vmem:[#allocation5 + $0x1a0] sm:$0xf]  ;;  %v1984_v63 = vld [vmem:[#allocation5 + $0x1a4] sm:$0xf0]  ;;  %v2237_v5 = vor.u32 %v1968_v60, %v1435_v59  ;;  %418 = vmatpush.bf16.msra.mxu1 %v2229_v57 }
  0x21   :  { %2639 = vst [vmem:[#allocation29_spill] sm:$0xff] %v2231_v58  ;;  %v1967_v0 = vld [vmem:[#allocation5 + $0x124] sm:$0xf]  ;;  %v1437_v1 = vld [vmem:[#allocation5 + $0x128] sm:$0xf0]  ;;  %431 = vmatpush.bf16.msra.mxu2 %v2231_v58  ;;  %v2241_v6 = vor.u32 %v1984_v63, %v1499_v61 }
  0x22   :  { %2640 = vst [vmem:[#allocation30_spill] sm:$0xff] %v2234_v62  ;;  %v1983_v2 = vld [vmem:[#allocation5 + $0x1a4] sm:$0xf]  ;;  %v1501_v4 = vld [vmem:[#allocation5 + $0x1a8] sm:$0xf0]  ;;  %v2243_v9 = vor.u32 %v1967_v0, %v1437_v1  ;;  %444 = vmatpush.bf16.msra.mxu3 %v2234_v62 }
  0x23   :  { %2641 = vst [vmem:[#allocation31_spill] sm:$0xff] %v2237_v5  ;;  %v1427_v10 = vld [vmem:[#allocation5 + $0x110] sm:$0xf]  ;;  %v1966_v11 = vld [vmem:[#allocation5 + $0x114] sm:$0xf0]  ;;  %v2246_v14 = vor.u32 %v1983_v2, %v1501_v4  ;;  %406 = vmatpush.bf16.msra.mxu0 %v2237_v5 }
  0x24   :  { %2642 = vst [vmem:[#allocation32_spill] sm:$0xff] %v2241_v6  ;;  %v1491_v13 = vld [vmem:[#allocation5 + $0x190] sm:$0xf]  ;;  %v1982_v15 = vld [vmem:[#allocation5 + $0x194] sm:$0xf0]  ;;  %v2249_v23 = vor.u32 %v1966_v11, %v1427_v10  ;;  %419 = vmatpush.bf16.msra.mxu1 %v2241_v6 }
  0x25   :  { %2643 = vst [vmem:[#allocation33_spill] sm:$0xff] %v2243_v9  ;;  %v1965_v18 = vld [vmem:[#allocation5 + $0x114] sm:$0xf]  ;;  %v1429_v19 = vld [vmem:[#allocation5 + $0x118] sm:$0xf0]  ;;  %432 = vmatpush.bf16.msra.mxu2 %v2243_v9  ;;  %v2253_v27 = vor.u32 %v1982_v15, %v1491_v13 }
  0x26   :  { %2644 = vst [vmem:[#allocation34_spill] sm:$0xff] %v2246_v14  ;;  %v1981_v20 = vld [vmem:[#allocation5 + $0x194] sm:$0xf]  ;;  %v1493_v22 = vld [vmem:[#allocation5 + $0x198] sm:$0xf0]  ;;  %v2255_v28 = vor.u32 %v1965_v18, %v1429_v19  ;;  %445 = vmatpush.bf16.msra.mxu3 %v2246_v14 }
  0x27   :  { %2645 = vst [vmem:[#allocation35_spill] sm:$0xff] %v2249_v23  ;;  %v1419_v24 = vld [vmem:[#allocation5 + $0x100] sm:$0xf]  ;;  %v1964_v26 = vld [vmem:[#allocation5 + $0x104] sm:$0xf0]  ;;  %v2258_v35 = vor.u32 %v1981_v20, %v1493_v22  ;;  %407 = vmatpush.bf16.msra.mxu0 %v2249_v23  ;;  %v44_v18 = vld [vmem:[#allocation2] sm:$0xff] }
  0x28   :  { %2646 = vst [vmem:[#allocation36_spill] sm:$0xff] %v2253_v27  ;;  %v1483_v30 = vld [vmem:[#allocation5 + $0x180] sm:$0xf]  ;;  %v1980_v31 = vld [vmem:[#allocation5 + $0x184] sm:$0xf0]  ;;  %v2261_v43 = vor.u32 %v1964_v26, %v1419_v24  ;;  %420 = vmatpush.bf16.msra.mxu1 %v2253_v27  ;;  %v2283_v19 = vld [vmem:[#allocation2 + $0x8] sm:$0xff] }
  0x29   :  { %2647 = vst [vmem:[#allocation37_spill] sm:$0xff] %v2255_v28  ;;  %v1963_v32 = vld [vmem:[#allocation5 + $0x104] sm:$0xf]  ;;  %v1421_v36 = vld [vmem:[#allocation5 + $0x108] sm:$0xf0]  ;;  %433 = vmatpush.bf16.msra.mxu2 %v2255_v28  ;;  %v2265_v51 = vor.u32 %v1980_v31, %v1483_v30 }
  0x2a   :  { %2648 = vst [vmem:[#allocation38_spill] sm:$0xff] %v2258_v35  ;;  %v1979_v37 = vld [vmem:[#allocation5 + $0x184] sm:$0xf]  ;;  %v1485_v39 = vld [vmem:[#allocation5 + $0x188] sm:$0xf0]  ;;  %v2267_v52 = vor.u32 %v1963_v32, %v1421_v36  ;;  %446 = vmatpush.bf16.msra.mxu3 %v2258_v35 }
  0x2b   :  { %v1603_v40 = vld [vmem:[#allocation5 + $0x70] sm:$0xf]  ;;  %v1946_v41 = vld [vmem:[#allocation5 + $0x74] sm:$0xf0]  ;;  %2649 = vst [vmem:[#allocation39_spill] sm:$0xff] %v2261_v43  ;;  %v2270_v55 = vor.u32 %v1979_v37, %v1485_v39  ;;  %408 = vmatpush.bf16.msra.mxu0 %v2261_v43 }
  0x2c   :  { %v1667_v42 = vld [vmem:[#allocation5 + $0xf0] sm:$0xf]  ;;  %v1962_v47 = vld [vmem:[#allocation5 + $0xf4] sm:$0xf0]  ;;  %v1945_v48 = vld [vmem:[#allocation5 + $0x74] sm:$0xf]  ;;  %v2272_v59 = vor.u32 %v1946_v41, %v1603_v40  ;;  %421 = vmatpush.bf16.msra.mxu1 %v2265_v51 }
  0x2d   :  { %v1605_v49 = vld [vmem:[#allocation5 + $0x78] sm:$0xf0]  ;;  %2650 = vst [vmem:[#allocation40_spill] sm:$0xff] %v2265_v51  ;;  %v1961_v53 = vld [vmem:[#allocation5 + $0xf4] sm:$0xf]  ;;  %v2274_v61 = vor.u32 %v1962_v47, %v1667_v42  ;;  %434 = vmatpush.bf16.msra.mxu2 %v2267_v52 }
  0x2e   :  { %2651 = vst [vmem:[#allocation41_spill] sm:$0xff] %v2267_v52  ;;  %v1669_v54 = vld [vmem:[#allocation5 + $0xf8] sm:$0xf0]  ;;  %v1595_v60 = vld [vmem:[#allocation5 + $0x60] sm:$0xf]  ;;  %v2276_v63 = vor.u32 %v1945_v48, %v1605_v49  ;;  %447 = vmatpush.bf16.msra.mxu3 %v2270_v55 }
  0x2f   :  { %2652 = vst [vmem:[#allocation42_spill] sm:$0xff] %v2270_v55  ;;  %v1944_v0 = vld [vmem:[#allocation5 + $0x64] sm:$0xf0]  ;;  %v1659_v1 = vld [vmem:[#allocation5 + $0xe0] sm:$0xf]  ;;  %v2279_v4 = vor.u32 %v1961_v53, %v1669_v54  ;;  %629 = vmatpush.bf16.msrb.mxu0 %v2272_v59 }
  0x30   :  { %v1960_v2 = vld [vmem:[#allocation5 + $0xe4] sm:$0xf0]  ;;  %v1943_v10 = vld [vmem:[#allocation5 + $0x64] sm:$0xf]  ;;  %v1597_v11 = vld [vmem:[#allocation5 + $0x68] sm:$0xf0]  ;;  %v2287_v20 = vor.u32 %v1944_v0, %v1595_v60  ;;  %642 = vmatpush.bf16.msrb.mxu1 %v2274_v61 }
  0x31   :  { %v1959_v13 = vld [vmem:[#allocation5 + $0xe4] sm:$0xf]  ;;  %v1661_v15 = vld [vmem:[#allocation5 + $0xe8] sm:$0xf0]  ;;  %v1587_v22 = vld [vmem:[#allocation5 + $0x50] sm:$0xf]  ;;  %655 = vmatpush.bf16.msrb.mxu2 %v2276_v63  ;;  %v2291_v26 = vor.u32 %v1960_v2, %v1659_v1  ;;  %v2293_v30 = vor.u32 %v1943_v10, %v1597_v11 }
  0x32   :  { %v1942_v24 = vld [vmem:[#allocation5 + $0x54] sm:$0xf0]  ;;  %48 = vst [vmem:[#allocation1] ss:$2 sm:$0xff] %v44_v18  ;;  %v1651_v31 = vld [vmem:[#allocation5 + $0xd0] sm:$0xf]  ;;  %668 = vmatpush.bf16.msrb.mxu3 %v2279_v4  ;;  %v2297_v36 = vor.u32 %v1959_v13, %v1661_v15 }
  0x33   :  { %v1958_v32 = vld [vmem:[#allocation5 + $0xd4] sm:$0xf0]  ;;  %52 = vst [vmem:[#allocation1 + $0x10] ss:$2 sm:$0xff] %v2283_v19  ;;  %v1941_v37 = vld [vmem:[#allocation5 + $0x54] sm:$0xf]  ;;  %630 = vmatpush.bf16.msrb.mxu0 %v2287_v20  ;;  %v2300_v48 = vor.u32 %v1942_v24, %v1587_v22 }
  0x34   :  { %v1589_v39 = vld [vmem:[#allocation5 + $0x58] sm:$0xf0]  ;;  %v1957_v40 = vld [vmem:[#allocation5 + $0xd4] sm:$0xf]  ;;  %v1579_v42 = vld [vmem:[#allocation5 + $0x40] sm:$0xf]  ;;  %643 = vmatpush.bf16.msrb.mxu1 %v2291_v26  ;;  %v2304_v60 = vor.u32 %v1958_v32, %v1651_v31 }
  0x35   :  { %v1653_v41 = vld [vmem:[#allocation5 + $0xd8] sm:$0xf0]  ;;  %v1940_v47 = vld [vmem:[#allocation5 + $0x44] sm:$0xf0]  ;;  %v1643_v49 = vld [vmem:[#allocation5 + $0xc0] sm:$0xf]  ;;  %656 = vmatpush.bf16.msrb.mxu2 %v2293_v30  ;;  %v2306_v0 = vor.u32 %v1941_v37, %v1589_v39 }
  0x36   :  { %v1956_v53 = vld [vmem:[#allocation5 + $0xc4] sm:$0xf0]  ;;  %v1939_v54 = vld [vmem:[#allocation5 + $0x44] sm:$0xf]  ;;  %v1581_v1 = vld [vmem:[#allocation5 + $0x48] sm:$0xf0]  ;;  %669 = vmatpush.bf16.msrb.mxu3 %v2297_v36  ;;  %v2309_v11 = vor.u32 %v1957_v40, %v1653_v41  ;;  %v2312_v55 = vor.u32 %v1940_v47, %v1579_v42 }
  0x37   :  { %v1955_v2 = vld [vmem:[#allocation5 + $0xc4] sm:$0xf]  ;;  %v1645_v10 = vld [vmem:[#allocation5 + $0xc8] sm:$0xf0]  ;;  %v1571_v13 = vld [vmem:[#allocation5 + $0x30] sm:$0xf]  ;;  %631 = vmatpush.bf16.msrb.mxu0 %v2300_v48  ;;  %v2314_v31 = vor.u32 %v1956_v53, %v1643_v49  ;;  %v2316_v32 = vor.u32 %v1939_v54, %v1581_v1 }
  0x38   :  { %v1938_v15 = vld [vmem:[#allocation5 + $0x34] sm:$0xf0]  ;;  %v2318_v37 = vor.u32 %v1955_v2, %v1645_v10  ;;  %v1635_v51 = vld [vmem:[#allocation5 + $0xb0] sm:$0xf]  ;;  %v1937_v41 = vld [vmem:[#allocation5 + $0x34] sm:$0xf]  ;;  %644 = vmatpush.bf16.msrb.mxu1 %v2304_v60 }
  0x39   :  { %v49_v22 = vld.sshfl [vmem:[#allocation1] sm:$0xff pattern:$0x75316420]  ;;  %v50_v24 = vld.sshfl [vmem:[#allocation1 + $0x8] sm:$0xff pattern:$0x75316420]  ;;  %657 = vmatpush.bf16.msrb.mxu2 %v2306_v0  ;;  %v2328_v9 = vor.u32 %v1938_v15, %v1571_v13 }
  0x3a   :  { %v53_v39 = vld.sshfl [vmem:[#allocation1 + $0x10] sm:$0xff pattern:$0x75316420]  ;;  %v54_v52 = vld.sshfl [vmem:[#allocation1 + $0x18] sm:$0xff pattern:$0x75316420]  ;;  %670 = vmatpush.bf16.msrb.mxu3 %v2309_v11 }
  0x3b   :  { %v1954_v40 = vld [vmem:[#allocation5 + $0xb4] sm:$0xf0]  ;;  %v1573_v43 = vld [vmem:[#allocation5 + $0x38] sm:$0xf0]  ;;  %v1953_v35 = vld [vmem:[#allocation5 + $0xb4] sm:$0xf]  ;;  %632 = vmatpush.bf16.msrb.mxu0 %v2312_v55 }
  0x3c   :  { %v1637_v28 = vld [vmem:[#allocation5 + $0xb8] sm:$0xf0]  ;;  %v60_v42 = vsel %vm59_vm0, %v49_v22, -inf  ;;  %v67_v47 = vsel %vm59_vm0, %v50_v24, -inf  ;;  %v74_v49 = vsel %vm59_vm0, %v53_v39, -inf  ;;  %v81_v53 = vsel %vm59_vm0, %v54_v52, -inf  ;;  %645 = vmatpush.bf16.msrb.mxu1 %v2314_v31 }
  0x3d   :  { %88 = vst [vmem:[#allocation1] ss:$2 sm:$0xff] %v44_v18  ;;  %v61_v54 = vrot.slane %v60_v42, 4  ;;  %v68_v1 = vrot.slane %v67_v47, 4  ;;  %v75_v2 = vrot.slane %v74_v49, 4  ;;  %v82_v10 = vrot.slane %v81_v53, 4  ;;  %658 = vmatpush.bf16.msrb.mxu2 %v2316_v32 }
  0x3e   :  { %92 = vst [vmem:[#allocation1 + $0x10] ss:$2 sm:$0xff] %v2283_v19  ;;  %v1563_v27 = vld [vmem:[#allocation5 + $0x20] sm:$0xf]  ;;  %v1936_v23 = vld [vmem:[#allocation5 + $0x24] sm:$0xf0]  ;;  %v2333_v19 = vor.u32 %v1954_v40, %v1635_v51  ;;  %v2335_v13 = vor.u32 %v1937_v41, %v1573_v43  ;;  %v2337_v15 = vor.u32 %v1953_v35, %v1637_v28  ;;  %671 = vmatpush.bf16.msrb.mxu3 %v2318_v37 }
  0x3f   :  { %v1627_v14 = vld [vmem:[#allocation5 + $0xa0] sm:$0xf]  ;;  %v1952_v22 = vld [vmem:[#allocation5 + $0xa4] sm:$0xf0]  ;;  %v1935_v24 = vld [vmem:[#allocation5 + $0x24] sm:$0xf]  ;;  %v62_v52 = vmax.f32 %v60_v42, %v61_v54  ;;  %v69_v18 = vmax.f32 %v67_v47, %v68_v1  ;;  %v76_v39 = vmax.f32 %v74_v49, %v75_v2  ;;  %v83_v5 = vmax.f32 %v81_v53, %v82_v10  ;;  %633 = vmatpush.bf16.msrb.mxu0 %v2328_v9 }
  0x40   :  { %v1565_v6 = vld [vmem:[#allocation5 + $0x28] sm:$0xf0]  ;;  %v1951_v62 = vld [vmem:[#allocation5 + $0xa4] sm:$0xf]  ;;  %v1555_v57 = vld [vmem:[#allocation5 + $0x10] sm:$0xf]  ;;  %v2340_v2 = vor.u32 %v1936_v23, %v1563_v27  ;;  %v2342_v10 = vor.u32 %v1952_v22, %v1627_v14  ;;  %646 = vmatpush.bf16.msrb.mxu1 %v2333_v19 }
  0x41   :  { %v1629_v58 = vld [vmem:[#allocation5 + $0xa8] sm:$0xf0]  ;;  %v1934_v56 = vld [vmem:[#allocation5 + $0x14] sm:$0xf0]  ;;  %v1619_v50 = vld [vmem:[#allocation5 + $0x90] sm:$0xf]  ;;  %v2344_v51 = vor.u32 %v1935_v24, %v1565_v6  ;;  %659 = vmatpush.bf16.msrb.mxu2 %v2335_v13 }
  0x42   :  { %v1950_v46 = vld [vmem:[#allocation5 + $0x94] sm:$0xf0]  ;;  %v63_v42 = vrot.slane %v62_v52, 2  ;;  %v70_v47 = vrot.slane %v69_v18, 2  ;;  %v77_v49 = vrot.slane %v76_v39, 2  ;;  %v84_v53 = vrot.slane %v83_v5, 2  ;;  %672 = vmatpush.bf16.msrb.mxu3 %v2337_v15 }
  0x43   :  { %v1933_v54 = vld [vmem:[#allocation5 + $0x14] sm:$0xf]  ;;  %v1557_v1 = vld [vmem:[#allocation5 + $0x18] sm:$0xf0]  ;;  %2653 = vst [vmem:[#allocation43_spill] sm:$0xff] %v2342_v10  ;;  %v2349_v14 = vor.u32 %v1951_v62, %v1629_v58  ;;  %v2351_v6 = vor.u32 %v1934_v56, %v1555_v57  ;;  %v2353_v23 = vor.u32 %v1950_v46, %v1619_v50  ;;  %634 = vmatpush.bf16.msrb.mxu0 %v2340_v2 }
  0x44   :  { %2654 = vst [vmem:[#allocation44_spill] sm:$0xff] %v2344_v51  ;;  %v1949_v43 = vld [vmem:[#allocation5 + $0x94] sm:$0xf]  ;;  %v1621_v28 = vld [vmem:[#allocation5 + $0x98] sm:$0xf0]  ;;  %v64_v40 = vmax.f32 %v62_v52, %v63_v42  ;;  %v71_v41 = vmax.f32 %v69_v18, %v70_v47  ;;  %v78_v45 = vmax.f32 %v76_v39, %v77_v49  ;;  %v85_v44 = vmax.f32 %v83_v5, %v84_v53 }
  0x45   :  { %v1547_v35 = vld [vmem:[#allocation5] sm:$0xf]  ;;  %v1932_v38 = vld [vmem:[#allocation5 + $0x4] sm:$0xf0]  ;;  %2655 = vst [vmem:[#allocation45_spill] sm:$0xff] %v2349_v14  ;;  %v2356_v47 = vor.u32 %v1933_v54, %v1557_v1  ;;  %v2358_v49 = vor.u32 %v1949_v43, %v1621_v28  ;;  %647 = vmatpush.bf16.msrb.mxu1 %v2342_v10  ;;  %660 = vmatpush.bf16.msrb.mxu2 %v2344_v51 }
  0x46   :  { %v1611_v34 = vld [vmem:[#allocation5 + $0x80] sm:$0xf]  ;;  %v1948_v33 = vld [vmem:[#allocation5 + $0x84] sm:$0xf0]  ;;  %2656 = vst [vmem:[#allocation46_spill] sm:$0xff] %v2351_v6  ;;  %v65_v27 = vrot.slane %v64_v40, 1  ;;  %v2360_v58 = vor.u32 %v1932_v38, %v1547_v35  ;;  %673 = vmatpush.bf16.msrb.mxu3 %v2349_v14 }
  0x47   :  { %2657 = vst [vmem:[#allocation47_spill] sm:$0xff] %v2353_v23  ;;  %v72_v22 = vrot.slane %v71_v41, 1  ;;  %v79_v24 = vrot.slane %v78_v45, 1  ;;  %v86_v5 = vrot.slane %v85_v44, 1  ;;  %v1931_v52 = vld [vmem:[#allocation5 + $0x4] sm:$0xf]  ;;  %v2362_v56 = vor.u32 %v1948_v33, %v1611_v34  ;;  %635 = vmatpush.bf16.msrb.mxu0 %v2351_v6 }
  0x48   :  { %v1549_v18 = vld [vmem:[#allocation5 + $0x8] sm:$0xf0]  ;;  %v1947_v39 = vld [vmem:[#allocation5 + $0x84] sm:$0xf]  ;;  %2658 = vst [vmem:[#allocation48_spill] sm:$0xff] %v2356_v47  ;;  %v2364_v57 = vmax.f32 %v64_v40, %v65_v27 }
  0x49   :  { %v1613_v42 = vld [vmem:[#allocation5 + $0x88] sm:$0xf0]  ;;  %2659 = vst [vmem:[#allocation49_spill] sm:$0xff] %v2358_v49  ;;  %v90_v50 = vld.sshfl [vmem:[#allocation1 + $0x8] sm:$0xff pattern:$0x75316420]  ;;  %v2366_v62 = vmax.f32 %v71_v41, %v72_v22  ;;  %v2368_v53 = vmax.f32 %v78_v45, %v79_v24  ;;  %v2370_v29 = vmax.f32 %v85_v44, %v86_v5  ;;  %v2388_v40 = vor.u32 %v1931_v52, %v1549_v18 }
  0x4a   :  { %2660 = vst [vmem:[#allocation50_spill] sm:$0xff] %v2360_v58  ;;  %v89_v46 = vld.sshfl [vmem:[#allocation1] sm:$0xff pattern:$0x75316420]  ;;  %v106_v34 = vsel %vm59_vm0, %v90_v50, 0.0  ;;  %v2390_v41 = vor.u32 %v1947_v39, %v1613_v42  ;;  %648 = vmatpush.bf16.msrb.mxu1 %v2353_v23  ;;  %661 = vmatpush.bf16.msrb.mxu2 %v2356_v47 }
  0x4b   :  { %2661 = vst [vmem:[#allocation51_spill] sm:$0xff] %v2362_v56  ;;  %v93_v54 = vld.sshfl [vmem:[#allocation1 + $0x10] sm:$0xff pattern:$0x75316420]  ;;  %v99_v33 = vsel %vm59_vm0, %v89_v46, 0.0  ;;  %v2381_v44 = vpack.c.bf16 %v2366_v62, %v2364_v57  ;;  %v2385_v45 = vpack.c.bf16 %v2370_v29, %v2368_v53  ;;  %v107_v35 = vrot.slane %v106_v34, 4  ;;  %674 = vmatpush.bf16.msrb.mxu3 %v2358_v49  ;;  %636 = vmatpush.bf16.msrb.mxu0 %v2360_v58 }
  0x4c   :  { %2662 = vst [vmem:[#allocation52_spill] sm:$0xff] %v2364_v57  ;;  %v94_v1 = vld.sshfl [vmem:[#allocation1 + $0x18] sm:$0xff pattern:$0x75316420]  ;;  %v113_v38 = vsel %vm59_vm0, %v93_v54, 0.0  ;;  %v100_v28 = vrot.slane %v99_v33, 4 }
  0x4d   :  { %2663 = vst [vmem:[#allocation53_spill] sm:$0xff] %v2366_v62  ;;  %v120_v43 = vsel %vm59_vm0, %v94_v1, 0.0  ;;  %v114_v27 = vrot.slane %v113_v38, 4  ;;  %v226_v24 = vperm.slane %v2381_v44, 0  ;;  %v228_v5 = vperm.slane %v2385_v45, 0 }
  0x4e   :  { %2664 = vst [vmem:[#allocation54_spill] sm:$0xff] %v2368_v53  ;;  %v121_v22 = vrot.slane %v120_v43, 4  ;;  %v227_v46 = vperm.slane %v2381_v44, 4  ;;  %v229_v50 = vperm.slane %v2385_v45, 4  ;;  %v1731_v54 = vld [vmem:[#allocation5 + $0x270] sm:$0xf]  ;;  %v101_v42 = vadd.f32 %v100_v28, %v99_v33  ;;  %649 = vmatpush.bf16.msrb.mxu1 %v2362_v56  ;;  %662 = vmatpush.bf16.msrb.mxu2 %v2388_v40 }
  0x4f   :  { %2665 = vst [vmem:[#allocation55_spill] sm:$0xff] %v2370_v29  ;;  %v2010_v52 = vld [vmem:[#allocation5 + $0x274] sm:$0xf0]  ;;  %v1795_v18 = vld [vmem:[#allocation5 + $0x2f0] sm:$0xf]  ;;  %v108_v1 = vadd.f32 %v107_v35, %v106_v34  ;;  %v115_v29 = vadd.f32 %v114_v27, %v113_v38  ;;  %v230_v62 = vunpack.c.l.b16 %v226_v24  ;;  %v232_v53 = vunpack.c.l.b16 %v228_v5  ;;  %675 = vmatpush.bf16.msrb.mxu3 %v2390_v41 }
  0x50   :  { %2666 = vst [vmem:[#allocation56_spill] sm:$0xff] %v2381_v44  ;;  %v2026_v39 = vld [vmem:[#allocation5 + $0x2f4] sm:$0xf0]  ;;  %v231_v57 = vunpack.c.l.b16 %v227_v46  ;;  %v233_v25 = vunpack.c.l.b16 %v229_v50  ;;  %v1733_v44 = vld [vmem:[#allocation5 + $0x278] sm:$0xf0]  ;;  %v102_v16 = vrot.slane %v101_v42, 2  ;;  %v122_v7 = vadd.f32 %v121_v22, %v120_v43 }
  0x51   :  { %2667 = vst [vmem:[#allocation57_spill] sm:$0xff] %v2385_v45  ;;  %v2009_v45 = vld [vmem:[#allocation5 + $0x274] sm:$0xf]  ;;  %v1797_v17 = vld [vmem:[#allocation5 + $0x2f8] sm:$0xf0]  ;;  %v109_v12 = vrot.slane %v108_v1, 2  ;;  %v235_v3 = vsel %vm234_vm1, %v232_v53, %v230_v62  ;;  %v1732_v34 = vor.u32 %v2010_v52, %v1731_v54  ;;  %v1796_v38 = vor.u32 %v2026_v39, %v1795_v18 }
  0x52   :  { %2668 = vst [vmem:[#allocation58_spill] sm:$0xff] %v2388_v40  ;;  %v2025_v21 = vld [vmem:[#allocation5 + $0x2f4] sm:$0xf]  ;;  %v116_v8 = vrot.slane %v115_v29, 2  ;;  %v236_v33 = vsel %vm234_vm1, %v233_v25, %v231_v57  ;;  %v1723_v28 = vld [vmem:[#allocation5 + $0x260] sm:$0xf]  ;;  %v2403_v35 = vpack.c.b16 %v235_v3, %v235_v3  ;;  %v103_v24 = vadd.f32 %v102_v16, %v101_v42 }
  0x53   :  { %2669 = vst [vmem:[#allocation59_spill] sm:$0xff] %v2390_v41  ;;  %v2405_v27 = vpack.c.b16 %v236_v33, %v236_v33  ;;  %v123_v5 = vrot.slane %v122_v7, 2  ;;  %v2008_v43 = vld [vmem:[#allocation5 + $0x264] sm:$0xf0]  ;;  %v1787_v22 = vld [vmem:[#allocation5 + $0x2e0] sm:$0xf]  ;;  %v1736_v25 = vor.u32 %v2009_v45, %v1733_v44  ;;  %v1800_v57 = vor.u32 %v2025_v21, %v1797_v17 }
  0x54   :  { %v110_v62 = vadd.f32 %v109_v12, %v108_v1  ;;  %v117_v53 = vadd.f32 %v116_v8, %v115_v29  ;;  %v2024_v46 = vld [vmem:[#allocation5 + $0x2e4] sm:$0xf0]  ;;  %v2007_v50 = vld [vmem:[#allocation5 + $0x264] sm:$0xf]  ;;  %v1725_v3 = vld [vmem:[#allocation5 + $0x268] sm:$0xf0]  ;;  %435 = vmatmul.bf16.vlgmr.msra.gmra.mxu2 %v2403_v35  ;;  %409 = vmatmul.bf16.vlgmr.msra.gmra.mxu0 %v2403_v35  ;;  %v1724_v17 = vor.u32 %v2008_v43, %v1723_v28 }
  0x55   :  { %448 = vmatmul.bf16.vlgmr.msra.gmra.mxu3 %v2405_v27  ;;  %v104_v54 = vrot.slane %v103_v24, 1  ;;  %v124_v52 = vadd.f32 %v123_v5, %v122_v7  ;;  %v2023_v18 = vld [vmem:[#allocation5 + $0x2e4] sm:$0xf]  ;;  %v1789_v16 = vld [vmem:[#allocation5 + $0x2e8] sm:$0xf0]  ;;  %422 = vmatmul.bf16.vlgmr.msra.gmra.mxu1 %v2405_v27  ;;  %v1788_v29 = vor.u32 %v2024_v46, %v1787_v22  ;;  %v1728_v45 = vor.u32 %v2007_v50, %v1725_v3 }
  0x56   :  { %v111_v39 = vrot.slane %v110_v62, 1  ;;  %v118_v44 = vrot.slane %v117_v53, 1  ;;  %v1715_v12 = vld [vmem:[#allocation5 + $0x250] sm:$0xf]  ;;  %874 = vmatpush.bf16.msra.mxu0 %v1732_v34  ;;  %887 = vmatpush.bf16.msra.mxu1 %v1796_v38  ;;  %v2006_v42 = vld [vmem:[#allocation5 + $0x254] sm:$0xf0]  ;;  %v1792_v5 = vor.u32 %v2023_v18, %v1789_v16 }
  0x57   :  { %v105_v8 = vadd.f32 %v104_v54, %v103_v24  ;;  %v125_v21 = vrot.slane %v124_v52, 1  ;;  %v1779_v1 = vld [vmem:[#allocation5 + $0x2d0] sm:$0xf]  ;;  %900 = vmatpush.bf16.msra.mxu2 %v1736_v25  ;;  %913 = vmatpush.bf16.msra.mxu3 %v1800_v57  ;;  %v2022_v41 = vld [vmem:[#allocation5 + $0x2d4] sm:$0xf0]  ;;  %v1716_v22 = vor.u32 %v2006_v42, %v1715_v12 }
  0x58   :  { %v112_v7 = vadd.f32 %v111_v39, %v110_v62  ;;  %v119_v33 = vadd.f32 %v118_v44, %v117_v53  ;;  %v2005_v40 = vld [vmem:[#allocation5 + $0x254] sm:$0xf]  ;;  %v1717_v56 = vld [vmem:[#allocation5 + $0x258] sm:$0xf0]  ;;  %v1780_v25 = vor.u32 %v2022_v41, %v1779_v1  ;;  %v1707_v57 = vld [vmem:[#allocation5 + $0x240] sm:$0xf] }
  0x59   :  { %v126_v58 = vadd.f32 %v125_v21, %v124_v52  ;;  %v2414_v49 = vmul.f32 0.25, %v105_v8  ;;  %v2021_v28 = vld [vmem:[#allocation5 + $0x2d4] sm:$0xf]  ;;  %v1781_v34 = vld [vmem:[#allocation5 + $0x2d8] sm:$0xf0]  ;;  %v1720_v46 = vor.u32 %v2005_v40, %v1717_v56 }
  0x5a   :  { %v2416_v38 = vmul.f32 0.25, %v112_v7  ;;  %v2418_v24 = vmul.f32 0.25, %v119_v33  ;;  %875 = vmatpush.bf16.msra.mxu0 %v1724_v17  ;;  %888 = vmatpush.bf16.msra.mxu1 %v1788_v29  ;;  %v2004_v62 = vld [vmem:[#allocation5 + $0x244] sm:$0xf0]  ;;  %v1784_v50 = vor.u32 %v2021_v28, %v1781_v34  ;;  %v1771_v3 = vld [vmem:[#allocation5 + $0x2c0] sm:$0xf] }
  0x5b   :  { %v2420_v43 = vmul.f32 0.25, %v126_v58  ;;  %901 = vmatpush.bf16.msra.mxu2 %v1728_v45  ;;  %914 = vmatpush.bf16.msra.mxu3 %v1792_v5  ;;  %v2020_v54 = vld [vmem:[#allocation5 + $0x2c4] sm:$0xf0]  ;;  %v2003_v52 = vld [vmem:[#allocation5 + $0x244] sm:$0xf]  ;;  %v1708_v56 = vor.u32 %v2004_v62, %v1707_v57 }
  0x5c   :  { %v2424_v53 = vpack.c.bf16 %v2416_v38, %v2414_v49  ;;  %v1709_v18 = vld [vmem:[#allocation5 + $0x248] sm:$0xf0]  ;;  %v2019_v16 = vld [vmem:[#allocation5 + $0x2c4] sm:$0xf]  ;;  %v1772_v40 = vor.u32 %v2020_v54, %v1771_v3  ;;  %v1699_v42 = vld [vmem:[#allocation5 + $0x230] sm:$0xf] }
  0x5d   :  { %v2428_v58 = vpack.c.bf16 %v2420_v43, %v2418_v24  ;;  %v1773_v41 = vld [vmem:[#allocation5 + $0x2c8] sm:$0xf0]  ;;  %v1712_v29 = vor.u32 %v2003_v52, %v1709_v18  ;;  %v2002_v1 = vld [vmem:[#allocation5 + $0x234] sm:$0xf0]  ;;  %v1763_v5 = vld [vmem:[#allocation5 + $0x2b0] sm:$0xf] }
  0x5e   :  { %v455_v39 = vperm.slane %v2424_v53, 0  ;;  %v456_v44 = vperm.slane %v2424_v53, 4  ;;  %876 = vmatpush.bf16.msra.mxu0 %v1716_v22  ;;  %889 = vmatpush.bf16.msra.mxu1 %v1780_v25  ;;  %v1776_v45 = vor.u32 %v2019_v16, %v1773_v41  ;;  %v2018_v28 = vld [vmem:[#allocation5 + $0x2b4] sm:$0xf0]  ;;  %v2001_v34 = vld [vmem:[#allocation5 + $0x234] sm:$0xf]  ;;  %v1700_v57 = vor.u32 %v2002_v1, %v1699_v42 }
  0x5f   :  { %v457_v17 = vperm.slane %v2428_v58, 0  ;;  %v458_v12 = vperm.slane %v2428_v58, 4  ;;  %902 = vmatpush.bf16.msra.mxu2 %v1720_v46  ;;  %915 = vmatpush.bf16.msra.mxu3 %v1784_v50  ;;  %v1701_v47 = vld [vmem:[#allocation5 + $0x238] sm:$0xf0]  ;;  %v2017_v23 = vld [vmem:[#allocation5 + $0x2b4] sm:$0xf]  ;;  %v1764_v50 = vor.u32 %v2018_v28, %v1763_v5 }
  0x60   :  { %v459_v8 = vunpack.c.l.b16 %v455_v39  ;;  %v460_v21 = vunpack.c.l.b16 %v456_v44  ;;  %v1765_v6 = vld [vmem:[#allocation5 + $0x2b8] sm:$0xf0]  ;;  %v1691_v3 = vld [vmem:[#allocation5 + $0x220] sm:$0xf]  ;;  %v2000_v54 = vld [vmem:[#allocation5 + $0x224] sm:$0xf0]  ;;  %v1704_v52 = vor.u32 %v2001_v34, %v1701_v47 }
  0x61   :  { %v461_v7 = vunpack.c.l.b16 %v457_v17  ;;  %v462_v33 = vunpack.c.l.b16 %v458_v12  ;;  %v1768_v18 = vor.u32 %v2017_v23, %v1765_v6  ;;  %v1755_v16 = vld [vmem:[#allocation5 + $0x2a0] sm:$0xf]  ;;  %v2016_v41 = vld [vmem:[#allocation5 + $0x2a4] sm:$0xf0]  ;;  %v1999_v39 = vld [vmem:[#allocation5 + $0x224] sm:$0xf] }
  0x62   :  { %877 = vmatpush.bf16.msra.mxu0 %v1708_v56  ;;  %890 = vmatpush.bf16.msra.mxu1 %v1772_v40  ;;  %v1693_v44 = vld [vmem:[#allocation5 + $0x228] sm:$0xf0]  ;;  %v2015_v17 = vld [vmem:[#allocation5 + $0x2a4] sm:$0xf]  ;;  %v1692_v56 = vor.u32 %v2000_v54, %v1691_v3  ;;  %v1756_v40 = vor.u32 %v2016_v41, %v1755_v16  ;;  %v1683_v47 = vld [vmem:[#allocation5 + $0x210] sm:$0xf] }
  0x63   :  { %v463_v22 = vsel %vm234_vm1, %v461_v7, %v459_v8  ;;  %v464_v25 = vsel %vm234_vm1, %v462_v33, %v460_v21  ;;  %903 = vmatpush.bf16.msra.mxu2 %v1712_v29  ;;  %916 = vmatpush.bf16.msra.mxu3 %v1776_v45  ;;  %v1757_v12 = vld [vmem:[#allocation5 + $0x2a8] sm:$0xf0]  ;;  %v1998_v6 = vld [vmem:[#allocation5 + $0x214] sm:$0xf0]  ;;  %v1696_v23 = vor.u32 %v1999_v39, %v1693_v44  ;;  %v1747_v21 = vld [vmem:[#allocation5 + $0x290] sm:$0xf] }
  0x64   :  { %v2436_v62 = vpack.c.b16 %v463_v22, %v463_v22  ;;  %v2438_v46 = vpack.c.b16 %v464_v25, %v464_v25  ;;  %v1760_v8 = vor.u32 %v2015_v17, %v1757_v12  ;;  %v2014_v29 = vld [vmem:[#allocation5 + $0x294] sm:$0xf0]  ;;  %v1997_v45 = vld [vmem:[#allocation5 + $0x214] sm:$0xf]  ;;  %v1685_v42 = vld [vmem:[#allocation5 + $0x218] sm:$0xf0]  ;;  %v1684_v5 = vor.u32 %v1998_v6, %v1683_v47 }
  0x65   :  { %v2013_v1 = vld [vmem:[#allocation5 + $0x294] sm:$0xf]  ;;  %v1749_v7 = vld [vmem:[#allocation5 + $0x298] sm:$0xf0]  ;;  %v1675_v33 = vld [vmem:[#allocation5 + $0x200] sm:$0xf]  ;;  %v1748_v28 = vor.u32 %v2014_v29, %v1747_v21 }
  0x66   :  { %663 = vmatmul.bf16.vlgmr.msrb.gmra.mxu2 %v2436_v62  ;;  %676 = vmatmul.bf16.vlgmr.msrb.gmra.mxu3 %v2438_v46  ;;  %v1996_v34 = vld [vmem:[#allocation5 + $0x204] sm:$0xf0]  ;;  %v1739_v22 = vld [vmem:[#allocation5 + $0x280] sm:$0xf]  ;;  %v1995_v3 = vld [vmem:[#allocation5 + $0x204] sm:$0xf] }
  0x67   :  { %637 = vmatmul.bf16.vlgmr.msrb.gmra.mxu0 %v2436_v62  ;;  %650 = vmatmul.bf16.vlgmr.msrb.gmra.mxu1 %v2438_v46  ;;  %v2012_v25 = vld [vmem:[#allocation5 + $0x284] sm:$0xf0]  ;;  %v1677_v54 = vld [vmem:[#allocation5 + $0x208] sm:$0xf0]  ;;  %v1859_v16 = vld [vmem:[#allocation5 + $0x370] sm:$0xf]  ;;  %v1676_v12 = vor.u32 %v1996_v34, %v1675_v33 }
  0x68   :  { %878 = vmatpush.bf16.msra.mxu0 %v1700_v57  ;;  %891 = vmatpush.bf16.msra.mxu1 %v1764_v50  ;;  %v1688_v57 = vor.u32 %v1997_v45, %v1685_v42  ;;  %v1752_v50 = vor.u32 %v2013_v1, %v1749_v7  ;;  %v2042_v41 = vld [vmem:[#allocation5 + $0x374] sm:$0xf0]  ;;  %v1923_v39 = vld [vmem:[#allocation5 + $0x3f0] sm:$0xf]  ;;  %v2041_v17 = vld [vmem:[#allocation5 + $0x374] sm:$0xf] }
  0x69   :  { %904 = vmatpush.bf16.msra.mxu2 %v1704_v52  ;;  %917 = vmatpush.bf16.msra.mxu3 %v1768_v18  ;;  %v2011_v52 = vld [vmem:[#allocation5 + $0x284] sm:$0xf]  ;;  %v1741_v18 = vld [vmem:[#allocation5 + $0x288] sm:$0xf0]  ;;  %v2058_v44 = vld [vmem:[#allocation5 + $0x3f4] sm:$0xf0]  ;;  %v1860_v21 = vor.u32 %v2042_v41, %v1859_v16 }
  0x6a   :  { %v2057_v47 = vld [vmem:[#allocation5 + $0x3f4] sm:$0xf]  ;;  %v1925_v6 = vld [vmem:[#allocation5 + $0x3f8] sm:$0xf0]  ;;  %v1924_v29 = vor.u32 %v2058_v44, %v1923_v39  ;;  %v1851_v45 = vld [vmem:[#allocation5 + $0x360] sm:$0xf] }
  0x6b   :  { %v2040_v42 = vld [vmem:[#allocation5 + $0x364] sm:$0xf0]  ;;  %v1928_v7 = vor.u32 %v2057_v47, %v1925_v6  ;;  %v1915_v14 = vld [vmem:[#allocation5 + $0x3e0] sm:$0xf]  ;;  %v2039_v10 = vld [vmem:[#allocation5 + $0x364] sm:$0xf] }
  0x6c   :  { %879 = vmatpush.bf16.msra.mxu0 %v1692_v56  ;;  %892 = vmatpush.bf16.msra.mxu1 %v1756_v40  ;;  %v1740_v56 = vor.u32 %v2012_v25, %v1739_v22  ;;  %v1861_v40 = vld [vmem:[#allocation5 + $0x378] sm:$0xf0]  ;;  %v2056_v51 = vld [vmem:[#allocation5 + $0x3e4] sm:$0xf0]  ;;  %v1853_v33 = vld [vmem:[#allocation5 + $0x368] sm:$0xf0]  ;;  %v1852_v34 = vor.u32 %v2040_v42, %v1851_v45 }
  0x6d   :  { %905 = vmatpush.bf16.msra.mxu2 %v1696_v23  ;;  %918 = vmatpush.bf16.msra.mxu3 %v1760_v8  ;;  %v1680_v23 = vor.u32 %v1995_v3, %v1677_v54  ;;  %v1744_v8 = vor.u32 %v2011_v52, %v1741_v18  ;;  %v1864_v1 = vor.u32 %v2041_v17, %v1861_v40  ;;  %v1843_v25 = vld [vmem:[#allocation5 + $0x350] sm:$0xf]  ;;  %v2054_v52 = vld [vmem:[#allocation5 + $0x3d4] sm:$0xf0]  ;;  %v2037_v18 = vld [vmem:[#allocation5 + $0x354] sm:$0xf] }
  0x6e   :  { %v1916_v22 = vor.u32 %v2056_v51, %v1915_v14  ;;  %v1907_v54 = vld [vmem:[#allocation5 + $0x3d0] sm:$0xf]  ;;  %v1845_v16 = vld [vmem:[#allocation5 + $0x358] sm:$0xf0]  ;;  %v2053_v41 = vld [vmem:[#allocation5 + $0x3d4] sm:$0xf] }
  0x6f   :  { %v1909_v39 = vld [vmem:[#allocation5 + $0x3d8] sm:$0xf0]  ;;  %v1908_v14 = vor.u32 %v2054_v52, %v1907_v54  ;;  %v2036_v44 = vld [vmem:[#allocation5 + $0x344] sm:$0xf0]  ;;  %v1848_v17 = vor.u32 %v2037_v18, %v1845_v16  ;;  %v2035_v47 = vld [vmem:[#allocation5 + $0x344] sm:$0xf] }
  0x70   :  { %880 = vmatpush.bf16.msra.mxu0 %v1684_v5  ;;  %893 = vmatpush.bf16.msra.mxu1 %v1748_v28  ;;  %v2055_v5 = vld [vmem:[#allocation5 + $0x3e4] sm:$0xf]  ;;  %v1917_v28 = vld [vmem:[#allocation5 + $0x3e8] sm:$0xf0]  ;;  %v2052_v40 = vld [vmem:[#allocation5 + $0x3c4] sm:$0xf0] }
  0x71   :  { %906 = vmatpush.bf16.msra.mxu2 %v1688_v57  ;;  %919 = vmatpush.bf16.msra.mxu3 %v1752_v50  ;;  %v2038_v57 = vld [vmem:[#allocation5 + $0x354] sm:$0xf0]  ;;  %v1856_v50 = vor.u32 %v2039_v10, %v1853_v33  ;;  %v1920_v3 = vor.u32 %v2055_v5, %v1917_v28  ;;  %v1835_v10 = vld [vmem:[#allocation5 + $0x340] sm:$0xf]  ;;  %v1837_v6 = vld [vmem:[#allocation5 + $0x348] sm:$0xf0] }
  0x72   :  { %v1844_v51 = vor.u32 %v2038_v57, %v1843_v25  ;;  %v1840_v45 = vor.u32 %v2035_v47, %v1837_v6  ;;  %v2033_v33 = vld [vmem:[#allocation5 + $0x334] sm:$0xf]  ;;  %v1829_v5 = vld [vmem:[#allocation5 + $0x338] sm:$0xf0]  ;;  %v1819_v57 = vld [vmem:[#allocation5 + $0x320] sm:$0xf] }
  0x73   :  { %v2049_v28 = vld [vmem:[#allocation5 + $0x3b4] sm:$0xf]  ;;  %v1883_v52 = vld [vmem:[#allocation5 + $0x3a0] sm:$0xf]  ;;  %v2048_v18 = vld [vmem:[#allocation5 + $0x3a4] sm:$0xf0] }
  0x74   :  { %881 = vmatpush.bf16.msra.mxu0 %v1676_v12  ;;  %894 = vmatpush.bf16.msra.mxu1 %v1740_v56  ;;  %v1912_v12 = vor.u32 %v2053_v41, %v1909_v39  ;;  %v1899_v56 = vld [vmem:[#allocation5 + $0x3c0] sm:$0xf]  ;;  %v2031_v16 = vld [vmem:[#allocation5 + $0x324] sm:$0xf]  ;;  %v1821_v41 = vld [vmem:[#allocation5 + $0x328] sm:$0xf0] }
  0x75   :  { %907 = vmatpush.bf16.msra.mxu2 %v1680_v23  ;;  %920 = vmatpush.bf16.msra.mxu3 %v1744_v8  ;;  %v2051_v23 = vld [vmem:[#allocation5 + $0x3c4] sm:$0xf]  ;;  %v1901_v8 = vld [vmem:[#allocation5 + $0x3c8] sm:$0xf0]  ;;  %v2046_v47 = vld [vmem:[#allocation5 + $0x394] sm:$0xf0] }
  0x76   :  { %v1904_v42 = vor.u32 %v2051_v23, %v1901_v8  ;;  %v2047_v39 = vld [vmem:[#allocation5 + $0x3a4] sm:$0xf]  ;;  %v2029_v6 = vld [vmem:[#allocation5 + $0x314] sm:$0xf]  ;;  %v1813_v23 = vld [vmem:[#allocation5 + $0x318] sm:$0xf0] }
  0x77   :  { %882 = vmatmul.bf16.vlgmr.msra.gmra.mxu0 %v2436_v62  ;;  %895 = vmatmul.bf16.vlgmr.msra.gmra.mxu1 %v2438_v46  ;;  %v2045_v8 = vld [vmem:[#allocation5 + $0x394] sm:$0xf] }
  0x78   :  { %1121 = vmatpush.bf16.msrb.mxu0 %v1860_v21  ;;  %1134 = vmatpush.bf16.msrb.mxu1 %v1924_v29  ;;  %v1827_v21 = vld [vmem:[#allocation5 + $0x330] sm:$0xf]  ;;  %v2034_v29 = vld [vmem:[#allocation5 + $0x334] sm:$0xf0] }
  0x79   :  { %1147 = vmatpush.bf16.msrb.mxu2 %v1864_v1  ;;  %1160 = vmatpush.bf16.msrb.mxu3 %v1928_v7  ;;  %v1891_v1 = vld [vmem:[#allocation5 + $0x3b0] sm:$0xf]  ;;  %v2050_v7 = vld [vmem:[#allocation5 + $0x3b4] sm:$0xf0] }
  0x7a   :  { %908 = vmatmul.bf16.vlgmr.msra.gmra.mxu2 %v2436_v62  ;;  %921 = vmatmul.bf16.vlgmr.msra.gmra.mxu3 %v2438_v46  ;;  %v1836_v62 = vor.u32 %v2036_v44, %v1835_v10  ;;  %v1900_v46 = vor.u32 %v2052_v40, %v1899_v56  ;;  %v1892_v25 = vor.u32 %v2050_v7, %v1891_v1  ;;  %v1811_v44 = vld [vmem:[#allocation5 + $0x310] sm:$0xf]  ;;  %v1867_v7 = vld [vmem:[#allocation5 + $0x380] sm:$0xf] }
  0x7b   :  { %v1884_v10 = vor.u32 %v2048_v18, %v1883_v52  ;;  %v1875_v40 = vld [vmem:[#allocation5 + $0x390] sm:$0xf]  ;;  %v135_v52 = vunpack.c.l.bf16 %v2428_v58  ;;  %v134_v18 = vunpack.c.h.bf16 %v2424_v53 }
  0x7c   :  { %1122 = vmatpush.bf16.msrb.mxu0 %v1852_v34  ;;  %1135 = vmatpush.bf16.msrb.mxu1 %v1916_v22  ;;  %v1893_v34 = vld [vmem:[#allocation5 + $0x3b8] sm:$0xf0]  ;;  %v1828_v22 = vor.u32 %v2034_v29, %v1827_v21  ;;  %v1876_v21 = vor.u32 %v2046_v47, %v1875_v40  ;;  %v1803_v29 = vld [vmem:[#allocation5 + $0x300] sm:$0xf]  ;;  %v2689_v47 = vld [vmem:[#allocation56_spill] sm:$0xff] }
  0x7d   :  { %1148 = vmatpush.bf16.msrb.mxu2 %v1856_v50  ;;  %1161 = vmatpush.bf16.msrb.mxu3 %v1920_v3  ;;  %v2032_v50 = vld [vmem:[#allocation5 + $0x324] sm:$0xf0]  ;;  %v1832_v3 = vor.u32 %v2033_v33, %v1829_v5  ;;  %v1896_v54 = vor.u32 %v2049_v28, %v1893_v34  ;;  %v2027_v5 = vld [vmem:[#allocation5 + $0x304] sm:$0xf]  ;;  %v1805_v28 = vld [vmem:[#allocation5 + $0x308] sm:$0xf0] }
  0x7e   :  { %v2044_v33 = vld [vmem:[#allocation5 + $0x384] sm:$0xf0]  ;;  %v2043_v34 = vld [vmem:[#allocation5 + $0x384] sm:$0xf] }
  0x7f   :  { %v2688_v40 = vld [vmem:[#allocation18_spill] sm:$0xff] }
  0x80   :  { %1123 = vmatpush.bf16.msrb.mxu0 %v1844_v51  ;;  %1136 = vmatpush.bf16.msrb.mxu1 %v1908_v14  ;;  %v1885_v51 = vld [vmem:[#allocation5 + $0x3a8] sm:$0xf0]  ;;  %v1820_v14 = vor.u32 %v2032_v50, %v1819_v57  ;;  %v1868_v57 = vor.u32 %v2044_v33, %v1867_v7  ;;  %v1808_v50 = vor.u32 %v2027_v5, %v1805_v28  ;;  %v2697_v5 = vld [vmem:[#allocation24_spill] sm:$0xff]  ;;  %v2698_v28 = vld [vmem:[#allocation54_spill] sm:$0xff] }
  0x81   :  { %1149 = vmatpush.bf16.msrb.mxu2 %v1848_v17  ;;  %1162 = vmatpush.bf16.msrb.mxu3 %v1912_v12  ;;  %v2030_v17 = vld [vmem:[#allocation5 + $0x314] sm:$0xf0]  ;;  %v1824_v12 = vor.u32 %v2031_v16, %v1821_v41  ;;  %v1888_v56 = vor.u32 %v2047_v39, %v1885_v51  ;;  %v136_v16 = vunpack.c.h.bf16 %v2428_v58  ;;  %v139_v39 = vsub.f32 %v2418_v24, %v135_v52  ;;  %v2696_v33 = vld [vmem:[#allocation23_spill] sm:$0xff] }
  0x82   :  { %v138_v51 = vsub.f32 %v2416_v38, %v134_v18  ;;  %v2703_v18 = vld [vmem:[#allocation27_spill] sm:$0xff] }
  0x84   :  { %1124 = vmatpush.bf16.msrb.mxu0 %v1836_v62  ;;  %1137 = vmatpush.bf16.msrb.mxu1 %v1900_v46  ;;  %v1877_v62 = vld [vmem:[#allocation5 + $0x398] sm:$0xf0]  ;;  %v1812_v46 = vor.u32 %v2030_v17, %v1811_v44 }
  0x85   :  { %1150 = vmatpush.bf16.msrb.mxu2 %v1840_v45  ;;  %1163 = vmatpush.bf16.msrb.mxu3 %v1904_v42  ;;  %v2028_v45 = vld [vmem:[#allocation5 + $0x304] sm:$0xf0]  ;;  %v1816_v42 = vor.u32 %v2029_v6, %v1813_v23  ;;  %v1880_v1 = vor.u32 %v2045_v8, %v1877_v62  ;;  %v147_v6 = vunpack.c.l.bf16 %v2689_v47  ;;  %v2691_v8 = vld [vmem:[#allocation20_spill] sm:$0xff]  ;;  %v2692_v62 = vld [vmem:[#allocation57_spill] sm:$0xff] }
  0x86   :  { %v2690_v23 = vld [vmem:[#allocation19_spill] sm:$0xff] }
  0x88   :  { %1125 = vmatpush.bf16.msrb.mxu0 %v1828_v22  ;;  %1138 = vmatpush.bf16.msrb.mxu1 %v1892_v25  ;;  %v1869_v22 = vld [vmem:[#allocation5 + $0x388] sm:$0xf0]  ;;  %v1804_v25 = vor.u32 %v2028_v45, %v1803_v29  ;;  %v150_v29 = vunpack.c.h.bf16 %v2692_v62  ;;  %v2693_v45 = vld [vmem:[#allocation21_spill] sm:$0xff] }
  0x89   :  { %1151 = vmatpush.bf16.msrb.mxu2 %v1832_v3  ;;  %1164 = vmatpush.bf16.msrb.mxu3 %v1896_v54  ;;  %v1872_v3 = vor.u32 %v2043_v34, %v1869_v22  ;;  %v133_v54 = vunpack.c.l.bf16 %v2424_v53  ;;  %v140_v53 = vsub.f32 %v2420_v43, %v136_v16  ;;  %v2699_v22 = vld [vmem:[#allocation53_spill] sm:$0xff]  ;;  %v2704_v16 = vld [vmem:[#allocation28_spill] sm:$0xff] }
  0x8b   :  { %v137_v41 = vsub.f32 %v2414_v49, %v133_v54  ;;  %v2702_v54 = vld [vmem:[#allocation26_spill] sm:$0xff] }
  0x8c   :  { %1126 = vmatpush.bf16.msrb.mxu0 %v1820_v14  ;;  %1139 = vmatpush.bf16.msrb.mxu1 %v1884_v10  ;;  %v142_v14 = vpack.c.bf16 %v138_v51, %v138_v51 }
  0x8d   :  { %1152 = vmatpush.bf16.msrb.mxu2 %v1824_v12  ;;  %1165 = vmatpush.bf16.msrb.mxu3 %v1888_v56  ;;  %v141_v58 = vpack.c.bf16 %v137_v41, %v137_v41  ;;  %v2687_v56 = vld [vmem:[#allocation17_spill] sm:$0xff] }
  0x8e   :  { %v1180_v10 = vunpack.c.l.b16 %v142_v14  ;;  %v2708_v14 = vld [vmem:[#allocation32_spill] sm:$0xff] }
  0x90   :  { %1127 = vmatpush.bf16.msrb.mxu0 %v1812_v46  ;;  %1140 = vmatpush.bf16.msrb.mxu1 %v1876_v21  ;;  %v149_v46 = vunpack.c.l.bf16 %v2692_v62  ;;  %v148_v21 = vunpack.c.h.bf16 %v2689_v47 }
  0x91   :  { %1153 = vmatpush.bf16.msrb.mxu2 %v1816_v42  ;;  %1166 = vmatpush.bf16.msrb.mxu3 %v1880_v1  ;;  %v2694_v42 = vld [vmem:[#allocation22_spill] sm:$0xff]  ;;  %v2695_v1 = vld [vmem:[#allocation52_spill] sm:$0xff] }
  0x92   :  { %v151_v7 = vsub.f32 %v2695_v1, %v147_v6  ;;  %v153_v34 = vsub.f32 %v2698_v28, %v149_v46 }
  0x94   :  { %1128 = vmatpush.bf16.msrb.mxu0 %v1804_v25  ;;  %1141 = vmatpush.bf16.msrb.mxu1 %v1868_v57  ;;  %v152_v25 = vsub.f32 %v2699_v22, %v148_v21  ;;  %v2700_v57 = vld [vmem:[#allocation55_spill] sm:$0xff]  ;;  %v155_v52 = vpack.c.bf16 %v151_v7, %v151_v7  ;;  %v157_v41 = vpack.c.bf16 %v153_v34, %v153_v34 }
  0x95   :  { %1154 = vmatpush.bf16.msrb.mxu2 %v1808_v50  ;;  %1167 = vmatpush.bf16.msrb.mxu3 %v1872_v3  ;;  %v154_v50 = vsub.f32 %v2700_v57, %v150_v29  ;;  %v2701_v3 = vld [vmem:[#allocation25_spill] sm:$0xff] }
  0x97   :  { %1129 = vmatmul.bf16.vlgmr.msrb.gmra.mxu0 %v2403_v35  ;;  %1142 = vmatmul.bf16.vlgmr.msrb.gmra.mxu1 %v2405_v27  ;;  %v158_v51 = vpack.c.bf16 %v154_v50, %v154_v50 }
  0x98   :  { %1189 = vmatpush.bf16.msra.mxu0 %v2272_v59  ;;  %1202 = vmatpush.bf16.msra.mxu1 %v2274_v61  ;;  %v143_v59 = vpack.c.bf16 %v139_v39, %v139_v39  ;;  %v144_v61 = vpack.c.bf16 %v140_v53, %v140_v53  ;;  %v156_v39 = vpack.c.bf16 %v152_v25, %v152_v25  ;;  %v2705_v53 = vld [vmem:[#allocation29_spill] sm:$0xff] }
  0x99   :  { %1215 = vmatpush.bf16.msra.mxu2 %v2276_v63  ;;  %1228 = vmatpush.bf16.msra.mxu3 %v2279_v4  ;;  %v1179_v63 = vunpack.c.l.b16 %v141_v58  ;;  %v2706_v58 = vld [vmem:[#allocation30_spill] sm:$0xff] }
  0x9a   :  { %1155 = vmatmul.bf16.vlgmr.msrb.gmra.mxu2 %v2403_v35  ;;  %1168 = vmatmul.bf16.vlgmr.msrb.gmra.mxu3 %v2405_v27  ;;  %v1181_v4 = vunpack.c.l.b16 %v143_v59  ;;  %v1182_v44 = vunpack.c.l.b16 %v144_v61  ;;  %v2685_v35 = vld [vmem:[#allocation15_spill] sm:$0xff]  ;;  %v2686_v27 = vld [vmem:[#allocation16_spill] sm:$0xff]  ;;  %v1247_v61 = vunpack.c.l.b16 %v155_v52 }
  0x9b   :  { %v2707_v59 = vld [vmem:[#allocation31_spill] sm:$0xff] }
  0x9c   :  { %1190 = vmatpush.bf16.msra.mxu0 %v2287_v20  ;;  %1203 = vmatpush.bf16.msra.mxu1 %v2291_v26  ;;  %v1183_v17 = vsel %vm234_vm1, %v1181_v4, %v1179_v63  ;;  %v1184_v12 = vsel %vm234_vm1, %v1182_v44, %v1180_v10  ;;  %v2670_v20 = vld [vmem:[#allocation43_spill] sm:$0xff]  ;;  %v2671_v26 = vld [vmem:[#allocation44_spill] sm:$0xff]  ;;  %v1249_v63 = vunpack.c.l.b16 %v157_v41  ;;  %v1248_v4 = vunpack.c.l.b16 %v156_v39  ;;  %v2709_v44 = vld [vmem:[#allocation33_spill] sm:$0xff] }
  0x9d   :  { %1216 = vmatpush.bf16.msra.mxu2 %v2293_v30  ;;  %1229 = vmatpush.bf16.msra.mxu3 %v2297_v36  ;;  %v2673_v30 = vld [vmem:[#allocation46_spill] sm:$0xff]  ;;  %v2674_v36 = vld [vmem:[#allocation47_spill] sm:$0xff]  ;;  %v1250_v10 = vunpack.c.l.b16 %v158_v51 }
  0xa0   :  { %1191 = vmatpush.bf16.msra.mxu0 %v2300_v48  ;;  %1204 = vmatpush.bf16.msra.mxu1 %v2304_v60  ;;  %v2675_v48 = vld [vmem:[#allocation48_spill] sm:$0xff]  ;;  %v2677_v60 = vld [vmem:[#allocation50_spill] sm:$0xff] }
  0xa1   :  { %1217 = vmatpush.bf16.msra.mxu2 %v2306_v0  ;;  %1230 = vmatpush.bf16.msra.mxu3 %v2309_v11  ;;  %v2678_v0 = vld [vmem:[#allocation51_spill] sm:$0xff]  ;;  %v1185_v11 = vpack.c.b16 %v1183_v17, %v1183_v17  ;;  %v2710_v17 = vld [vmem:[#allocation34_spill] sm:$0xff] }
  0xa4   :  { %1192 = vmatpush.bf16.msra.mxu0 %v2312_v55  ;;  %1205 = vmatpush.bf16.msra.mxu1 %v2314_v31  ;;  %v2672_v55 = vld [vmem:[#allocation45_spill] sm:$0xff]  ;;  %v1186_v31 = vpack.c.b16 %v1184_v12, %v1184_v12  ;;  %v2711_v12 = vld [vmem:[#allocation35_spill] sm:$0xff] }
  0xa5   :  { %1218 = vmatpush.bf16.msra.mxu2 %v2316_v32  ;;  %1231 = vmatpush.bf16.msra.mxu3 %v2318_v37  ;;  %v2679_v32 = vld [vmem:[#allocation58_spill] sm:$0xff]  ;;  %v2680_v37 = vld [vmem:[#allocation59_spill] sm:$0xff] }
  0xa8   :  { %1193 = vmatpush.bf16.msra.mxu0 %v2328_v9  ;;  %1206 = vmatpush.bf16.msra.mxu1 %v2333_v19  ;;  %v2676_v9 = vld [vmem:[#allocation49_spill] sm:$0xff]  ;;  %v2681_v19 = vld [vmem:[#allocation11_spill] sm:$0xff] }
  0xa9   :  { %1219 = vmatpush.bf16.msra.mxu2 %v2335_v13  ;;  %1232 = vmatpush.bf16.msra.mxu3 %v2337_v15  ;;  %v2682_v13 = vld [vmem:[#allocation12_spill] sm:$0xff]  ;;  %v2683_v15 = vld [vmem:[#allocation13_spill] sm:$0xff] }
  0xac   :  { %1194 = vmatpush.bf16.msra.mxu0 %v2340_v2  ;;  %1207 = vmatpush.bf16.msra.mxu1 %v2670_v20  ;;  %v2684_v2 = vld [vmem:[#allocation14_spill] sm:$0xff]  ;;  %v2712_v20 = vld [vmem:[#allocation36_spill] sm:$0xff] }
  0xad   :  { %1220 = vmatpush.bf16.msra.mxu2 %v2671_v26  ;;  %1233 = vmatpush.bf16.msra.mxu3 %v2672_v55  ;;  %v1251_v26 = vsel %vm234_vm1, %v1249_v63, %v1247_v61  ;;  %v1252_v55 = vsel %vm234_vm1, %v1250_v10, %v1248_v4 }
  0xb0   :  { %1195 = vmatpush.bf16.msra.mxu0 %v2673_v30  ;;  %1208 = vmatpush.bf16.msra.mxu1 %v2674_v36  ;;  %v2713_v30 = vld [vmem:[#allocation37_spill] sm:$0xff]  ;;  %v2714_v36 = vld [vmem:[#allocation38_spill] sm:$0xff] }
  0xb1   :  { %1221 = vmatpush.bf16.msra.mxu2 %v2675_v48  ;;  %1234 = vmatpush.bf16.msra.mxu3 %v2676_v9  ;;  %v1253_v48 = vpack.c.b16 %v1251_v26, %v1251_v26  ;;  %v1254_v9 = vpack.c.b16 %v1252_v55, %v1252_v55 }
  0xb4   :  { %1196 = vmatpush.bf16.msra.mxu0 %v2677_v60  ;;  %1209 = vmatpush.bf16.msra.mxu1 %v2678_v0  ;;  %v2715_v60 = vld [vmem:[#allocation39_spill] sm:$0xff]  ;;  %v2716_v0 = vld [vmem:[#allocation40_spill] sm:$0xff] }
  0xb5   :  { %1222 = vmatpush.bf16.msra.mxu2 %v2679_v32  ;;  %1235 = vmatpush.bf16.msra.mxu3 %v2680_v37 }
  0xb7   :  { %1197 = vmatmul.bf16.vlgmr.msra.gmra.mxu0 %v1185_v11  ;;  %1210 = vmatmul.bf16.vlgmr.msra.gmra.mxu1 %v1186_v31 }
  0xb8   :  { %1257 = vmatpush.bf16.msrb.mxu0 %v2681_v19  ;;  %1270 = vmatpush.bf16.msrb.mxu1 %v2682_v13 }
  0xb9   :  { %1283 = vmatpush.bf16.msrb.mxu2 %v2683_v15  ;;  %1296 = vmatpush.bf16.msrb.mxu3 %v2684_v2 }
  0xba   :  { %1223 = vmatmul.bf16.vlgmr.msra.gmra.mxu2 %v1185_v11  ;;  %1236 = vmatmul.bf16.vlgmr.msra.gmra.mxu3 %v1186_v31  ;;  %v2717_v11 = vld [vmem:[#allocation41_spill] sm:$0xff]  ;;  %v2718_v31 = vld [vmem:[#allocation42_spill] sm:$0xff] }
  0xbc   :  { %1258 = vmatpush.bf16.msrb.mxu0 %v2685_v35  ;;  %1271 = vmatpush.bf16.msrb.mxu1 %v2686_v27 }
  0xbd   :  { %1284 = vmatpush.bf16.msrb.mxu2 %v2687_v56  ;;  %1297 = vmatpush.bf16.msrb.mxu3 %v2688_v40 }
  0xc0   :  { %1259 = vmatpush.bf16.msrb.mxu0 %v2690_v23  ;;  %1272 = vmatpush.bf16.msrb.mxu1 %v2691_v8 }
  0xc1   :  { %1285 = vmatpush.bf16.msrb.mxu2 %v2693_v45  ;;  %1298 = vmatpush.bf16.msrb.mxu3 %v2694_v42 }
  0xc4   :  { %1260 = vmatpush.bf16.msrb.mxu0 %v2696_v33  ;;  %1273 = vmatpush.bf16.msrb.mxu1 %v2697_v5 }
  0xc5   :  { %1286 = vmatpush.bf16.msrb.mxu2 %v2701_v3  ;;  %1299 = vmatpush.bf16.msrb.mxu3 %v2702_v54 }
  0xc8   :  { %1261 = vmatpush.bf16.msrb.mxu0 %v2703_v18  ;;  %1274 = vmatpush.bf16.msrb.mxu1 %v2704_v16 }
  0xc9   :  { %1287 = vmatpush.bf16.msrb.mxu2 %v2705_v53  ;;  %1300 = vmatpush.bf16.msrb.mxu3 %v2706_v58 }
  0xcc   :  { %1262 = vmatpush.bf16.msrb.mxu0 %v2707_v59  ;;  %1275 = vmatpush.bf16.msrb.mxu1 %v2708_v14 }
  0xcd   :  { %1288 = vmatpush.bf16.msrb.mxu2 %v2709_v44  ;;  %1301 = vmatpush.bf16.msrb.mxu3 %v2710_v17 }
  0xd0   :  { %1263 = vmatpush.bf16.msrb.mxu0 %v2711_v12  ;;  %1276 = vmatpush.bf16.msrb.mxu1 %v2712_v20 }
  0xd1   :  { %1289 = vmatpush.bf16.msrb.mxu2 %v2713_v30  ;;  %1302 = vmatpush.bf16.msrb.mxu3 %v2714_v36  ;;  %v410_v32 = vpop.f32.mrf.mxu0 }
  0xd2   :  { %v423_v37 = vpop.f32.mrf.mxu1 }
  0xd3   :  { %v424_v19 = vadd.f32 %v423_v37, %v410_v32 }
  0xd4   :  { %1264 = vmatpush.bf16.msrb.mxu0 %v2715_v60  ;;  %1277 = vmatpush.bf16.msrb.mxu1 %v2716_v0 }
  0xd5   :  { %1290 = vmatpush.bf16.msrb.mxu2 %v2717_v11  ;;  %1303 = vmatpush.bf16.msrb.mxu3 %v2718_v31 }
  0xd7   :  { %1265 = vmatmul.bf16.vlgmr.msrb.gmra.mxu0 %v1253_v48  ;;  %1278 = vmatmul.bf16.vlgmr.msrb.gmra.mxu1 %v1254_v9  ;;  %v436_v13 = vpop.f32.mrf.mxu2 }
  0xd8   :  { %1291 = vmatmul.bf16.vlgmr.msrb.gmra.mxu2 %v1253_v48  ;;  %1304 = vmatmul.bf16.vlgmr.msrb.gmra.mxu3 %v1254_v9  ;;  %v449_v15 = vpop.f32.mrf.mxu3 }
  0xd9   :  { %v450_v2 = vadd.f32 %v449_v15, %v436_v13  ;;  %v412_v35 = vpop.f32.mrf.mxu0 }
  0xda   :  { %v425_v27 = vpop.f32.mrf.mxu1 }
  0xdf   :  { %v438_v56 = vpop.f32.mrf.mxu2 }
  0xe0   :  { %v451_v40 = vpop.f32.mrf.mxu3 }
  0xe4   :  { %v638_v47 = vpop.f32.mrf.mxu0  ;;  %v651_v6 = vpop.f32.mrf.mxu1 }
  0xe5   :  { %v639_v23 = vadd.f32 %v638_v47, %v424_v19 }
  0xe7   :  { %v652_v8 = vadd.f32 %v651_v6, %v639_v23 }
  0xe9   :  { %v664_v62 = vpop.f32.mrf.mxu2  ;;  %v677_v46 = vpop.f32.mrf.mxu3 }
  0xea   :  { %v665_v21 = vadd.f32 %v664_v62, %v450_v2 }
  0xec   :  { %v678_v29 = vadd.f32 %v677_v46, %v665_v21  ;;  %v640_v45 = vpop.f32.mrf.mxu0  ;;  %v653_v42 = vpop.f32.mrf.mxu1 }
  0xf1   :  { %v666_v7 = vpop.f32.mrf.mxu2  ;;  %v679_v33 = vpop.f32.mrf.mxu3 }
  0xf4   :  { %v883_v5 = vpop.f32.mrf.mxu0  ;;  %v896_v34 = vpop.f32.mrf.mxu1 }
  0xf5   :  { %v897_v25 = vadd.f32 %v896_v34, %v883_v5 }
  0xf7   :  { %v926_v50 = vadd.f32 %v897_v25, %v652_v8 }
  0xfc   :  { %v885_v18 = vpop.f32.mrf.mxu0  ;;  %v898_v16 = vpop.f32.mrf.mxu1 }
  0xfd   :  { %v909_v3 = vpop.f32.mrf.mxu2  ;;  %v922_v54 = vpop.f32.mrf.mxu3 }
  0xfe   :  { %v923_v52 = vadd.f32 %v922_v54, %v909_v3 }
 0x100   :  { %v927_v41 = vadd.f32 %v923_v52, %v678_v29 }
 0x105   :  { %v911_v39 = vpop.f32.mrf.mxu2  ;;  %v924_v51 = vpop.f32.mrf.mxu3 }
 0x114   :  { %v1130_v53 = vpop.f32.mrf.mxu0  ;;  %v1143_v58 = vpop.f32.mrf.mxu1 }
 0x115   :  { %v1144_v59 = vadd.f32 %v1143_v58, %v1130_v53 }
 0x117   :  { %v1173_v14 = vadd.f32 %v1144_v59, %v926_v50 }
 0x11c   :  { %v1132_v4 = vpop.f32.mrf.mxu0  ;;  %v1145_v10 = vpop.f32.mrf.mxu1 }
 0x11d   :  { %v1156_v61 = vpop.f32.mrf.mxu2  ;;  %v1169_v63 = vpop.f32.mrf.mxu3 }
 0x11e   :  { %v1170_v37 = vadd.f32 %v1169_v63, %v1156_v61  ;;  %v1372_v61 = vlaneseq }
 0x120   :  { %v1174_v2 = vadd.f32 %v1170_v37, %v927_v41  ;;  %vm2540_vm11 = vcmp.lt.s32.totalorder %v1372_v61, 256 }
 0x125   :  { %v1158_v44 = vpop.f32.mrf.mxu2  ;;  %v1171_v17 = vpop.f32.mrf.mxu3 }
 0x134   :  { %v1198_v12 = vpop.f32.mrf.mxu0  ;;  %v1211_v20 = vpop.f32.mrf.mxu1 }
 0x135   :  { %v1212_v60 = vadd.f32 %v1211_v20, %v1198_v12 }
 0x137   :  { %v1241_v31 = vadd.f32 %v1212_v60, %v1173_v14 }
 0x13c   :  { %v1200_v30 = vpop.f32.mrf.mxu0  ;;  %v1213_v36 = vpop.f32.mrf.mxu1 }
 0x13d   :  { %v1224_v26 = vpop.f32.mrf.mxu2  ;;  %v1237_v55 = vpop.f32.mrf.mxu3 }
 0x13e   :  { %v1238_v13 = vadd.f32 %v1237_v55, %v1224_v26 }
 0x140   :  { %v1242_v56 = vadd.f32 %v1238_v13, %v1174_v2 }
 0x145   :  { %v1226_v48 = vpop.f32.mrf.mxu2  ;;  %v1239_v9 = vpop.f32.mrf.mxu3 }
 0x154   :  { %v1266_v0 = vpop.f32.mrf.mxu0  ;;  %v1279_v11 = vpop.f32.mrf.mxu1 }
 0x155   :  { %v1280_v32 = vadd.f32 %v1279_v11, %v1266_v0 }
 0x157   :  { %v1309_v19 = vadd.f32 %v1280_v32, %v1241_v31 }
 0x159   :  { %v1929_v15 = vmul.f32 -1.442695, %v1309_v19 }
 0x15b   :  { %2066 = vpow2.f32 %v1929_v15  ;;  %v1292_v35 = vpop.f32.mrf.mxu2  ;;  %v1305_v27 = vpop.f32.mrf.mxu3 }
 0x15c   :  { %v1306_v40 = vadd.f32 %v1305_v27, %v1292_v35  ;;  %v1268_v47 = vpop.f32.mrf.mxu0  ;;  %v1281_v6 = vpop.f32.mrf.mxu1 }
 0x15e   :  { %v1310_v23 = vadd.f32 %v1306_v40, %v1242_v56 }
 0x160   :  { %v1930_v8 = vmul.f32 -1.442695, %v1310_v23 }
 0x161   :  { %v2067_v62 = vpop.eup %2066 }
 0x162   :  { %v1317_v46 = vadd.f32 1.0, %v2067_v62  ;;  %2068 = vpow2.f32 %v1930_v8 }
 0x163   :  { %v1294_v21 = vpop.f32.mrf.mxu2  ;;  %v1307_v29 = vpop.f32.mrf.mxu3 }
 0x164   :  { %2070 = vrcp.f32 %v1317_v46  ;;  %v1330_v3 = vand.u32 2147483648, %v1317_v46  ;;  %vm1324_vm3 = vweird.f32 %v1317_v46  ;;  %v1328_v52 = vand.u32 2147483647, %v1317_v46 }
 0x166   :  { %v1331_v39 = vor.u32 1.1754944e-38, %v1330_v3  ;;  %vm1329_vm6 = vcmp.eq.f32.partialorder %v1328_v52, 8.507059e+37 }
 0x168   :  { %v2069_v45 = vpop.eup %2068 }
 0x169   :  { %v1318_v42 = vadd.f32 1.0, %v2069_v45 }
 0x16a   :  { %v2071_v7 = vpop.eup %2070 }
 0x16b   :  { %v1320_v33 = vmul.f32 %v2071_v7, %v1317_v46  ;;  %2072 = vrcp.f32 %v1318_v42  ;;  %vm1325_vm2 = vweird.f32 %v2071_v7  ;;  %v1345_v41 = vand.u32 2147483648, %v1318_v42 }
 0x16c   :  { %vm1326_vm4 = vmor %vm1324_vm3, %vm1325_vm2  ;;  %v1343_v53 = vand.u32 2147483647, %v1318_v42  ;;  %vm1339_vm7 = vweird.f32 %v1318_v42 }
 0x16d   :  { %v1321_v5 = vsub.f32 1.0, %v1320_v33  ;;  %v1346_v14 = vor.u32 1.1754944e-38, %v1345_v41 }
 0x16e   :  { %vm1344_vm9 = vcmp.eq.f32.partialorder %v1343_v53, 8.507059e+37 }
 0x16f   :  { %v1322_v34 = vmul.f32 %v2071_v7, %v1321_v5 }
 0x171   :  { %v2073_v25 = vpop.eup %2072  ;;  %v1323_v50 = vadd.f32 %v2071_v7, %v1322_v34 }
 0x172   :  { %v1335_v54 = vmul.f32 %v2073_v25, %v1318_v42  ;;  %vm1340_vm5 = vweird.f32 %v2073_v25 }
 0x173   :  { %v1327_v16 = vsel %vm1326_vm4, %v2071_v7, %v1323_v50  ;;  %vm1341_vm8 = vmor %vm1339_vm7, %vm1340_vm5 }
 0x174   :  { %v1336_v18 = vsub.f32 1.0, %v1335_v54  ;;  %v1332_v58 = vsel %vm1329_vm6, %v1331_v39, %v1327_v16 }
 0x175   :  { %v1351_v4 = vrot.slane %v1332_v58, 1  ;;  %v1357_v20 = vmul.f32 %v1332_v58, %v2414_v49  ;;  %v1379_v26 = vmul.f32 %v1332_v58, %v2695_v1 }
 0x176   :  { %v1337_v51 = vmul.f32 %v2073_v25, %v1336_v18 }
 0x177   :  { %v1359_v49 = vmul.f32 %v1351_v4, %v2418_v24 }
 0x178   :  { %v1338_v59 = vadd.f32 %v2073_v25, %v1337_v51 }
 0x17a   :  { %v1342_v63 = vsel %vm1341_vm8, %v2073_v25, %v1338_v59 }
 0x17b   :  { %v1347_v10 = vsel %vm1344_vm9, %v1346_v14, %v1342_v63 }
 0x17c   :  { %v1352_v44 = vrot.slane %v1347_v10, 1  ;;  %v1358_v17 = vmul.f32 %v1347_v10, %v2416_v38  ;;  %v1380_v12 = vmul.f32 %v1347_v10, %v2699_v22  ;;  %v1381_v38 = vmul.f32 %v1351_v4, %v2698_v28 }
 0x17e   :  { %v1360_v30 = vmul.f32 %v1352_v44, %v2420_v43  ;;  %v1365_v36 = vrot.slane %v1358_v17, 7  ;;  %v1382_v48 = vmul.f32 %v1352_v44, %v2700_v57  ;;  %v1387_v9 = vrot.slane %v1380_v12, 7 }
 0x180   :  { %v1366_v1 = vrot.slane %v1360_v30, 7  ;;  %v1388_v22 = vrot.slane %v1382_v48, 7  ;;  %v1368_v60 = vsel %vm1367_vm10, %v1357_v20, %v1365_v36  ;;  %v1389_v43 = vsel %vm1367_vm10, %v1379_v26, %v1387_v9 }
 0x181   :  { %1376 = vst.msk [vmem:[#allocation7] ss:$2 sm:$0x3] %vm2540_vm11, %v1368_v60 }
 0x182   :  { %v1369_v57 = vsel %vm1367_vm10, %v1359_v49, %v1366_v1  ;;  %v1390_v0 = vsel %vm1367_vm10, %v1381_v38, %v1388_v22  ;;  %1394 = vst.msk [vmem:[#allocation7 + $0x1] ss:$2 sm:$0x3] %vm2540_vm11, %v1389_v43 }
 0x183   :  { %1378 = vst.msk [vmem:[#allocation7 + $0x4] ss:$2 sm:$0x3] %vm2540_vm11, %v1369_v57 }
 0x184   :  { %1396 = vst.msk [vmem:[#allocation7 + $0x5] ss:$2 sm:$0x3] %vm2540_vm11, %v1390_v0 }
 0x185   :  { %1409 = dma.vmem_to_hbm [thread:$0]  %s1402_s1, 128, %s1404_s23, [#allocation4], %s2157_s2, %s2157_s2, %s2158_s24  }
 0x186   :  { %2150 = dma.done.wait [#allocation4], 128  }
 0x187   :  { %2151 = vsyncadd [#allocation4], 4294967168 }
 0x188   :  { %1414 = vsyncpa [#allocation3], 1 }
 0x189   :  { %1415 = vsyncpa [#allocation6], 1 }
 0x18a   :  { %1416 = vsyncpa [#allocation4], 1 }

// kernel: tpu_custom_call.1
= control target key start
LH: loop header
LB: loop body
LE: loop exit
PB: predicated region body
PF: predicated region fallthrough
CT: control target
= control target key end

     0   :  { %7 = vsyncpa [#allocation3], 0  ;;  %s2563_s0 = inlined_call_operand.hbm [shape: f32[2,4,256], index: 0, kind: input, shape index: {}]   ;;  %s2564_s1 = inlined_call_operand.hbm [shape: bf16[2,2,256,256], index: 1, kind: input, shape index: {}]   ;;  %s2565_s2 = inlined_call_operand.hbm [shape: f32[2,2,256], index: 2, kind: output, shape index: {}]  }
   0x1   :  { %8 = vsyncpa [#allocation6], 0 }
   0x2   :  { %9 = vsyncpa [#allocation4], 0  ;;  %s14_s11 = sshll.u32 %s2563_s0, 4  ;;  %s2152_s12 = smov [#allocation2]   ;;  %s15_s11 = int_to_ptr.hbm [resolvable:$true] %s14_s11 }
   0x3   :  { %s16_s13 = sshll.u32 %s2152_s12, 4  ;;  %s27_s16 = sshll.u32 %s2564_s1, 4  ;;  %s17_s13 = int_to_ptr.vmem [resolvable:$true] %s16_s13  ;;  %s28_s16 = int_to_ptr.hbm [resolvable:$true] %s27_s16 }
   0x4   :  { %s2153_s17 = smov 128   ;;  %s2154_s18 = smov 8  }
   0x5   :  { %22 = dma.hbm_to_vmem [thread:$0]  %s15_s11, 256, %s17_s13, [#allocation3], %s2153_s17, %s2153_s17, %s2154_s18  }
   0x6   :  { %s2155_s19 = smov [#allocation5]  }
   0x7   :  { %s29_s20 = sshll.u32 %s2155_s19, 4  ;;  %s30_s20 = int_to_ptr.vmem [resolvable:$true] %s29_s20 }
   0x8   :  { %35 = dma.hbm_to_vmem [thread:$0]  %s28_s16, 16384, %s30_s20, [#allocation6], %s2153_s17, %s2153_s17, %s2154_s18  }
   0x9   :  { %2146 = dma.done.wait [#allocation3], 256  }
   0xa   :  { %2147 = vsyncadd [#allocation3], 4294967040 }
   0xb   :  { %2148 = dma.done.wait [#allocation6], 16384  }
   0xc   :  { %2149 = vsyncadd [#allocation6], 4294950912  ;;  %v1475_v0 = vld [vmem:[#allocation5 + $0x170] sm:$0xf]  ;;  %v1978_v1 = vld [vmem:[#allocation5 + $0x174] sm:$0xf0] }
   0xd   :  { %v1539_v2 = vld [vmem:[#allocation5 + $0x1f0] sm:$0xf]  ;;  %v2180_v3 = vor.u32 %v1978_v1, %v1475_v0  ;;  %v1994_v4 = vld [vmem:[#allocation5 + $0x1f4] sm:$0xf0]  ;;  %v1977_v5 = vld [vmem:[#allocation5 + $0x174] sm:$0xf] }
   0xe   :  { %v1477_v6 = vld [vmem:[#allocation5 + $0x178] sm:$0xf0]  ;;  %v2182_v7 = vor.u32 %v1994_v4, %v1539_v2  ;;  %v1993_v9 = vld [vmem:[#allocation5 + $0x1f4] sm:$0xf]  ;;  %v1467_v11 = vld [vmem:[#allocation5 + $0x160] sm:$0xf] }
   0xf   :  { %2621 = vst [vmem:[#allocation11_spill] sm:$0xff] %v2180_v3  ;;  %v2184_v8 = vor.u32 %v1977_v5, %v1477_v6  ;;  %v1541_v10 = vld [vmem:[#allocation5 + $0x1f8] sm:$0xf0]  ;;  %401 = vmatpush.bf16.msra.mxu0 %v2180_v3  ;;  %v1976_v13 = vld [vmem:[#allocation5 + $0x164] sm:$0xf0]  ;;  %vm59_vm0 = vcmask 1043456  }
  0x10   :  { %2622 = vst [vmem:[#allocation12_spill] sm:$0xff] %v2182_v7  ;;  %v2187_v12 = vor.u32 %v1993_v9, %v1541_v10  ;;  %v1531_v14 = vld [vmem:[#allocation5 + $0x1e0] sm:$0xf]  ;;  %v1992_v15 = vld [vmem:[#allocation5 + $0x1e4] sm:$0xf0]  ;;  %414 = vmatpush.bf16.msra.mxu1 %v2182_v7  ;;  %v2191_v16 = vor.u32 %v1976_v13, %v1467_v11  ;;  %vm234_vm1 = vcmask 1041409  }
  0x11   :  { %2623 = vst [vmem:[#allocation13_spill] sm:$0xff] %v2184_v8  ;;  %427 = vmatpush.bf16.msra.mxu2 %v2184_v8  ;;  %v2193_v17 = vor.u32 %v1992_v15, %v1531_v14  ;;  %v1975_v18 = vld [vmem:[#allocation5 + $0x164] sm:$0xf]  ;;  %v1469_v19 = vld [vmem:[#allocation5 + $0x168] sm:$0xf0]  ;;  %vm1367_vm10 = vcmask 1040384  }
  0x12   :  { %2624 = vst [vmem:[#allocation14_spill] sm:$0xff] %v2187_v12  ;;  %v1991_v20 = vld [vmem:[#allocation5 + $0x1e4] sm:$0xf]  ;;  %440 = vmatpush.bf16.msra.mxu3 %v2187_v12  ;;  %v2196_v21 = vor.u32 %v1975_v18, %v1469_v19  ;;  %v1533_v22 = vld [vmem:[#allocation5 + $0x1e8] sm:$0xf0]  ;;  %s2156_s0 = smov [#allocation7]  }
  0x13   :  { %2625 = vst [vmem:[#allocation15_spill] sm:$0xff] %v2191_v16  ;;  %v1459_v23 = vld [vmem:[#allocation5 + $0x150] sm:$0xf]  ;;  %v1974_v24 = vld [vmem:[#allocation5 + $0x154] sm:$0xf0]  ;;  %v2198_v25 = vor.u32 %v1991_v20, %v1533_v22  ;;  %402 = vmatpush.bf16.msra.mxu0 %v2191_v16  ;;  %s1401_s1 = sshll.u32 %s2156_s0, 4  ;;  %s1402_s1 = int_to_ptr.vmem [resolvable:$true] %s1401_s1 }
  0x14   :  { %2626 = vst [vmem:[#allocation16_spill] sm:$0xff] %v2193_v17  ;;  %v1523_v26 = vld [vmem:[#allocation5 + $0x1d0] sm:$0xf]  ;;  %v1990_v27 = vld [vmem:[#allocation5 + $0x1d4] sm:$0xf0]  ;;  %v2201_v29 = vor.u32 %v1974_v24, %v1459_v23  ;;  %415 = vmatpush.bf16.msra.mxu1 %v2193_v17  ;;  %s1403_s23 = sshll.u32 %s2565_s2, 4  ;;  %s1404_s23 = int_to_ptr.hbm [resolvable:$true] %s1403_s23 }
  0x15   :  { %2627 = vst [vmem:[#allocation17_spill] sm:$0xff] %v2196_v21  ;;  %v1973_v28 = vld [vmem:[#allocation5 + $0x154] sm:$0xf]  ;;  %v1461_v30 = vld [vmem:[#allocation5 + $0x158] sm:$0xf0]  ;;  %428 = vmatpush.bf16.msra.mxu2 %v2196_v21  ;;  %v2205_v33 = vor.u32 %v1990_v27, %v1523_v26  ;;  %s2157_s2 = smov 64  }
  0x16   :  { %2628 = vst [vmem:[#allocation18_spill] sm:$0xff] %v2198_v25  ;;  %v1989_v31 = vld [vmem:[#allocation5 + $0x1d4] sm:$0xf]  ;;  %v1525_v32 = vld [vmem:[#allocation5 + $0x1d8] sm:$0xf0]  ;;  %v2207_v34 = vor.u32 %v1973_v28, %v1461_v30  ;;  %441 = vmatpush.bf16.msra.mxu3 %v2198_v25  ;;  %s2158_s24 = smov 4  }
  0x17   :  { %2629 = vst [vmem:[#allocation19_spill] sm:$0xff] %v2201_v29  ;;  %v1451_v35 = vld [vmem:[#allocation5 + $0x140] sm:$0xf]  ;;  %v1972_v36 = vld [vmem:[#allocation5 + $0x144] sm:$0xf0]  ;;  %v2210_v38 = vor.u32 %v1989_v31, %v1525_v32  ;;  %403 = vmatpush.bf16.msra.mxu0 %v2201_v29 }
  0x18   :  { %2630 = vst [vmem:[#allocation20_spill] sm:$0xff] %v2205_v33  ;;  %v1515_v37 = vld [vmem:[#allocation5 + $0x1c0] sm:$0xf]  ;;  %v1988_v39 = vld [vmem:[#allocation5 + $0x1c4] sm:$0xf0]  ;;  %v2213_v44 = vor.u32 %v1972_v36, %v1451_v35  ;;  %416 = vmatpush.bf16.msra.mxu1 %v2205_v33 }
  0x19   :  { %2631 = vst [vmem:[#allocation21_spill] sm:$0xff] %v2207_v34  ;;  %v1971_v40 = vld [vmem:[#allocation5 + $0x144] sm:$0xf]  ;;  %v1453_v41 = vld [vmem:[#allocation5 + $0x148] sm:$0xf0]  ;;  %429 = vmatpush.bf16.msra.mxu2 %v2207_v34  ;;  %v2217_v45 = vor.u32 %v1988_v39, %v1515_v37 }
  0x1a   :  { %2632 = vst [vmem:[#allocation22_spill] sm:$0xff] %v2210_v38  ;;  %v1987_v42 = vld [vmem:[#allocation5 + $0x1c4] sm:$0xf]  ;;  %v1517_v43 = vld [vmem:[#allocation5 + $0x1c8] sm:$0xf0]  ;;  %v2219_v46 = vor.u32 %v1971_v40, %v1453_v41  ;;  %442 = vmatpush.bf16.msra.mxu3 %v2210_v38 }
  0x1b   :  { %2633 = vst [vmem:[#allocation23_spill] sm:$0xff] %v2213_v44  ;;  %v1443_v47 = vld [vmem:[#allocation5 + $0x130] sm:$0xf]  ;;  %v1970_v48 = vld [vmem:[#allocation5 + $0x134] sm:$0xf0]  ;;  %v2222_v50 = vor.u32 %v1987_v42, %v1517_v43  ;;  %404 = vmatpush.bf16.msra.mxu0 %v2213_v44 }
  0x1c   :  { %2634 = vst [vmem:[#allocation24_spill] sm:$0xff] %v2217_v45  ;;  %v1507_v49 = vld [vmem:[#allocation5 + $0x1b0] sm:$0xf]  ;;  %v1986_v51 = vld [vmem:[#allocation5 + $0x1b4] sm:$0xf0]  ;;  %v2225_v56 = vor.u32 %v1970_v48, %v1443_v47  ;;  %417 = vmatpush.bf16.msra.mxu1 %v2217_v45 }
  0x1d   :  { %2635 = vst [vmem:[#allocation25_spill] sm:$0xff] %v2219_v46  ;;  %v1969_v52 = vld [vmem:[#allocation5 + $0x134] sm:$0xf]  ;;  %v1445_v53 = vld [vmem:[#allocation5 + $0x138] sm:$0xf0]  ;;  %430 = vmatpush.bf16.msra.mxu2 %v2219_v46  ;;  %v2229_v57 = vor.u32 %v1986_v51, %v1507_v49 }
  0x1e   :  { %2636 = vst [vmem:[#allocation26_spill] sm:$0xff] %v2222_v50  ;;  %v1985_v54 = vld [vmem:[#allocation5 + $0x1b4] sm:$0xf]  ;;  %v1509_v55 = vld [vmem:[#allocation5 + $0x1b8] sm:$0xf0]  ;;  %v2231_v58 = vor.u32 %v1969_v52, %v1445_v53  ;;  %443 = vmatpush.bf16.msra.mxu3 %v2222_v50 }
  0x1f   :  { %2637 = vst [vmem:[#allocation27_spill] sm:$0xff] %v2225_v56  ;;  %v1435_v59 = vld [vmem:[#allocation5 + $0x120] sm:$0xf]  ;;  %v1968_v60 = vld [vmem:[#allocation5 + $0x124] sm:$0xf0]  ;;  %v2234_v62 = vor.u32 %v1985_v54, %v1509_v55  ;;  %405 = vmatpush.bf16.msra.mxu0 %v2225_v56 }
  0x20   :  { %2638 = vst [vmem:[#allocation28_spill] sm:$0xff] %v2229_v57  ;;  %v1499_v61 = vld [vmem:[#allocation5 + $0x1a0] sm:$0xf]  ;;  %v1984_v63 = vld [vmem:[#allocation5 + $0x1a4] sm:$0xf0]  ;;  %v2237_v5 = vor.u32 %v1968_v60, %v1435_v59  ;;  %418 = vmatpush.bf16.msra.mxu1 %v2229_v57 }
  0x21   :  { %2639 = vst [vmem:[#allocation29_spill] sm:$0xff] %v2231_v58  ;;  %v1967_v0 = vld [vmem:[#allocation5 + $0x124] sm:$0xf]  ;;  %v1437_v1 = vld [vmem:[#allocation5 + $0x128] sm:$0xf0]  ;;  %431 = vmatpush.bf16.msra.mxu2 %v2231_v58  ;;  %v2241_v6 = vor.u32 %v1984_v63, %v1499_v61 }
  0x22   :  { %2640 = vst [vmem:[#allocation30_spill] sm:$0xff] %v2234_v62  ;;  %v1983_v2 = vld [vmem:[#allocation5 + $0x1a4] sm:$0xf]  ;;  %v1501_v4 = vld [vmem:[#allocation5 + $0x1a8] sm:$0xf0]  ;;  %v2243_v9 = vor.u32 %v1967_v0, %v1437_v1  ;;  %444 = vmatpush.bf16.msra.mxu3 %v2234_v62 }
  0x23   :  { %2641 = vst [vmem:[#allocation31_spill] sm:$0xff] %v2237_v5  ;;  %v1427_v10 = vld [vmem:[#allocation5 + $0x110] sm:$0xf]  ;;  %v1966_v11 = vld [vmem:[#allocation5 + $0x114] sm:$0xf0]  ;;  %v2246_v14 = vor.u32 %v1983_v2, %v1501_v4  ;;  %406 = vmatpush.bf16.msra.mxu0 %v2237_v5 }
  0x24   :  { %2642 = vst [vmem:[#allocation32_spill] sm:$0xff] %v2241_v6  ;;  %v1491_v13 = vld [vmem:[#allocation5 + $0x190] sm:$0xf]  ;;  %v1982_v15 = vld [vmem:[#allocation5 + $0x194] sm:$0xf0]  ;;  %v2249_v23 = vor.u32 %v1966_v11, %v1427_v10  ;;  %419 = vmatpush.bf16.msra.mxu1 %v2241_v6 }
  0x25   :  { %2643 = vst [vmem:[#allocation33_spill] sm:$0xff] %v2243_v9  ;;  %v1965_v18 = vld [vmem:[#allocation5 + $0x114] sm:$0xf]  ;;  %v1429_v19 = vld [vmem:[#allocation5 + $0x118] sm:$0xf0]  ;;  %432 = vmatpush.bf16.msra.mxu2 %v2243_v9  ;;  %v2253_v27 = vor.u32 %v1982_v15, %v1491_v13 }
  0x26   :  { %2644 = vst [vmem:[#allocation34_spill] sm:$0xff] %v2246_v14  ;;  %v1981_v20 = vld [vmem:[#allocation5 + $0x194] sm:$0xf]  ;;  %v1493_v22 = vld [vmem:[#allocation5 + $0x198] sm:$0xf0]  ;;  %v2255_v28 = vor.u32 %v1965_v18, %v1429_v19  ;;  %445 = vmatpush.bf16.msra.mxu3 %v2246_v14 }
  0x27   :  { %2645 = vst [vmem:[#allocation35_spill] sm:$0xff] %v2249_v23  ;;  %v1419_v24 = vld [vmem:[#allocation5 + $0x100] sm:$0xf]  ;;  %v1964_v26 = vld [vmem:[#allocation5 + $0x104] sm:$0xf0]  ;;  %v2258_v35 = vor.u32 %v1981_v20, %v1493_v22  ;;  %407 = vmatpush.bf16.msra.mxu0 %v2249_v23  ;;  %v44_v18 = vld [vmem:[#allocation2] sm:$0xff] }
  0x28   :  { %2646 = vst [vmem:[#allocation36_spill] sm:$0xff] %v2253_v27  ;;  %v1483_v30 = vld [vmem:[#allocation5 + $0x180] sm:$0xf]  ;;  %v1980_v31 = vld [vmem:[#allocation5 + $0x184] sm:$0xf0]  ;;  %v2261_v43 = vor.u32 %v1964_v26, %v1419_v24  ;;  %420 = vmatpush.bf16.msra.mxu1 %v2253_v27  ;;  %v2283_v19 = vld [vmem:[#allocation2 + $0x8] sm:$0xff] }
  0x29   :  { %2647 = vst [vmem:[#allocation37_spill] sm:$0xff] %v2255_v28  ;;  %v1963_v32 = vld [vmem:[#allocation5 + $0x104] sm:$0xf]  ;;  %v1421_v36 = vld [vmem:[#allocation5 + $0x108] sm:$0xf0]  ;;  %433 = vmatpush.bf16.msra.mxu2 %v2255_v28  ;;  %v2265_v51 = vor.u32 %v1980_v31, %v1483_v30 }
  0x2a   :  { %2648 = vst [vmem:[#allocation38_spill] sm:$0xff] %v2258_v35  ;;  %v1979_v37 = vld [vmem:[#allocation5 + $0x184] sm:$0xf]  ;;  %v1485_v39 = vld [vmem:[#allocation5 + $0x188] sm:$0xf0]  ;;  %v2267_v52 = vor.u32 %v1963_v32, %v1421_v36  ;;  %446 = vmatpush.bf16.msra.mxu3 %v2258_v35 }
  0x2b   :  { %v1603_v40 = vld [vmem:[#allocation5 + $0x70] sm:$0xf]  ;;  %v1946_v41 = vld [vmem:[#allocation5 + $0x74] sm:$0xf0]  ;;  %2649 = vst [vmem:[#allocation39_spill] sm:$0xff] %v2261_v43  ;;  %v2270_v55 = vor.u32 %v1979_v37, %v1485_v39  ;;  %408 = vmatpush.bf16.msra.mxu0 %v2261_v43 }
  0x2c   :  { %v1667_v42 = vld [vmem:[#allocation5 + $0xf0] sm:$0xf]  ;;  %v1962_v47 = vld [vmem:[#allocation5 + $0xf4] sm:$0xf0]  ;;  %v1945_v48 = vld [vmem:[#allocation5 + $0x74] sm:$0xf]  ;;  %v2272_v59 = vor.u32 %v1946_v41, %v1603_v40  ;;  %421 = vmatpush.bf16.msra.mxu1 %v2265_v51 }
  0x2d   :  { %v1605_v49 = vld [vmem:[#allocation5 + $0x78] sm:$0xf0]  ;;  %2650 = vst [vmem:[#allocation40_spill] sm:$0xff] %v2265_v51  ;;  %v1961_v53 = vld [vmem:[#allocation5 + $0xf4] sm:$0xf]  ;;  %v2274_v61 = vor.u32 %v1962_v47, %v1667_v42  ;;  %434 = vmatpush.bf16.msra.mxu2 %v2267_v52 }
  0x2e   :  { %2651 = vst [vmem:[#allocation41_spill] sm:$0xff] %v2267_v52  ;;  %v1669_v54 = vld [vmem:[#allocation5 + $0xf8] sm:$0xf0]  ;;  %v1595_v60 = vld [vmem:[#allocation5 + $0x60] sm:$0xf]  ;;  %v2276_v63 = vor.u32 %v1945_v48, %v1605_v49  ;;  %447 = vmatpush.bf16.msra.mxu3 %v2270_v55 }
  0x2f   :  { %2652 = vst [vmem:[#allocation42_spill] sm:$0xff] %v2270_v55  ;;  %v1944_v0 = vld [vmem:[#allocation5 + $0x64] sm:$0xf0]  ;;  %v1659_v1 = vld [vmem:[#allocation5 + $0xe0] sm:$0xf]  ;;  %v2279_v4 = vor.u32 %v1961_v53, %v1669_v54  ;;  %629 = vmatpush.bf16.msrb.mxu0 %v2272_v59 }
  0x30   :  { %v1960_v2 = vld [vmem:[#allocation5 + $0xe4] sm:$0xf0]  ;;  %v1943_v10 = vld [vmem:[#allocation5 + $0x64] sm:$0xf]  ;;  %v1597_v11 = vld [vmem:[#allocation5 + $0x68] sm:$0xf0]  ;;  %v2287_v20 = vor.u32 %v1944_v0, %v1595_v60  ;;  %642 = vmatpush.bf16.msrb.mxu1 %v2274_v61 }
  0x31   :  { %v1959_v13 = vld [vmem:[#allocation5 + $0xe4] sm:$0xf]  ;;  %v1661_v15 = vld [vmem:[#allocation5 + $0xe8] sm:$0xf0]  ;;  %v1587_v22 = vld [vmem:[#allocation5 + $0x50] sm:$0xf]  ;;  %655 = vmatpush.bf16.msrb.mxu2 %v2276_v63  ;;  %v2291_v26 = vor.u32 %v1960_v2, %v1659_v1  ;;  %v2293_v30 = vor.u32 %v1943_v10, %v1597_v11 }
  0x32   :  { %v1942_v24 = vld [vmem:[#allocation5 + $0x54] sm:$0xf0]  ;;  %48 = vst [vmem:[#allocation1] ss:$2 sm:$0xff] %v44_v18  ;;  %v1651_v31 = vld [vmem:[#allocation5 + $0xd0] sm:$0xf]  ;;  %668 = vmatpush.bf16.msrb.mxu3 %v2279_v4  ;;  %v2297_v36 = vor.u32 %v1959_v13, %v1661_v15 }
  0x33   :  { %v1958_v32 = vld [vmem:[#allocation5 + $0xd4] sm:$0xf0]  ;;  %52 = vst [vmem:[#allocation1 + $0x10] ss:$2 sm:$0xff] %v2283_v19  ;;  %v1941_v37 = vld [vmem:[#allocation5 + $0x54] sm:$0xf]  ;;  %630 = vmatpush.bf16.msrb.mxu0 %v2287_v20  ;;  %v2300_v48 = vor.u32 %v1942_v24, %v1587_v22 }
  0x34   :  { %v1589_v39 = vld [vmem:[#allocation5 + $0x58] sm:$0xf0]  ;;  %v1957_v40 = vld [vmem:[#allocation5 + $0xd4] sm:$0xf]  ;;  %v1579_v42 = vld [vmem:[#allocation5 + $0x40] sm:$0xf]  ;;  %643 = vmatpush.bf16.msrb.mxu1 %v2291_v26  ;;  %v2304_v60 = vor.u32 %v1958_v32, %v1651_v31 }
  0x35   :  { %v1653_v41 = vld [vmem:[#allocation5 + $0xd8] sm:$0xf0]  ;;  %v1940_v47 = vld [vmem:[#allocation5 + $0x44] sm:$0xf0]  ;;  %v1643_v49 = vld [vmem:[#allocation5 + $0xc0] sm:$0xf]  ;;  %656 = vmatpush.bf16.msrb.mxu2 %v2293_v30  ;;  %v2306_v0 = vor.u32 %v1941_v37, %v1589_v39 }
  0x36   :  { %v1956_v53 = vld [vmem:[#allocation5 + $0xc4] sm:$0xf0]  ;;  %v1939_v54 = vld [vmem:[#allocation5 + $0x44] sm:$0xf]  ;;  %v1581_v1 = vld [vmem:[#allocation5 + $0x48] sm:$0xf0]  ;;  %669 = vmatpush.bf16.msrb.mxu3 %v2297_v36  ;;  %v2309_v11 = vor.u32 %v1957_v40, %v1653_v41  ;;  %v2312_v55 = vor.u32 %v1940_v47, %v1579_v42 }
  0x37   :  { %v1955_v2 = vld [vmem:[#allocation5 + $0xc4] sm:$0xf]  ;;  %v1645_v10 = vld [vmem:[#allocation5 + $0xc8] sm:$0xf0]  ;;  %v1571_v13 = vld [vmem:[#allocation5 + $0x30] sm:$0xf]  ;;  %631 = vmatpush.bf16.msrb.mxu0 %v2300_v48  ;;  %v2314_v31 = vor.u32 %v1956_v53, %v1643_v49  ;;  %v2316_v32 = vor.u32 %v1939_v54, %v1581_v1 }
  0x38   :  { %v1938_v15 = vld [vmem:[#allocation5 + $0x34] sm:$0xf0]  ;;  %v2318_v37 = vor.u32 %v1955_v2, %v1645_v10  ;;  %v1635_v51 = vld [vmem:[#allocation5 + $0xb0] sm:$0xf]  ;;  %v1937_v41 = vld [vmem:[#allocation5 + $0x34] sm:$0xf]  ;;  %644 = vmatpush.bf16.msrb.mxu1 %v2304_v60 }
  0x39   :  { %v49_v22 = vld.sshfl [vmem:[#allocation1] sm:$0xff pattern:$0x75316420]  ;;  %v50_v24 = vld.sshfl [vmem:[#allocation1 + $0x8] sm:$0xff pattern:$0x75316420]  ;;  %657 = vmatpush.bf16.msrb.mxu2 %v2306_v0  ;;  %v2328_v9 = vor.u32 %v1938_v15, %v1571_v13 }
  0x3a   :  { %v53_v39 = vld.sshfl [vmem:[#allocation1 + $0x10] sm:$0xff pattern:$0x75316420]  ;;  %v54_v52 = vld.sshfl [vmem:[#allocation1 + $0x18] sm:$0xff pattern:$0x75316420]  ;;  %670 = vmatpush.bf16.msrb.mxu3 %v2309_v11 }
  0x3b   :  { %v1954_v40 = vld [vmem:[#allocation5 + $0xb4] sm:$0xf0]  ;;  %v1573_v43 = vld [vmem:[#allocation5 + $0x38] sm:$0xf0]  ;;  %v1953_v35 = vld [vmem:[#allocation5 + $0xb4] sm:$0xf]  ;;  %632 = vmatpush.bf16.msrb.mxu0 %v2312_v55 }
  0x3c   :  { %v1637_v28 = vld [vmem:[#allocation5 + $0xb8] sm:$0xf0]  ;;  %v60_v42 = vsel %vm59_vm0, %v49_v22, -inf  ;;  %v67_v47 = vsel %vm59_vm0, %v50_v24, -inf  ;;  %v74_v49 = vsel %vm59_vm0, %v53_v39, -inf  ;;  %v81_v53 = vsel %vm59_vm0, %v54_v52, -inf  ;;  %645 = vmatpush.bf16.msrb.mxu1 %v2314_v31 }
  0x3d   :  { %88 = vst [vmem:[#allocation1] ss:$2 sm:$0xff] %v44_v18  ;;  %v61_v54 = vrot.slane %v60_v42, 4  ;;  %v68_v1 = vrot.slane %v67_v47, 4  ;;  %v75_v2 = vrot.slane %v74_v49, 4  ;;  %v82_v10 = vrot.slane %v81_v53, 4  ;;  %658 = vmatpush.bf16.msrb.mxu2 %v2316_v32 }
  0x3e   :  { %92 = vst [vmem:[#allocation1 + $0x10] ss:$2 sm:$0xff] %v2283_v19  ;;  %v1563_v27 = vld [vmem:[#allocation5 + $0x20] sm:$0xf]  ;;  %v1936_v23 = vld [vmem:[#allocation5 + $0x24] sm:$0xf0]  ;;  %v2333_v19 = vor.u32 %v1954_v40, %v1635_v51  ;;  %v2335_v13 = vor.u32 %v1937_v41, %v1573_v43  ;;  %v2337_v15 = vor.u32 %v1953_v35, %v1637_v28  ;;  %671 = vmatpush.bf16.msrb.mxu3 %v2318_v37 }
  0x3f   :  { %v1627_v14 = vld [vmem:[#allocation5 + $0xa0] sm:$0xf]  ;;  %v1952_v22 = vld [vmem:[#allocation5 + $0xa4] sm:$0xf0]  ;;  %v1935_v24 = vld [vmem:[#allocation5 + $0x24] sm:$0xf]  ;;  %v62_v52 = vmax.f32 %v60_v42, %v61_v54  ;;  %v69_v18 = vmax.f32 %v67_v47, %v68_v1  ;;  %v76_v39 = vmax.f32 %v74_v49, %v75_v2  ;;  %v83_v5 = vmax.f32 %v81_v53, %v82_v10  ;;  %633 = vmatpush.bf16.msrb.mxu0 %v2328_v9 }
  0x40   :  { %v1565_v6 = vld [vmem:[#allocation5 + $0x28] sm:$0xf0]  ;;  %v1951_v62 = vld [vmem:[#allocation5 + $0xa4] sm:$0xf]  ;;  %v1555_v57 = vld [vmem:[#allocation5 + $0x10] sm:$0xf]  ;;  %v2340_v2 = vor.u32 %v1936_v23, %v1563_v27  ;;  %v2342_v10 = vor.u32 %v1952_v22, %v1627_v14  ;;  %646 = vmatpush.bf16.msrb.mxu1 %v2333_v19 }
  0x41   :  { %v1629_v58 = vld [vmem:[#allocation5 + $0xa8] sm:$0xf0]  ;;  %v1934_v56 = vld [vmem:[#allocation5 + $0x14] sm:$0xf0]  ;;  %v1619_v50 = vld [vmem:[#allocation5 + $0x90] sm:$0xf]  ;;  %v2344_v51 = vor.u32 %v1935_v24, %v1565_v6  ;;  %659 = vmatpush.bf16.msrb.mxu2 %v2335_v13 }
  0x42   :  { %v1950_v46 = vld [vmem:[#allocation5 + $0x94] sm:$0xf0]  ;;  %v63_v42 = vrot.slane %v62_v52, 2  ;;  %v70_v47 = vrot.slane %v69_v18, 2  ;;  %v77_v49 = vrot.slane %v76_v39, 2  ;;  %v84_v53 = vrot.slane %v83_v5, 2  ;;  %672 = vmatpush.bf16.msrb.mxu3 %v2337_v15 }
  0x43   :  { %v1933_v54 = vld [vmem:[#allocation5 + $0x14] sm:$0xf]  ;;  %v1557_v1 = vld [vmem:[#allocation5 + $0x18] sm:$0xf0]  ;;  %2653 = vst [vmem:[#allocation43_spill] sm:$0xff] %v2342_v10  ;;  %v2349_v14 = vor.u32 %v1951_v62, %v1629_v58  ;;  %v2351_v6 = vor.u32 %v1934_v56, %v1555_v57  ;;  %v2353_v23 = vor.u32 %v1950_v46, %v1619_v50  ;;  %634 = vmatpush.bf16.msrb.mxu0 %v2340_v2 }
  0x44   :  { %2654 = vst [vmem:[#allocation44_spill] sm:$0xff] %v2344_v51  ;;  %v1949_v43 = vld [vmem:[#allocation5 + $0x94] sm:$0xf]  ;;  %v1621_v28 = vld [vmem:[#allocation5 + $0x98] sm:$0xf0]  ;;  %v64_v40 = vmax.f32 %v62_v52, %v63_v42  ;;  %v71_v41 = vmax.f32 %v69_v18, %v70_v47  ;;  %v78_v45 = vmax.f32 %v76_v39, %v77_v49  ;;  %v85_v44 = vmax.f32 %v83_v5, %v84_v53 }
  0x45   :  { %v1547_v35 = vld [vmem:[#allocation5] sm:$0xf]  ;;  %v1932_v38 = vld [vmem:[#allocation5 + $0x4] sm:$0xf0]  ;;  %2655 = vst [vmem:[#allocation45_spill] sm:$0xff] %v2349_v14  ;;  %v2356_v47 = vor.u32 %v1933_v54, %v1557_v1  ;;  %v2358_v49 = vor.u32 %v1949_v43, %v1621_v28  ;;  %647 = vmatpush.bf16.msrb.mxu1 %v2342_v10  ;;  %660 = vmatpush.bf16.msrb.mxu2 %v2344_v51 }
  0x46   :  { %v1611_v34 = vld [vmem:[#allocation5 + $0x80] sm:$0xf]  ;;  %v1948_v33 = vld [vmem:[#allocation5 + $0x84] sm:$0xf0]  ;;  %2656 = vst [vmem:[#allocation46_spill] sm:$0xff] %v2351_v6  ;;  %v65_v27 = vrot.slane %v64_v40, 1  ;;  %v2360_v58 = vor.u32 %v1932_v38, %v1547_v35  ;;  %673 = vmatpush.bf16.msrb.mxu3 %v2349_v14 }
  0x47   :  { %2657 = vst [vmem:[#allocation47_spill] sm:$0xff] %v2353_v23  ;;  %v72_v22 = vrot.slane %v71_v41, 1  ;;  %v79_v24 = vrot.slane %v78_v45, 1  ;;  %v86_v5 = vrot.slane %v85_v44, 1  ;;  %v1931_v52 = vld [vmem:[#allocation5 + $0x4] sm:$0xf]  ;;  %v2362_v56 = vor.u32 %v1948_v33, %v1611_v34  ;;  %635 = vmatpush.bf16.msrb.mxu0 %v2351_v6 }
  0x48   :  { %v1549_v18 = vld [vmem:[#allocation5 + $0x8] sm:$0xf0]  ;;  %v1947_v39 = vld [vmem:[#allocation5 + $0x84] sm:$0xf]  ;;  %2658 = vst [vmem:[#allocation48_spill] sm:$0xff] %v2356_v47  ;;  %v2364_v57 = vmax.f32 %v64_v40, %v65_v27 }
  0x49   :  { %v1613_v42 = vld [vmem:[#allocation5 + $0x88] sm:$0xf0]  ;;  %2659 = vst [vmem:[#allocation49_spill] sm:$0xff] %v2358_v49  ;;  %v90_v50 = vld.sshfl [vmem:[#allocation1 + $0x8] sm:$0xff pattern:$0x75316420]  ;;  %v2366_v62 = vmax.f32 %v71_v41, %v72_v22  ;;  %v2368_v53 = vmax.f32 %v78_v45, %v79_v24  ;;  %v2370_v29 = vmax.f32 %v85_v44, %v86_v5  ;;  %v2388_v40 = vor.u32 %v1931_v52, %v1549_v18 }
  0x4a   :  { %2660 = vst [vmem:[#allocation50_spill] sm:$0xff] %v2360_v58  ;;  %v89_v46 = vld.sshfl [vmem:[#allocation1] sm:$0xff pattern:$0x75316420]  ;;  %v106_v34 = vsel %vm59_vm0, %v90_v50, 0.0  ;;  %v2390_v41 = vor.u32 %v1947_v39, %v1613_v42  ;;  %648 = vmatpush.bf16.msrb.mxu1 %v2353_v23  ;;  %661 = vmatpush.bf16.msrb.mxu2 %v2356_v47 }
  0x4b   :  { %2661 = vst [vmem:[#allocation51_spill] sm:$0xff] %v2362_v56  ;;  %v93_v54 = vld.sshfl [vmem:[#allocation1 + $0x10] sm:$0xff pattern:$0x75316420]  ;;  %v99_v33 = vsel %vm59_vm0, %v89_v46, 0.0  ;;  %v2381_v44 = vpack.c.bf16 %v2366_v62, %v2364_v57  ;;  %v2385_v45 = vpack.c.bf16 %v2370_v29, %v2368_v53  ;;  %v107_v35 = vrot.slane %v106_v34, 4  ;;  %674 = vmatpush.bf16.msrb.mxu3 %v2358_v49  ;;  %636 = vmatpush.bf16.msrb.mxu0 %v2360_v58 }
  0x4c   :  { %2662 = vst [vmem:[#allocation52_spill] sm:$0xff] %v2364_v57  ;;  %v94_v1 = vld.sshfl [vmem:[#allocation1 + $0x18] sm:$0xff pattern:$0x75316420]  ;;  %v113_v38 = vsel %vm59_vm0, %v93_v54, 0.0  ;;  %v100_v28 = vrot.slane %v99_v33, 4 }
  0x4d   :  { %2663 = vst [vmem:[#allocation53_spill] sm:$0xff] %v2366_v62  ;;  %v120_v43 = vsel %vm59_vm0, %v94_v1, 0.0  ;;  %v114_v27 = vrot.slane %v113_v38, 4  ;;  %v226_v24 = vperm.slane %v2381_v44, 0  ;;  %v228_v5 = vperm.slane %v2385_v45, 0 }
  0x4e   :  { %2664 = vst [vmem:[#allocation54_spill] sm:$0xff] %v2368_v53  ;;  %v121_v22 = vrot.slane %v120_v43, 4  ;;  %v227_v46 = vperm.slane %v2381_v44, 4  ;;  %v229_v50 = vperm.slane %v2385_v45, 4  ;;  %v1731_v54 = vld [vmem:[#allocation5 + $0x270] sm:$0xf]  ;;  %v101_v42 = vadd.f32 %v100_v28, %v99_v33  ;;  %649 = vmatpush.bf16.msrb.mxu1 %v2362_v56  ;;  %662 = vmatpush.bf16.msrb.mxu2 %v2388_v40 }
  0x4f   :  { %2665 = vst [vmem:[#allocation55_spill] sm:$0xff] %v2370_v29  ;;  %v2010_v52 = vld [vmem:[#allocation5 + $0x274] sm:$0xf0]  ;;  %v1795_v18 = vld [vmem:[#allocation5 + $0x2f0] sm:$0xf]  ;;  %v108_v1 = vadd.f32 %v107_v35, %v106_v34  ;;  %v115_v29 = vadd.f32 %v114_v27, %v113_v38  ;;  %v230_v62 = vunpack.c.l.b16 %v226_v24  ;;  %v232_v53 = vunpack.c.l.b16 %v228_v5  ;;  %675 = vmatpush.bf16.msrb.mxu3 %v2390_v41 }
  0x50   :  { %2666 = vst [vmem:[#allocation56_spill] sm:$0xff] %v2381_v44  ;;  %v2026_v39 = vld [vmem:[#allocation5 + $0x2f4] sm:$0xf0]  ;;  %v231_v57 = vunpack.c.l.b16 %v227_v46  ;;  %v233_v25 = vunpack.c.l.b16 %v229_v50  ;;  %v1733_v44 = vld [vmem:[#allocation5 + $0x278] sm:$0xf0]  ;;  %v102_v16 = vrot.slane %v101_v42, 2  ;;  %v122_v7 = vadd.f32 %v121_v22, %v120_v43 }
  0x51   :  { %2667 = vst [vmem:[#allocation57_spill] sm:$0xff] %v2385_v45  ;;  %v2009_v45 = vld [vmem:[#allocation5 + $0x274] sm:$0xf]  ;;  %v1797_v17 = vld [vmem:[#allocation5 + $0x2f8] sm:$0xf0]  ;;  %v109_v12 = vrot.slane %v108_v1, 2  ;;  %v235_v3 = vsel %vm234_vm1, %v232_v53, %v230_v62  ;;  %v1732_v34 = vor.u32 %v2010_v52, %v1731_v54  ;;  %v1796_v38 = vor.u32 %v2026_v39, %v1795_v18 }
  0x52   :  { %2668 = vst [vmem:[#allocation58_spill] sm:$0xff] %v2388_v40  ;;  %v2025_v21 = vld [vmem:[#allocation5 + $0x2f4] sm:$0xf]  ;;  %v116_v8 = vrot.slane %v115_v29, 2  ;;  %v236_v33 = vsel %vm234_vm1, %v233_v25, %v231_v57  ;;  %v1723_v28 = vld [vmem:[#allocation5 + $0x260] sm:$0xf]  ;;  %v2403_v35 = vpack.c.b16 %v235_v3, %v235_v3  ;;  %v103_v24 = vadd.f32 %v102_v16, %v101_v42 }
  0x53   :  { %2669 = vst [vmem:[#allocation59_spill] sm:$0xff] %v2390_v41  ;;  %v2405_v27 = vpack.c.b16 %v236_v33, %v236_v33  ;;  %v123_v5 = vrot.slane %v122_v7, 2  ;;  %v2008_v43 = vld [vmem:[#allocation5 + $0x264] sm:$0xf0]  ;;  %v1787_v22 = vld [vmem:[#allocation5 + $0x2e0] sm:$0xf]  ;;  %v1736_v25 = vor.u32 %v2009_v45, %v1733_v44  ;;  %v1800_v57 = vor.u32 %v2025_v21, %v1797_v17 }
  0x54   :  { %v110_v62 = vadd.f32 %v109_v12, %v108_v1  ;;  %v117_v53 = vadd.f32 %v116_v8, %v115_v29  ;;  %v2024_v46 = vld [vmem:[#allocation5 + $0x2e4] sm:$0xf0]  ;;  %v2007_v50 = vld [vmem:[#allocation5 + $0x264] sm:$0xf]  ;;  %v1725_v3 = vld [vmem:[#allocation5 + $0x268] sm:$0xf0]  ;;  %435 = vmatmul.bf16.vlgmr.msra.gmra.mxu2 %v2403_v35  ;;  %409 = vmatmul.bf16.vlgmr.msra.gmra.mxu0 %v2403_v35  ;;  %v1724_v17 = vor.u32 %v2008_v43, %v1723_v28 }
  0x55   :  { %448 = vmatmul.bf16.vlgmr.msra.gmra.mxu3 %v2405_v27  ;;  %v104_v54 = vrot.slane %v103_v24, 1  ;;  %v124_v52 = vadd.f32 %v123_v5, %v122_v7  ;;  %v2023_v18 = vld [vmem:[#allocation5 + $0x2e4] sm:$0xf]  ;;  %v1789_v16 = vld [vmem:[#allocation5 + $0x2e8] sm:$0xf0]  ;;  %422 = vmatmul.bf16.vlgmr.msra.gmra.mxu1 %v2405_v27  ;;  %v1788_v29 = vor.u32 %v2024_v46, %v1787_v22  ;;  %v1728_v45 = vor.u32 %v2007_v50, %v1725_v3 }
  0x56   :  { %v111_v39 = vrot.slane %v110_v62, 1  ;;  %v118_v44 = vrot.slane %v117_v53, 1  ;;  %v1715_v12 = vld [vmem:[#allocation5 + $0x250] sm:$0xf]  ;;  %874 = vmatpush.bf16.msra.mxu0 %v1732_v34  ;;  %887 = vmatpush.bf16.msra.mxu1 %v1796_v38  ;;  %v2006_v42 = vld [vmem:[#allocation5 + $0x254] sm:$0xf0]  ;;  %v1792_v5 = vor.u32 %v2023_v18, %v1789_v16 }
  0x57   :  { %v105_v8 = vadd.f32 %v104_v54, %v103_v24  ;;  %v125_v21 = vrot.slane %v124_v52, 1  ;;  %v1779_v1 = vld [vmem:[#allocation5 + $0x2d0] sm:$0xf]  ;;  %900 = vmatpush.bf16.msra.mxu2 %v1736_v25  ;;  %913 = vmatpush.bf16.msra.mxu3 %v1800_v57  ;;  %v2022_v41 = vld [vmem:[#allocation5 + $0x2d4] sm:$0xf0]  ;;  %v1716_v22 = vor.u32 %v2006_v42, %v1715_v12 }
  0x58   :  { %v112_v7 = vadd.f32 %v111_v39, %v110_v62  ;;  %v119_v33 = vadd.f32 %v118_v44, %v117_v53  ;;  %v2005_v40 = vld [vmem:[#allocation5 + $0x254] sm:$0xf]  ;;  %v1717_v56 = vld [vmem:[#allocation5 + $0x258] sm:$0xf0]  ;;  %v1780_v25 = vor.u32 %v2022_v41, %v1779_v1  ;;  %v1707_v57 = vld [vmem:[#allocation5 + $0x240] sm:$0xf] }
  0x59   :  { %v126_v58 = vadd.f32 %v125_v21, %v124_v52  ;;  %v2414_v49 = vmul.f32 0.25, %v105_v8  ;;  %v2021_v28 = vld [vmem:[#allocation5 + $0x2d4] sm:$0xf]  ;;  %v1781_v34 = vld [vmem:[#allocation5 + $0x2d8] sm:$0xf0]  ;;  %v1720_v46 = vor.u32 %v2005_v40, %v1717_v56 }
  0x5a   :  { %v2416_v38 = vmul.f32 0.25, %v112_v7  ;;  %v2418_v24 = vmul.f32 0.25, %v119_v33  ;;  %875 = vmatpush.bf16.msra.mxu0 %v1724_v17  ;;  %888 = vmatpush.bf16.msra.mxu1 %v1788_v29  ;;  %v2004_v62 = vld [vmem:[#allocation5 + $0x244] sm:$0xf0]  ;;  %v1784_v50 = vor.u32 %v2021_v28, %v1781_v34  ;;  %v1771_v3 = vld [vmem:[#allocation5 + $0x2c0] sm:$0xf] }
  0x5b   :  { %v2420_v43 = vmul.f32 0.25, %v126_v58  ;;  %901 = vmatpush.bf16.msra.mxu2 %v1728_v45  ;;  %914 = vmatpush.bf16.msra.mxu3 %v1792_v5  ;;  %v2020_v54 = vld [vmem:[#allocation5 + $0x2c4] sm:$0xf0]  ;;  %v2003_v52 = vld [vmem:[#allocation5 + $0x244] sm:$0xf]  ;;  %v1708_v56 = vor.u32 %v2004_v62, %v1707_v57 }
  0x5c   :  { %v2424_v53 = vpack.c.bf16 %v2416_v38, %v2414_v49  ;;  %v1709_v18 = vld [vmem:[#allocation5 + $0x248] sm:$0xf0]  ;;  %v2019_v16 = vld [vmem:[#allocation5 + $0x2c4] sm:$0xf]  ;;  %v1772_v40 = vor.u32 %v2020_v54, %v1771_v3  ;;  %v1699_v42 = vld [vmem:[#allocation5 + $0x230] sm:$0xf] }
  0x5d   :  { %v2428_v58 = vpack.c.bf16 %v2420_v43, %v2418_v24  ;;  %v1773_v41 = vld [vmem:[#allocation5 + $0x2c8] sm:$0xf0]  ;;  %v1712_v29 = vor.u32 %v2003_v52, %v1709_v18  ;;  %v2002_v1 = vld [vmem:[#allocation5 + $0x234] sm:$0xf0]  ;;  %v1763_v5 = vld [vmem:[#allocation5 + $0x2b0] sm:$0xf] }
  0x5e   :  { %v455_v39 = vperm.slane %v2424_v53, 0  ;;  %v456_v44 = vperm.slane %v2424_v53, 4  ;;  %876 = vmatpush.bf16.msra.mxu0 %v1716_v22  ;;  %889 = vmatpush.bf16.msra.mxu1 %v1780_v25  ;;  %v1776_v45 = vor.u32 %v2019_v16, %v1773_v41  ;;  %v2018_v28 = vld [vmem:[#allocation5 + $0x2b4] sm:$0xf0]  ;;  %v2001_v34 = vld [vmem:[#allocation5 + $0x234] sm:$0xf]  ;;  %v1700_v57 = vor.u32 %v2002_v1, %v1699_v42 }
  0x5f   :  { %v457_v17 = vperm.slane %v2428_v58, 0  ;;  %v458_v12 = vperm.slane %v2428_v58, 4  ;;  %902 = vmatpush.bf16.msra.mxu2 %v1720_v46  ;;  %915 = vmatpush.bf16.msra.mxu3 %v1784_v50  ;;  %v1701_v47 = vld [vmem:[#allocation5 + $0x238] sm:$0xf0]  ;;  %v2017_v23 = vld [vmem:[#allocation5 + $0x2b4] sm:$0xf]  ;;  %v1764_v50 = vor.u32 %v2018_v28, %v1763_v5 }
  0x60   :  { %v459_v8 = vunpack.c.l.b16 %v455_v39  ;;  %v460_v21 = vunpack.c.l.b16 %v456_v44  ;;  %v1765_v6 = vld [vmem:[#allocation5 + $0x2b8] sm:$0xf0]  ;;  %v1691_v3 = vld [vmem:[#allocation5 + $0x220] sm:$0xf]  ;;  %v2000_v54 = vld [vmem:[#allocation5 + $0x224] sm:$0xf0]  ;;  %v1704_v52 = vor.u32 %v2001_v34, %v1701_v47 }
  0x61   :  { %v461_v7 = vunpack.c.l.b16 %v457_v17  ;;  %v462_v33 = vunpack.c.l.b16 %v458_v12  ;;  %v1768_v18 = vor.u32 %v2017_v23, %v1765_v6  ;;  %v1755_v16 = vld [vmem:[#allocation5 + $0x2a0] sm:$0xf]  ;;  %v2016_v41 = vld [vmem:[#allocation5 + $0x2a4] sm:$0xf0]  ;;  %v1999_v39 = vld [vmem:[#allocation5 + $0x224] sm:$0xf] }
  0x62   :  { %877 = vmatpush.bf16.msra.mxu0 %v1708_v56  ;;  %890 = vmatpush.bf16.msra.mxu1 %v1772_v40  ;;  %v1693_v44 = vld [vmem:[#allocation5 + $0x228] sm:$0xf0]  ;;  %v2015_v17 = vld [vmem:[#allocation5 + $0x2a4] sm:$0xf]  ;;  %v1692_v56 = vor.u32 %v2000_v54, %v1691_v3  ;;  %v1756_v40 = vor.u32 %v2016_v41, %v1755_v16  ;;  %v1683_v47 = vld [vmem:[#allocation5 + $0x210] sm:$0xf] }
  0x63   :  { %v463_v22 = vsel %vm234_vm1, %v461_v7, %v459_v8  ;;  %v464_v25 = vsel %vm234_vm1, %v462_v33, %v460_v21  ;;  %903 = vmatpush.bf16.msra.mxu2 %v1712_v29  ;;  %916 = vmatpush.bf16.msra.mxu3 %v1776_v45  ;;  %v1757_v12 = vld [vmem:[#allocation5 + $0x2a8] sm:$0xf0]  ;;  %v1998_v6 = vld [vmem:[#allocation5 + $0x214] sm:$0xf0]  ;;  %v1696_v23 = vor.u32 %v1999_v39, %v1693_v44  ;;  %v1747_v21 = vld [vmem:[#allocation5 + $0x290] sm:$0xf] }
  0x64   :  { %v2436_v62 = vpack.c.b16 %v463_v22, %v463_v22  ;;  %v2438_v46 = vpack.c.b16 %v464_v25, %v464_v25  ;;  %v1760_v8 = vor.u32 %v2015_v17, %v1757_v12  ;;  %v2014_v29 = vld [vmem:[#allocation5 + $0x294] sm:$0xf0]  ;;  %v1997_v45 = vld [vmem:[#allocation5 + $0x214] sm:$0xf]  ;;  %v1685_v42 = vld [vmem:[#allocation5 + $0x218] sm:$0xf0]  ;;  %v1684_v5 = vor.u32 %v1998_v6, %v1683_v47 }
  0x65   :  { %v2013_v1 = vld [vmem:[#allocation5 + $0x294] sm:$0xf]  ;;  %v1749_v7 = vld [vmem:[#allocation5 + $0x298] sm:$0xf0]  ;;  %v1675_v33 = vld [vmem:[#allocation5 + $0x200] sm:$0xf]  ;;  %v1748_v28 = vor.u32 %v2014_v29, %v1747_v21 }
  0x66   :  { %663 = vmatmul.bf16.vlgmr.msrb.gmra.mxu2 %v2436_v62  ;;  %676 = vmatmul.bf16.vlgmr.msrb.gmra.mxu3 %v2438_v46  ;;  %v1996_v34 = vld [vmem:[#allocation5 + $0x204] sm:$0xf0]  ;;  %v1739_v22 = vld [vmem:[#allocation5 + $0x280] sm:$0xf]  ;;  %v1995_v3 = vld [vmem:[#allocation5 + $0x204] sm:$0xf] }
  0x67   :  { %637 = vmatmul.bf16.vlgmr.msrb.gmra.mxu0 %v2436_v62  ;;  %650 = vmatmul.bf16.vlgmr.msrb.gmra.mxu1 %v2438_v46  ;;  %v2012_v25 = vld [vmem:[#allocation5 + $0x284] sm:$0xf0]  ;;  %v1677_v54 = vld [vmem:[#allocation5 + $0x208] sm:$0xf0]  ;;  %v1859_v16 = vld [vmem:[#allocation5 + $0x370] sm:$0xf]  ;;  %v1676_v12 = vor.u32 %v1996_v34, %v1675_v33 }
  0x68   :  { %878 = vmatpush.bf16.msra.mxu0 %v1700_v57  ;;  %891 = vmatpush.bf16.msra.mxu1 %v1764_v50  ;;  %v1688_v57 = vor.u32 %v1997_v45, %v1685_v42  ;;  %v1752_v50 = vor.u32 %v2013_v1, %v1749_v7  ;;  %v2042_v41 = vld [vmem:[#allocation5 + $0x374] sm:$0xf0]  ;;  %v1923_v39 = vld [vmem:[#allocation5 + $0x3f0] sm:$0xf]  ;;  %v2041_v17 = vld [vmem:[#allocation5 + $0x374] sm:$0xf] }
  0x69   :  { %904 = vmatpush.bf16.msra.mxu2 %v1704_v52  ;;  %917 = vmatpush.bf16.msra.mxu3 %v1768_v18  ;;  %v2011_v52 = vld [vmem:[#allocation5 + $0x284] sm:$0xf]  ;;  %v1741_v18 = vld [vmem:[#allocation5 + $0x288] sm:$0xf0]  ;;  %v2058_v44 = vld [vmem:[#allocation5 + $0x3f4] sm:$0xf0]  ;;  %v1860_v21 = vor.u32 %v2042_v41, %v1859_v16 }
  0x6a   :  { %v2057_v47 = vld [vmem:[#allocation5 + $0x3f4] sm:$0xf]  ;;  %v1925_v6 = vld [vmem:[#allocation5 + $0x3f8] sm:$0xf0]  ;;  %v1924_v29 = vor.u32 %v2058_v44, %v1923_v39  ;;  %v1851_v45 = vld [vmem:[#allocation5 + $0x360] sm:$0xf] }
  0x6b   :  { %v2040_v42 = vld [vmem:[#allocation5 + $0x364] sm:$0xf0]  ;;  %v1928_v7 = vor.u32 %v2057_v47, %v1925_v6  ;;  %v1915_v14 = vld [vmem:[#allocation5 + $0x3e0] sm:$0xf]  ;;  %v2039_v10 = vld [vmem:[#allocation5 + $0x364] sm:$0xf] }
  0x6c   :  { %879 = vmatpush.bf16.msra.mxu0 %v1692_v56  ;;  %892 = vmatpush.bf16.msra.mxu1 %v1756_v40  ;;  %v1740_v56 = vor.u32 %v2012_v25, %v1739_v22  ;;  %v1861_v40 = vld [vmem:[#allocation5 + $0x378] sm:$0xf0]  ;;  %v2056_v51 = vld [vmem:[#allocation5 + $0x3e4] sm:$0xf0]  ;;  %v1853_v33 = vld [vmem:[#allocation5 + $0x368] sm:$0xf0]  ;;  %v1852_v34 = vor.u32 %v2040_v42, %v1851_v45 }
  0x6d   :  { %905 = vmatpush.bf16.msra.mxu2 %v1696_v23  ;;  %918 = vmatpush.bf16.msra.mxu3 %v1760_v8  ;;  %v1680_v23 = vor.u32 %v1995_v3, %v1677_v54  ;;  %v1744_v8 = vor.u32 %v2011_v52, %v1741_v18  ;;  %v1864_v1 = vor.u32 %v2041_v17, %v1861_v40  ;;  %v1843_v25 = vld [vmem:[#allocation5 + $0x350] sm:$0xf]  ;;  %v2054_v52 = vld [vmem:[#allocation5 + $0x3d4] sm:$0xf0]  ;;  %v2037_v18 = vld [vmem:[#allocation5 + $0x354] sm:$0xf] }
  0x6e   :  { %v1916_v22 = vor.u32 %v2056_v51, %v1915_v14  ;;  %v1907_v54 = vld [vmem:[#allocation5 + $0x3d0] sm:$0xf]  ;;  %v1845_v16 = vld [vmem:[#allocation5 + $0x358] sm:$0xf0]  ;;  %v2053_v41 = vld [vmem:[#allocation5 + $0x3d4] sm:$0xf] }
  0x6f   :  { %v1909_v39 = vld [vmem:[#allocation5 + $0x3d8] sm:$0xf0]  ;;  %v1908_v14 = vor.u32 %v2054_v52, %v1907_v54  ;;  %v2036_v44 = vld [vmem:[#allocation5 + $0x344] sm:$0xf0]  ;;  %v1848_v17 = vor.u32 %v2037_v18, %v1845_v16  ;;  %v2035_v47 = vld [vmem:[#allocation5 + $0x344] sm:$0xf] }
  0x70   :  { %880 = vmatpush.bf16.msra.mxu0 %v1684_v5  ;;  %893 = vmatpush.bf16.msra.mxu1 %v1748_v28  ;;  %v2055_v5 = vld [vmem:[#allocation5 + $0x3e4] sm:$0xf]  ;;  %v1917_v28 = vld [vmem:[#allocation5 + $0x3e8] sm:$0xf0]  ;;  %v2052_v40 = vld [vmem:[#allocation5 + $0x3c4] sm:$0xf0] }
  0x71   :  { %906 = vmatpush.bf16.msra.mxu2 %v1688_v57  ;;  %919 = vmatpush.bf16.msra.mxu3 %v1752_v50  ;;  %v2038_v57 = vld [vmem:[#allocation5 + $0x354] sm:$0xf0]  ;;  %v1856_v50 = vor.u32 %v2039_v10, %v1853_v33  ;;  %v1920_v3 = vor.u32 %v2055_v5, %v1917_v28  ;;  %v1835_v10 = vld [vmem:[#allocation5 + $0x340] sm:$0xf]  ;;  %v1837_v6 = vld [vmem:[#allocation5 + $0x348] sm:$0xf0] }
  0x72   :  { %v1844_v51 = vor.u32 %v2038_v57, %v1843_v25  ;;  %v1840_v45 = vor.u32 %v2035_v47, %v1837_v6  ;;  %v2033_v33 = vld [vmem:[#allocation5 + $0x334] sm:$0xf]  ;;  %v1829_v5 = vld [vmem:[#allocation5 + $0x338] sm:$0xf0]  ;;  %v1819_v57 = vld [vmem:[#allocation5 + $0x320] sm:$0xf] }
  0x73   :  { %v2049_v28 = vld [vmem:[#allocation5 + $0x3b4] sm:$0xf]  ;;  %v1883_v52 = vld [vmem:[#allocation5 + $0x3a0] sm:$0xf]  ;;  %v2048_v18 = vld [vmem:[#allocation5 + $0x3a4] sm:$0xf0] }
  0x74   :  { %881 = vmatpush.bf16.msra.mxu0 %v1676_v12  ;;  %894 = vmatpush.bf16.msra.mxu1 %v1740_v56  ;;  %v1912_v12 = vor.u32 %v2053_v41, %v1909_v39  ;;  %v1899_v56 = vld [vmem:[#allocation5 + $0x3c0] sm:$0xf]  ;;  %v2031_v16 = vld [vmem:[#allocation5 + $0x324] sm:$0xf]  ;;  %v1821_v41 = vld [vmem:[#allocation5 + $0x328] sm:$0xf0] }
  0x75   :  { %907 = vmatpush.bf16.msra.mxu2 %v1680_v23  ;;  %920 = vmatpush.bf16.msra.mxu3 %v1744_v8  ;;  %v2051_v23 = vld [vmem:[#allocation5 + $0x3c4] sm:$0xf]  ;;  %v1901_v8 = vld [vmem:[#allocation5 + $0x3c8] sm:$0xf0]  ;;  %v2046_v47 = vld [vmem:[#allocation5 + $0x394] sm:$0xf0] }
  0x76   :  { %v1904_v42 = vor.u32 %v2051_v23, %v1901_v8  ;;  %v2047_v39 = vld [vmem:[#allocation5 + $0x3a4] sm:$0xf]  ;;  %v2029_v6 = vld [vmem:[#allocation5 + $0x314] sm:$0xf]  ;;  %v1813_v23 = vld [vmem:[#allocation5 + $0x318] sm:$0xf0] }
  0x77   :  { %882 = vmatmul.bf16.vlgmr.msra.gmra.mxu0 %v2436_v62  ;;  %895 = vmatmul.bf16.vlgmr.msra.gmra.mxu1 %v2438_v46  ;;  %v2045_v8 = vld [vmem:[#allocation5 + $0x394] sm:$0xf] }
  0x78   :  { %1121 = vmatpush.bf16.msrb.mxu0 %v1860_v21  ;;  %1134 = vmatpush.bf16.msrb.mxu1 %v1924_v29  ;;  %v1827_v21 = vld [vmem:[#allocation5 + $0x330] sm:$0xf]  ;;  %v2034_v29 = vld [vmem:[#allocation5 + $0x334] sm:$0xf0] }
  0x79   :  { %1147 = vmatpush.bf16.msrb.mxu2 %v1864_v1  ;;  %1160 = vmatpush.bf16.msrb.mxu3 %v1928_v7  ;;  %v1891_v1 = vld [vmem:[#allocation5 + $0x3b0] sm:$0xf]  ;;  %v2050_v7 = vld [vmem:[#allocation5 + $0x3b4] sm:$0xf0] }
  0x7a   :  { %908 = vmatmul.bf16.vlgmr.msra.gmra.mxu2 %v2436_v62  ;;  %921 = vmatmul.bf16.vlgmr.msra.gmra.mxu3 %v2438_v46  ;;  %v1836_v62 = vor.u32 %v2036_v44, %v1835_v10  ;;  %v1900_v46 = vor.u32 %v2052_v40, %v1899_v56  ;;  %v1892_v25 = vor.u32 %v2050_v7, %v1891_v1  ;;  %v1811_v44 = vld [vmem:[#allocation5 + $0x310] sm:$0xf]  ;;  %v1867_v7 = vld [vmem:[#allocation5 + $0x380] sm:$0xf] }
  0x7b   :  { %v1884_v10 = vor.u32 %v2048_v18, %v1883_v52  ;;  %v1875_v40 = vld [vmem:[#allocation5 + $0x390] sm:$0xf]  ;;  %v135_v52 = vunpack.c.l.bf16 %v2428_v58  ;;  %v134_v18 = vunpack.c.h.bf16 %v2424_v53 }
  0x7c   :  { %1122 = vmatpush.bf16.msrb.mxu0 %v1852_v34  ;;  %1135 = vmatpush.bf16.msrb.mxu1 %v1916_v22  ;;  %v1893_v34 = vld [vmem:[#allocation5 + $0x3b8] sm:$0xf0]  ;;  %v1828_v22 = vor.u32 %v2034_v29, %v1827_v21  ;;  %v1876_v21 = vor.u32 %v2046_v47, %v1875_v40  ;;  %v1803_v29 = vld [vmem:[#allocation5 + $0x300] sm:$0xf]  ;;  %v2689_v47 = vld [vmem:[#allocation56_spill] sm:$0xff] }
  0x7d   :  { %1148 = vmatpush.bf16.msrb.mxu2 %v1856_v50  ;;  %1161 = vmatpush.bf16.msrb.mxu3 %v1920_v3  ;;  %v2032_v50 = vld [vmem:[#allocation5 + $0x324] sm:$0xf0]  ;;  %v1832_v3 = vor.u32 %v2033_v33, %v1829_v5  ;;  %v1896_v54 = vor.u32 %v2049_v28, %v1893_v34  ;;  %v2027_v5 = vld [vmem:[#allocation5 + $0x304] sm:$0xf]  ;;  %v1805_v28 = vld [vmem:[#allocation5 + $0x308] sm:$0xf0] }
  0x7e   :  { %v2044_v33 = vld [vmem:[#allocation5 + $0x384] sm:$0xf0]  ;;  %v2043_v34 = vld [vmem:[#allocation5 + $0x384] sm:$0xf] }
  0x7f   :  { %v2688_v40 = vld [vmem:[#allocation18_spill] sm:$0xff] }
  0x80   :  { %1123 = vmatpush.bf16.msrb.mxu0 %v1844_v51  ;;  %1136 = vmatpush.bf16.msrb.mxu1 %v1908_v14  ;;  %v1885_v51 = vld [vmem:[#allocation5 + $0x3a8] sm:$0xf0]  ;;  %v1820_v14 = vor.u32 %v2032_v50, %v1819_v57  ;;  %v1868_v57 = vor.u32 %v2044_v33, %v1867_v7  ;;  %v1808_v50 = vor.u32 %v2027_v5, %v1805_v28  ;;  %v2697_v5 = vld [vmem:[#allocation24_spill] sm:$0xff]  ;;  %v2698_v28 = vld [vmem:[#allocation54_spill] sm:$0xff] }
  0x81   :  { %1149 = vmatpush.bf16.msrb.mxu2 %v1848_v17  ;;  %1162 = vmatpush.bf16.msrb.mxu3 %v1912_v12  ;;  %v2030_v17 = vld [vmem:[#allocation5 + $0x314] sm:$0xf0]  ;;  %v1824_v12 = vor.u32 %v2031_v16, %v1821_v41  ;;  %v1888_v56 = vor.u32 %v2047_v39, %v1885_v51  ;;  %v136_v16 = vunpack.c.h.bf16 %v2428_v58  ;;  %v139_v39 = vsub.f32 %v2418_v24, %v135_v52  ;;  %v2696_v33 = vld [vmem:[#allocation23_spill] sm:$0xff] }
  0x82   :  { %v138_v51 = vsub.f32 %v2416_v38, %v134_v18  ;;  %v2703_v18 = vld [vmem:[#allocation27_spill] sm:$0xff] }
  0x84   :  { %1124 = vmatpush.bf16.msrb.mxu0 %v1836_v62  ;;  %1137 = vmatpush.bf16.msrb.mxu1 %v1900_v46  ;;  %v1877_v62 = vld [vmem:[#allocation5 + $0x398] sm:$0xf0]  ;;  %v1812_v46 = vor.u32 %v2030_v17, %v1811_v44 }
  0x85   :  { %1150 = vmatpush.bf16.msrb.mxu2 %v1840_v45  ;;  %1163 = vmatpush.bf16.msrb.mxu3 %v1904_v42  ;;  %v2028_v45 = vld [vmem:[#allocation5 + $0x304] sm:$0xf0]  ;;  %v1816_v42 = vor.u32 %v2029_v6, %v1813_v23  ;;  %v1880_v1 = vor.u32 %v2045_v8, %v1877_v62  ;;  %v147_v6 = vunpack.c.l.bf16 %v2689_v47  ;;  %v2691_v8 = vld [vmem:[#allocation20_spill] sm:$0xff]  ;;  %v2692_v62 = vld [vmem:[#allocation57_spill] sm:$0xff] }
  0x86   :  { %v2690_v23 = vld [vmem:[#allocation19_spill] sm:$0xff] }
  0x88   :  { %1125 = vmatpush.bf16.msrb.mxu0 %v1828_v22  ;;  %1138 = vmatpush.bf16.msrb.mxu1 %v1892_v25  ;;  %v1869_v22 = vld [vmem:[#allocation5 + $0x388] sm:$0xf0]  ;;  %v1804_v25 = vor.u32 %v2028_v45, %v1803_v29  ;;  %v150_v29 = vunpack.c.h.bf16 %v2692_v62  ;;  %v2693_v45 = vld [vmem:[#allocation21_spill] sm:$0xff] }
  0x89   :  { %1151 = vmatpush.bf16.msrb.mxu2 %v1832_v3  ;;  %1164 = vmatpush.bf16.msrb.mxu3 %v1896_v54  ;;  %v1872_v3 = vor.u32 %v2043_v34, %v1869_v22  ;;  %v133_v54 = vunpack.c.l.bf16 %v2424_v53  ;;  %v140_v53 = vsub.f32 %v2420_v43, %v136_v16  ;;  %v2699_v22 = vld [vmem:[#allocation53_spill] sm:$0xff]  ;;  %v2704_v16 = vld [vmem:[#allocation28_spill] sm:$0xff] }
  0x8b   :  { %v137_v41 = vsub.f32 %v2414_v49, %v133_v54  ;;  %v2702_v54 = vld [vmem:[#allocation26_spill] sm:$0xff] }
  0x8c   :  { %1126 = vmatpush.bf16.msrb.mxu0 %v1820_v14  ;;  %1139 = vmatpush.bf16.msrb.mxu1 %v1884_v10  ;;  %v142_v14 = vpack.c.bf16 %v138_v51, %v138_v51 }
  0x8d   :  { %1152 = vmatpush.bf16.msrb.mxu2 %v1824_v12  ;;  %1165 = vmatpush.bf16.msrb.mxu3 %v1888_v56  ;;  %v141_v58 = vpack.c.bf16 %v137_v41, %v137_v41  ;;  %v2687_v56 = vld [vmem:[#allocation17_spill] sm:$0xff] }
  0x8e   :  { %v1180_v10 = vunpack.c.l.b16 %v142_v14  ;;  %v2708_v14 = vld [vmem:[#allocation32_spill] sm:$0xff] }
  0x90   :  { %1127 = vmatpush.bf16.msrb.mxu0 %v1812_v46  ;;  %1140 = vmatpush.bf16.msrb.mxu1 %v1876_v21  ;;  %v149_v46 = vunpack.c.l.bf16 %v2692_v62  ;;  %v148_v21 = vunpack.c.h.bf16 %v2689_v47 }
  0x91   :  { %1153 = vmatpush.bf16.msrb.mxu2 %v1816_v42  ;;  %1166 = vmatpush.bf16.msrb.mxu3 %v1880_v1  ;;  %v2694_v42 = vld [vmem:[#allocation22_spill] sm:$0xff]  ;;  %v2695_v1 = vld [vmem:[#allocation52_spill] sm:$0xff] }
  0x92   :  { %v151_v7 = vsub.f32 %v2695_v1, %v147_v6  ;;  %v153_v34 = vsub.f32 %v2698_v28, %v149_v46 }
  0x94   :  { %1128 = vmatpush.bf16.msrb.mxu0 %v1804_v25  ;;  %1141 = vmatpush.bf16.msrb.mxu1 %v1868_v57  ;;  %v152_v25 = vsub.f32 %v2699_v22, %v148_v21  ;;  %v2700_v57 = vld [vmem:[#allocation55_spill] sm:$0xff]  ;;  %v155_v52 = vpack.c.bf16 %v151_v7, %v151_v7  ;;  %v157_v41 = vpack.c.bf16 %v153_v34, %v153_v34 }
  0x95   :  { %1154 = vmatpush.bf16.msrb.mxu2 %v1808_v50  ;;  %1167 = vmatpush.bf16.msrb.mxu3 %v1872_v3  ;;  %v154_v50 = vsub.f32 %v2700_v57, %v150_v29  ;;  %v2701_v3 = vld [vmem:[#allocation25_spill] sm:$0xff] }
  0x97   :  { %1129 = vmatmul.bf16.vlgmr.msrb.gmra.mxu0 %v2403_v35  ;;  %1142 = vmatmul.bf16.vlgmr.msrb.gmra.mxu1 %v2405_v27  ;;  %v158_v51 = vpack.c.bf16 %v154_v50, %v154_v50 }
  0x98   :  { %1189 = vmatpush.bf16.msra.mxu0 %v2272_v59  ;;  %1202 = vmatpush.bf16.msra.mxu1 %v2274_v61  ;;  %v143_v59 = vpack.c.bf16 %v139_v39, %v139_v39  ;;  %v144_v61 = vpack.c.bf16 %v140_v53, %v140_v53  ;;  %v156_v39 = vpack.c.bf16 %v152_v25, %v152_v25  ;;  %v2705_v53 = vld [vmem:[#allocation29_spill] sm:$0xff] }
  0x99   :  { %1215 = vmatpush.bf16.msra.mxu2 %v2276_v63  ;;  %1228 = vmatpush.bf16.msra.mxu3 %v2279_v4  ;;  %v1179_v63 = vunpack.c.l.b16 %v141_v58  ;;  %v2706_v58 = vld [vmem:[#allocation30_spill] sm:$0xff] }
  0x9a   :  { %1155 = vmatmul.bf16.vlgmr.msrb.gmra.mxu2 %v2403_v35  ;;  %1168 = vmatmul.bf16.vlgmr.msrb.gmra.mxu3 %v2405_v27  ;;  %v1181_v4 = vunpack.c.l.b16 %v143_v59  ;;  %v1182_v44 = vunpack.c.l.b16 %v144_v61  ;;  %v2685_v35 = vld [vmem:[#allocation15_spill] sm:$0xff]  ;;  %v2686_v27 = vld [vmem:[#allocation16_spill] sm:$0xff]  ;;  %v1247_v61 = vunpack.c.l.b16 %v155_v52 }
  0x9b   :  { %v2707_v59 = vld [vmem:[#allocation31_spill] sm:$0xff] }
  0x9c   :  { %1190 = vmatpush.bf16.msra.mxu0 %v2287_v20  ;;  %1203 = vmatpush.bf16.msra.mxu1 %v2291_v26  ;;  %v1183_v17 = vsel %vm234_vm1, %v1181_v4, %v1179_v63  ;;  %v1184_v12 = vsel %vm234_vm1, %v1182_v44, %v1180_v10  ;;  %v2670_v20 = vld [vmem:[#allocation43_spill] sm:$0xff]  ;;  %v2671_v26 = vld [vmem:[#allocation44_spill] sm:$0xff]  ;;  %v1249_v63 = vunpack.c.l.b16 %v157_v41  ;;  %v1248_v4 = vunpack.c.l.b16 %v156_v39  ;;  %v2709_v44 = vld [vmem:[#allocation33_spill] sm:$0xff] }
  0x9d   :  { %1216 = vmatpush.bf16.msra.mxu2 %v2293_v30  ;;  %1229 = vmatpush.bf16.msra.mxu3 %v2297_v36  ;;  %v2673_v30 = vld [vmem:[#allocation46_spill] sm:$0xff]  ;;  %v2674_v36 = vld [vmem:[#allocation47_spill] sm:$0xff]  ;;  %v1250_v10 = vunpack.c.l.b16 %v158_v51 }
  0xa0   :  { %1191 = vmatpush.bf16.msra.mxu0 %v2300_v48  ;;  %1204 = vmatpush.bf16.msra.mxu1 %v2304_v60  ;;  %v2675_v48 = vld [vmem:[#allocation48_spill] sm:$0xff]  ;;  %v2677_v60 = vld [vmem:[#allocation50_spill] sm:$0xff] }
  0xa1   :  { %1217 = vmatpush.bf16.msra.mxu2 %v2306_v0  ;;  %1230 = vmatpush.bf16.msra.mxu3 %v2309_v11  ;;  %v2678_v0 = vld [vmem:[#allocation51_spill] sm:$0xff]  ;;  %v1185_v11 = vpack.c.b16 %v1183_v17, %v1183_v17  ;;  %v2710_v17 = vld [vmem:[#allocation34_spill] sm:$0xff] }
  0xa4   :  { %1192 = vmatpush.bf16.msra.mxu0 %v2312_v55  ;;  %1205 = vmatpush.bf16.msra.mxu1 %v2314_v31  ;;  %v2672_v55 = vld [vmem:[#allocation45_spill] sm:$0xff]  ;;  %v1186_v31 = vpack.c.b16 %v1184_v12, %v1184_v12  ;;  %v2711_v12 = vld [vmem:[#allocation35_spill] sm:$0xff] }
  0xa5   :  { %1218 = vmatpush.bf16.msra.mxu2 %v2316_v32  ;;  %1231 = vmatpush.bf16.msra.mxu3 %v2318_v37  ;;  %v2679_v32 = vld [vmem:[#allocation58_spill] sm:$0xff]  ;;  %v2680_v37 = vld [vmem:[#allocation59_spill] sm:$0xff] }
  0xa8   :  { %1193 = vmatpush.bf16.msra.mxu0 %v2328_v9  ;;  %1206 = vmatpush.bf16.msra.mxu1 %v2333_v19  ;;  %v2676_v9 = vld [vmem:[#allocation49_spill] sm:$0xff]  ;;  %v2681_v19 = vld [vmem:[#allocation11_spill] sm:$0xff] }
  0xa9   :  { %1219 = vmatpush.bf16.msra.mxu2 %v2335_v13  ;;  %1232 = vmatpush.bf16.msra.mxu3 %v2337_v15  ;;  %v2682_v13 = vld [vmem:[#allocation12_spill] sm:$0xff]  ;;  %v2683_v15 = vld [vmem:[#allocation13_spill] sm:$0xff] }
  0xac   :  { %1194 = vmatpush.bf16.msra.mxu0 %v2340_v2  ;;  %1207 = vmatpush.bf16.msra.mxu1 %v2670_v20  ;;  %v2684_v2 = vld [vmem:[#allocation14_spill] sm:$0xff]  ;;  %v2712_v20 = vld [vmem:[#allocation36_spill] sm:$0xff] }
  0xad   :  { %1220 = vmatpush.bf16.msra.mxu2 %v2671_v26  ;;  %1233 = vmatpush.bf16.msra.mxu3 %v2672_v55  ;;  %v1251_v26 = vsel %vm234_vm1, %v1249_v63, %v1247_v61  ;;  %v1252_v55 = vsel %vm234_vm1, %v1250_v10, %v1248_v4 }
  0xb0   :  { %1195 = vmatpush.bf16.msra.mxu0 %v2673_v30  ;;  %1208 = vmatpush.bf16.msra.mxu1 %v2674_v36  ;;  %v2713_v30 = vld [vmem:[#allocation37_spill] sm:$0xff]  ;;  %v2714_v36 = vld [vmem:[#allocation38_spill] sm:$0xff] }
  0xb1   :  { %1221 = vmatpush.bf16.msra.mxu2 %v2675_v48  ;;  %1234 = vmatpush.bf16.msra.mxu3 %v2676_v9  ;;  %v1253_v48 = vpack.c.b16 %v1251_v26, %v1251_v26  ;;  %v1254_v9 = vpack.c.b16 %v1252_v55, %v1252_v55 }
  0xb4   :  { %1196 = vmatpush.bf16.msra.mxu0 %v2677_v60  ;;  %1209 = vmatpush.bf16.msra.mxu1 %v2678_v0  ;;  %v2715_v60 = vld [vmem:[#allocation39_spill] sm:$0xff]  ;;  %v2716_v0 = vld [vmem:[#allocation40_spill] sm:$0xff] }
  0xb5   :  { %1222 = vmatpush.bf16.msra.mxu2 %v2679_v32  ;;  %1235 = vmatpush.bf16.msra.mxu3 %v2680_v37 }
  0xb7   :  { %1197 = vmatmul.bf16.vlgmr.msra.gmra.mxu0 %v1185_v11  ;;  %1210 = vmatmul.bf16.vlgmr.msra.gmra.mxu1 %v1186_v31 }
  0xb8   :  { %1257 = vmatpush.bf16.msrb.mxu0 %v2681_v19  ;;  %1270 = vmatpush.bf16.msrb.mxu1 %v2682_v13 }
  0xb9   :  { %1283 = vmatpush.bf16.msrb.mxu2 %v2683_v15  ;;  %1296 = vmatpush.bf16.msrb.mxu3 %v2684_v2 }
  0xba   :  { %1223 = vmatmul.bf16.vlgmr.msra.gmra.mxu2 %v1185_v11  ;;  %1236 = vmatmul.bf16.vlgmr.msra.gmra.mxu3 %v1186_v31  ;;  %v2717_v11 = vld [vmem:[#allocation41_spill] sm:$0xff]  ;;  %v2718_v31 = vld [vmem:[#allocation42_spill] sm:$0xff] }
  0xbc   :  { %1258 = vmatpush.bf16.msrb.mxu0 %v2685_v35  ;;  %1271 = vmatpush.bf16.msrb.mxu1 %v2686_v27 }
  0xbd   :  { %1284 = vmatpush.bf16.msrb.mxu2 %v2687_v56  ;;  %1297 = vmatpush.bf16.msrb.mxu3 %v2688_v40 }
  0xc0   :  { %1259 = vmatpush.bf16.msrb.mxu0 %v2690_v23  ;;  %1272 = vmatpush.bf16.msrb.mxu1 %v2691_v8 }
  0xc1   :  { %1285 = vmatpush.bf16.msrb.mxu2 %v2693_v45  ;;  %1298 = vmatpush.bf16.msrb.mxu3 %v2694_v42 }
  0xc4   :  { %1260 = vmatpush.bf16.msrb.mxu0 %v2696_v33  ;;  %1273 = vmatpush.bf16.msrb.mxu1 %v2697_v5 }
  0xc5   :  { %1286 = vmatpush.bf16.msrb.mxu2 %v2701_v3  ;;  %1299 = vmatpush.bf16.msrb.mxu3 %v2702_v54 }
  0xc8   :  { %1261 = vmatpush.bf16.msrb.mxu0 %v2703_v18  ;;  %1274 = vmatpush.bf16.msrb.mxu1 %v2704_v16 }
  0xc9   :  { %1287 = vmatpush.bf16.msrb.mxu2 %v2705_v53  ;;  %1300 = vmatpush.bf16.msrb.mxu3 %v2706_v58 }
  0xcc   :  { %1262 = vmatpush.bf16.msrb.mxu0 %v2707_v59  ;;  %1275 = vmatpush.bf16.msrb.mxu1 %v2708_v14 }
  0xcd   :  { %1288 = vmatpush.bf16.msrb.mxu2 %v2709_v44  ;;  %1301 = vmatpush.bf16.msrb.mxu3 %v2710_v17 }
  0xd0   :  { %1263 = vmatpush.bf16.msrb.mxu0 %v2711_v12  ;;  %1276 = vmatpush.bf16.msrb.mxu1 %v2712_v20 }
  0xd1   :  { %1289 = vmatpush.bf16.msrb.mxu2 %v2713_v30  ;;  %1302 = vmatpush.bf16.msrb.mxu3 %v2714_v36  ;;  %v410_v32 = vpop.f32.mrf.mxu0 }
  0xd2   :  { %v423_v37 = vpop.f32.mrf.mxu1 }
  0xd3   :  { %v424_v19 = vadd.f32 %v423_v37, %v410_v32 }
  0xd4   :  { %1264 = vmatpush.bf16.msrb.mxu0 %v2715_v60  ;;  %1277 = vmatpush.bf16.msrb.mxu1 %v2716_v0 }
  0xd5   :  { %1290 = vmatpush.bf16.msrb.mxu2 %v2717_v11  ;;  %1303 = vmatpush.bf16.msrb.mxu3 %v2718_v31 }
  0xd7   :  { %1265 = vmatmul.bf16.vlgmr.msrb.gmra.mxu0 %v1253_v48  ;;  %1278 = vmatmul.bf16.vlgmr.msrb.gmra.mxu1 %v1254_v9  ;;  %v436_v13 = vpop.f32.mrf.mxu2 }
  0xd8   :  { %1291 = vmatmul.bf16.vlgmr.msrb.gmra.mxu2 %v1253_v48  ;;  %1304 = vmatmul.bf16.vlgmr.msrb.gmra.mxu3 %v1254_v9  ;;  %v449_v15 = vpop.f32.mrf.mxu3 }
  0xd9   :  { %v450_v2 = vadd.f32 %v449_v15, %v436_v13  ;;  %v412_v35 = vpop.f32.mrf.mxu0 }
  0xda   :  { %v425_v27 = vpop.f32.mrf.mxu1 }
  0xdf   :  { %v438_v56 = vpop.f32.mrf.mxu2 }
  0xe0   :  { %v451_v40 = vpop.f32.mrf.mxu3 }
  0xe4   :  { %v638_v47 = vpop.f32.mrf.mxu0  ;;  %v651_v6 = vpop.f32.mrf.mxu1 }
  0xe5   :  { %v639_v23 = vadd.f32 %v638_v47, %v424_v19 }
  0xe7   :  { %v652_v8 = vadd.f32 %v651_v6, %v639_v23 }
  0xe9   :  { %v664_v62 = vpop.f32.mrf.mxu2  ;;  %v677_v46 = vpop.f32.mrf.mxu3 }
  0xea   :  { %v665_v21 = vadd.f32 %v664_v62, %v450_v2 }
  0xec   :  { %v678_v29 = vadd.f32 %v677_v46, %v665_v21  ;;  %v640_v45 = vpop.f32.mrf.mxu0  ;;  %v653_v42 = vpop.f32.mrf.mxu1 }
  0xf1   :  { %v666_v7 = vpop.f32.mrf.mxu2  ;;  %v679_v33 = vpop.f32.mrf.mxu3 }
  0xf4   :  { %v883_v5 = vpop.f32.mrf.mxu0  ;;  %v896_v34 = vpop.f32.mrf.mxu1 }
  0xf5   :  { %v897_v25 = vadd.f32 %v896_v34, %v883_v5 }
  0xf7   :  { %v926_v50 = vadd.f32 %v897_v25, %v652_v8 }
  0xfc   :  { %v885_v18 = vpop.f32.mrf.mxu0  ;;  %v898_v16 = vpop.f32.mrf.mxu1 }
  0xfd   :  { %v909_v3 = vpop.f32.mrf.mxu2  ;;  %v922_v54 = vpop.f32.mrf.mxu3 }
  0xfe   :  { %v923_v52 = vadd.f32 %v922_v54, %v909_v3 }
 0x100   :  { %v927_v41 = vadd.f32 %v923_v52, %v678_v29 }
 0x105   :  { %v911_v39 = vpop.f32.mrf.mxu2  ;;  %v924_v51 = vpop.f32.mrf.mxu3 }
 0x114   :  { %v1130_v53 = vpop.f32.mrf.mxu0  ;;  %v1143_v58 = vpop.f32.mrf.mxu1 }
 0x115   :  { %v1144_v59 = vadd.f32 %v1143_v58, %v1130_v53 }
 0x117   :  { %v1173_v14 = vadd.f32 %v1144_v59, %v926_v50 }
 0x11c   :  { %v1132_v4 = vpop.f32.mrf.mxu0  ;;  %v1145_v10 = vpop.f32.mrf.mxu1 }
 0x11d   :  { %v1156_v61 = vpop.f32.mrf.mxu2  ;;  %v1169_v63 = vpop.f32.mrf.mxu3 }
 0x11e   :  { %v1170_v37 = vadd.f32 %v1169_v63, %v1156_v61  ;;  %v1372_v61 = vlaneseq }
 0x120   :  { %v1174_v2 = vadd.f32 %v1170_v37, %v927_v41  ;;  %vm2540_vm11 = vcmp.lt.s32.totalorder %v1372_v61, 256 }
 0x125   :  { %v1158_v44 = vpop.f32.mrf.mxu2  ;;  %v1171_v17 = vpop.f32.mrf.mxu3 }
 0x134   :  { %v1198_v12 = vpop.f32.mrf.mxu0  ;;  %v1211_v20 = vpop.f32.mrf.mxu1 }
 0x135   :  { %v1212_v60 = vadd.f32 %v1211_v20, %v1198_v12 }
 0x137   :  { %v1241_v31 = vadd.f32 %v1212_v60, %v1173_v14 }
 0x13c   :  { %v1200_v30 = vpop.f32.mrf.mxu0  ;;  %v1213_v36 = vpop.f32.mrf.mxu1 }
 0x13d   :  { %v1224_v26 = vpop.f32.mrf.mxu2  ;;  %v1237_v55 = vpop.f32.mrf.mxu3 }
 0x13e   :  { %v1238_v13 = vadd.f32 %v1237_v55, %v1224_v26 }
 0x140   :  { %v1242_v56 = vadd.f32 %v1238_v13, %v1174_v2 }
 0x145   :  { %v1226_v48 = vpop.f32.mrf.mxu2  ;;  %v1239_v9 = vpop.f32.mrf.mxu3 }
 0x154   :  { %v1266_v0 = vpop.f32.mrf.mxu0  ;;  %v1279_v11 = vpop.f32.mrf.mxu1 }
 0x155   :  { %v1280_v32 = vadd.f32 %v1279_v11, %v1266_v0 }
 0x157   :  { %v1309_v19 = vadd.f32 %v1280_v32, %v1241_v31 }
 0x159   :  { %v1929_v15 = vmul.f32 -1.442695, %v1309_v19 }
 0x15b   :  { %2066 = vpow2.f32 %v1929_v15  ;;  %v1292_v35 = vpop.f32.mrf.mxu2  ;;  %v1305_v27 = vpop.f32.mrf.mxu3 }
 0x15c   :  { %v1306_v40 = vadd.f32 %v1305_v27, %v1292_v35  ;;  %v1268_v47 = vpop.f32.mrf.mxu0  ;;  %v1281_v6 = vpop.f32.mrf.mxu1 }
 0x15e   :  { %v1310_v23 = vadd.f32 %v1306_v40, %v1242_v56 }
 0x160   :  { %v1930_v8 = vmul.f32 -1.442695, %v1310_v23 }
 0x161   :  { %v2067_v62 = vpop.eup %2066 }
 0x162   :  { %v1317_v46 = vadd.f32 1.0, %v2067_v62  ;;  %2068 = vpow2.f32 %v1930_v8 }
 0x163   :  { %v1294_v21 = vpop.f32.mrf.mxu2  ;;  %v1307_v29 = vpop.f32.mrf.mxu3 }
 0x164   :  { %2070 = vrcp.f32 %v1317_v46  ;;  %v1330_v3 = vand.u32 2147483648, %v1317_v46  ;;  %vm1324_vm3 = vweird.f32 %v1317_v46  ;;  %v1328_v52 = vand.u32 2147483647, %v1317_v46 }
 0x166   :  { %v1331_v39 = vor.u32 1.1754944e-38, %v1330_v3  ;;  %vm1329_vm6 = vcmp.eq.f32.partialorder %v1328_v52, 8.507059e+37 }
 0x168   :  { %v2069_v45 = vpop.eup %2068 }
 0x169   :  { %v1318_v42 = vadd.f32 1.0, %v2069_v45 }
 0x16a   :  { %v2071_v7 = vpop.eup %2070 }
 0x16b   :  { %v1320_v33 = vmul.f32 %v2071_v7, %v1317_v46  ;;  %2072 = vrcp.f32 %v1318_v42  ;;  %vm1325_vm2 = vweird.f32 %v2071_v7  ;;  %v1345_v41 = vand.u32 2147483648, %v1318_v42 }
 0x16c   :  { %vm1326_vm4 = vmor %vm1324_vm3, %vm1325_vm2  ;;  %v1343_v53 = vand.u32 2147483647, %v1318_v42  ;;  %vm1339_vm7 = vweird.f32 %v1318_v42 }
 0x16d   :  { %v1321_v5 = vsub.f32 1.0, %v1320_v33  ;;  %v1346_v14 = vor.u32 1.1754944e-38, %v1345_v41 }
 0x16e   :  { %vm1344_vm9 = vcmp.eq.f32.partialorder %v1343_v53, 8.507059e+37 }
 0x16f   :  { %v1322_v34 = vmul.f32 %v2071_v7, %v1321_v5 }
 0x171   :  { %v2073_v25 = vpop.eup %2072  ;;  %v1323_v50 = vadd.f32 %v2071_v7, %v1322_v34 }
 0x172   :  { %v1335_v54 = vmul.f32 %v2073_v25, %v1318_v42  ;;  %vm1340_vm5 = vweird.f32 %v2073_v25 }
 0x173   :  { %v1327_v16 = vsel %vm1326_vm4, %v2071_v7, %v1323_v50  ;;  %vm1341_vm8 = vmor %vm1339_vm7, %vm1340_vm5 }
 0x174   :  { %v1336_v18 = vsub.f32 1.0, %v1335_v54  ;;  %v1332_v58 = vsel %vm1329_vm6, %v1331_v39, %v1327_v16 }
 0x175   :  { %v1351_v4 = vrot.slane %v1332_v58, 1  ;;  %v1357_v20 = vmul.f32 %v1332_v58, %v2414_v49  ;;  %v1379_v26 = vmul.f32 %v1332_v58, %v2695_v1 }
 0x176   :  { %v1337_v51 = vmul.f32 %v2073_v25, %v1336_v18 }
 0x177   :  { %v1359_v49 = vmul.f32 %v1351_v4, %v2418_v24 }
 0x178   :  { %v1338_v59 = vadd.f32 %v2073_v25, %v1337_v51 }
 0x17a   :  { %v1342_v63 = vsel %vm1341_vm8, %v2073_v25, %v1338_v59 }
 0x17b   :  { %v1347_v10 = vsel %vm1344_vm9, %v1346_v14, %v1342_v63 }
 0x17c   :  { %v1352_v44 = vrot.slane %v1347_v10, 1  ;;  %v1358_v17 = vmul.f32 %v1347_v10, %v2416_v38  ;;  %v1380_v12 = vmul.f32 %v1347_v10, %v2699_v22  ;;  %v1381_v38 = vmul.f32 %v1351_v4, %v2698_v28 }
 0x17e   :  { %v1360_v30 = vmul.f32 %v1352_v44, %v2420_v43  ;;  %v1365_v36 = vrot.slane %v1358_v17, 7  ;;  %v1382_v48 = vmul.f32 %v1352_v44, %v2700_v57  ;;  %v1387_v9 = vrot.slane %v1380_v12, 7 }
 0x180   :  { %v1366_v1 = vrot.slane %v1360_v30, 7  ;;  %v1388_v22 = vrot.slane %v1382_v48, 7  ;;  %v1368_v60 = vsel %vm1367_vm10, %v1357_v20, %v1365_v36  ;;  %v1389_v43 = vsel %vm1367_vm10, %v1379_v26, %v1387_v9 }
 0x181   :  { %1376 = vst.msk [vmem:[#allocation7] ss:$2 sm:$0x3] %vm2540_vm11, %v1368_v60 }
 0x182   :  { %v1369_v57 = vsel %vm1367_vm10, %v1359_v49, %v1366_v1  ;;  %v1390_v0 = vsel %vm1367_vm10, %v1381_v38, %v1388_v22  ;;  %1394 = vst.msk [vmem:[#allocation7 + $0x1] ss:$2 sm:$0x3] %vm2540_vm11, %v1389_v43 }
 0x183   :  { %1378 = vst.msk [vmem:[#allocation7 + $0x4] ss:$2 sm:$0x3] %vm2540_vm11, %v1369_v57 }
 0x184   :  { %1396 = vst.msk [vmem:[#allocation7 + $0x5] ss:$2 sm:$0x3] %vm2540_vm11, %v1390_v0 }
 0x185   :  { %1409 = dma.vmem_to_hbm [thread:$0]  %s1402_s1, 128, %s1404_s23, [#allocation4], %s2157_s2, %s2157_s2, %s2158_s24  }
 0x186   :  { %2150 = dma.done.wait [#allocation4], 128  }
 0x187   :  { %2151 = vsyncadd [#allocation4], 4294967168 }
 0x188   :  { %1414 = vsyncpa [#allocation3], 1 }
 0x189   :  { %1415 = vsyncpa [#allocation6], 1 }
 0x18a   :  { %1416 = vsyncpa [#allocation4], 1 }

</bundles_post_ra>
